<compile_context>
chip_gen: v6e
topology: v6e:2x2x1
jax: 0.10.0
libtpu: 0.0.40
codegen_flags: <defaults>
</compile_context>

<pallas_src>
import functools

import jax
import jax.numpy as jnp
from jax.experimental import pallas as pl
from jax.experimental.pallas import tpu as pltpu

EPS = 1e-5          # torch.nn.LayerNorm default eps
NEG_INF = -1e30
TM = 256            # row tile of A_hat (output rows per grid step)
TK = 256            # reduction (column) tile of A_hat


def _round_up(x, m):
    return ((x + m - 1) // m) * m


def _pad2(a, rows, cols):
    return jnp.pad(a, ((0, rows - a.shape[0]), (0, cols - a.shape[1])))


# ----------------------------- kernels -----------------------------

def xw_kernel(x_ref, w_ref, o_ref):
    # Row-tiled X @ W (hoisted out of the A-streaming loop), bf16 output.
    o_ref[...] = jnp.dot(x_ref[...], w_ref[...],
                         preferred_element_type=jnp.float32).astype(o_ref.dtype)


def _accumulate(a_ref, xw_ref, acc_ref):
    # Accumulate A_tile @ XW_tile over the reduction grid axis (last, "arbitrary").
    k = pl.program_id(1)

    @pl.when(k == 0)
    def _():
        acc_ref[...] = jnp.zeros_like(acc_ref)

    acc_ref[...] += jnp.dot(a_ref[...], xw_ref[...],
                            preferred_element_type=jnp.float32)
    return k == pl.num_programs(1) - 1


def _masked_layernorm(h, gamma, beta, f_real):
    # LayerNorm over only the first f_real (unpadded) feature columns.
    col = jax.lax.broadcasted_iota(jnp.int32, h.shape, 1)
    mask = col < f_real
    inv_f = 1.0 / f_real
    mu = jnp.sum(jnp.where(mask, h, 0.0), axis=-1, keepdims=True) * inv_f
    diff = jnp.where(mask, h - mu, 0.0)
    var = jnp.sum(diff * diff, axis=-1, keepdims=True) * inv_f
    return diff * jax.lax.rsqrt(var + EPS) * gamma + beta, mask


def gcn_layer1_kernel(a_ref, xw_ref, b_ref, g_ref, be_ref, wn_ref,
                      o_ref, acc_ref, *, f_real):
    # Layer 1: accumulate A @ XW1; epilogue = +b, LayerNorm, ReLU, fused @W2 -> XW2 (bf16).
    is_last = _accumulate(a_ref, xw_ref, acc_ref)

    @pl.when(is_last)
    def _():
        hn, _ = _masked_layernorm(acc_ref[...] + b_ref[...],
                                  g_ref[...], be_ref[...], f_real)
        h = jnp.maximum(hn, 0.0)
        o_ref[...] = jnp.dot(h.astype(jnp.bfloat16), wn_ref[...],
                             preferred_element_type=jnp.float32).astype(o_ref.dtype)


def gcn_layer2_kernel(a_ref, xw_ref, b_ref, g_ref, be_ref,
                      o_ref, acc_ref, *, f_real):
    # Layer 2: accumulate A @ XW2; epilogue = +b, LayerNorm, log_softmax over real features.
    is_last = _accumulate(a_ref, xw_ref, acc_ref)

    @pl.when(is_last)
    def _():
        hn, mask = _masked_layernorm(acc_ref[...] + b_ref[...],
                                     g_ref[...], be_ref[...], f_real)
        m = jnp.max(jnp.where(mask, hn, NEG_INF), axis=-1, keepdims=True)
        p = jnp.where(mask, jnp.exp(hn - m), 0.0)
        lse = m + jnp.log(jnp.sum(p, axis=-1, keepdims=True))
        o_ref[...] = jnp.where(mask, hn - lse, 0.0).astype(o_ref.dtype)


# ----------------------------- wrappers -----------------------------

def _compute_xw(x_pad, w_pad, tm):
    n_pad, f_in = x_pad.shape
    f_pad = w_pad.shape[1]
    return pl.pallas_call(
        xw_kernel,
        out_shape=jax.ShapeDtypeStruct((n_pad, f_pad), jnp.bfloat16),
        grid=(n_pad // tm,),
        in_specs=[pl.BlockSpec((tm, f_in), lambda i: (i, 0)),
                  pl.BlockSpec((f_in, f_pad), lambda i: (0, 0))],
        out_specs=pl.BlockSpec((tm, f_pad), lambda i: (i, 0)),
        compiler_params=pltpu.CompilerParams(dimension_semantics=("parallel",)),
    )(x_pad, w_pad)


def _gcn_astream(kernel, a_pad, xw_pad, b_pad, g_pad, be_pad, extra_inputs,
                 out_dtype, f_real, f_acc_pad, f_out_pad, tm, tk):
    n_pad = a_pad.shape[0]
    one_block = lambda i, k: (0, 0)

    in_specs = [
        pl.BlockSpec((tm, tk), lambda i, k: (i, k)),         # A_hat tile (bf16 stream)
        pl.BlockSpec((tk, f_acc_pad), lambda i, k: (k, 0)),  # XW tile
        pl.BlockSpec((1, f_acc_pad), one_block),             # bias
        pl.BlockSpec((1, f_acc_pad), one_block),             # gamma
        pl.BlockSpec((1, f_acc_pad), one_block),             # beta
    ]
    args = [a_pad, xw_pad, b_pad, g_pad, be_pad]
    for arr in extra_inputs:                                 # e.g. fused W2 in layer 1
        in_specs.append(pl.BlockSpec(arr.shape, one_block))
        args.append(arr)

    return pl.pallas_call(
        functools.partial(kernel, f_real=f_real),
        out_shape=jax.ShapeDtypeStruct((n_pad, f_out_pad), out_dtype),
        grid=(n_pad // tm, n_pad // tk),
        in_specs=in_specs,
        out_specs=pl.BlockSpec((tm, f_out_pad), lambda i, k: (i, 0)),
        scratch_shapes=[pltpu.VMEM((tm, f_acc_pad), jnp.float32)],
        compiler_params=pltpu.CompilerParams(
            dimension_semantics=("parallel", "arbitrary"),
            vmem_limit_bytes=32 * 1024 * 1024),
    )(*args)


def build_normalized_adjacency(edge_index, num_nodes):
    """Dense PyG gcn_norm: drop existing self-loops, scatter-add duplicate edges,
    add self-loops with weight 1, then D^-1/2 (A+I) D^-1/2."""
    src = edge_index[0]
    dst = edge_index[1]
    w = jnp.where(src != dst, 1.0, 0.0).astype(jnp.float32)
    a = jnp.zeros((num_nodes, num_nodes), jnp.float32)
    a = a.at[dst, src].add(w)                       # out[i] = sum_j A[i, j] * x[j]
    a = a + jnp.eye(num_nodes, dtype=jnp.float32)   # self-loops, weight exactly 1
    deg = jnp.sum(a, axis=1)
    dinv = jnp.where(deg > 0, jax.lax.rsqrt(deg), 0.0)
    return dinv[:, None] * a * dinv[None, :]


def gcn_forward(x, edge_index, params, *, tm=TM, tk=TK):
    # Eval mode: dropout_edge and F.dropout are identity.
    n, f_in = x.shape
    hid = params["w1"].shape[1]
    out_dim = params["w2"].shape[1]

    f1_pad = _round_up(hid, 128)
    f2_pad = _round_up(out_dim, 128)
    n_pad = _round_up(n, max(tm, tk))

    a_hat = build_normalized_adjacency(edge_index, n)
    a_pad = _pad2(a_hat, n_pad, n_pad).astype(jnp.bfloat16)

    x_pad = _pad2(x.astype(jnp.float32), n_pad, f_in)
    w1_pad = _pad2(params["w1"], f_in, f1_pad)
    b1 = jnp.pad(params["b1"], (0, f1_pad - hid)).reshape(1, f1_pad)
    g1 = jnp.pad(params["g1"], (0, f1_pad - hid)).reshape(1, f1_pad)
    be1 = jnp.pad(params["be1"], (0, f1_pad - hid)).reshape(1, f1_pad)
    w2_pad = _pad2(params["w2"], f1_pad, f2_pad).astype(jnp.bfloat16)
    b2 = jnp.pad(params["b2"], (0, f2_pad - out_dim)).reshape(1, f2_pad)
    g2 = jnp.pad(params["g2"], (0, f2_pad - out_dim)).reshape(1, f2_pad)
    be2 = jnp.pad(params["be2"], (0, f2_pad - out_dim)).reshape(1, f2_pad)

    # X @ W1 once (hoisted out of the A-streaming loop), bf16 for the MXU stream.
    xw1 = _compute_xw(x_pad, w1_pad, tm)                       # [n_pad, f1_pad] bf16

    # Layer 1: stream A_hat, accumulate, epilogue LN+ReLU fused with @W2 -> XW2.
    xw2 = _gcn_astream(gcn_layer1_kernel, a_pad, xw1, b1, g1, be1,
                       extra_inputs=[w2_pad], out_dtype=jnp.bfloat16,
                       f_real=hid, f_acc_pad=f1_pad, f_out_pad=f2_pad, tm=tm, tk=tk)

    # Layer 2: stream A_hat against precomputed XW2, epilogue LN + log_softmax.
    out = _gcn_astream(gcn_layer2_kernel, a_pad, xw2, b2, g2, be2,
                       extra_inputs=[], out_dtype=jnp.float32,
                       f_real=out_dim, f_acc_pad=f2_pad, f_out_pad=f2_pad, tm=tm, tk=tk)

    return out[:n, :out_dim]


def gcn_reference(x, edge_index, params):
    # Pure-JAX f32 reference for correctness checking.
    a = build_normalized_adjacency(edge_index, x.shape[0])

    def ln(h, g, b):
        mu = jnp.mean(h, axis=-1, keepdims=True)
        var = jnp.mean((h - mu) ** 2, axis=-1, keepdims=True)
        return (h - mu) * jax.lax.rsqrt(var + EPS) * g + b

    h = a @ (x @ params["w1"]) + params["b1"]
    h = jnp.maximum(ln(h, params["g1"], params["be1"]), 0.0)
    h = a @ (h @ params["w2"]) + params["b2"]
    h = ln(h, params["g2"], params["be2"])
    return jax.nn.log_softmax(h, axis=-1)


def init_params(key, input_dim, hidden_dim, output_dim):
    k1, k2 = jax.random.split(key)

    def glorot(k, fan_in, fan_out):
        limit = jnp.sqrt(6.0 / (fan_in + fan_out))
        return jax.random.uniform(k, (fan_in, fan_out), jnp.float32, -limit, limit)

    return {
        "w1": glorot(k1, input_dim, hidden_dim),
        "b1": jnp.zeros((hidden_dim,), jnp.float32),
        "g1": jnp.ones((hidden_dim,), jnp.float32),
        "be1": jnp.zeros((hidden_dim,), jnp.float32),
        "w2": glorot(k2, hidden_dim, output_dim),
        "b2": jnp.zeros((output_dim,), jnp.float32),
        "g2": jnp.ones((output_dim,), jnp.float32),
        "be2": jnp.zeros((output_dim,), jnp.float32),
    }


if __name__ == "__main__":
    num_nodes = 300            # pads to 512 -> grid (2, 2): exercises accumulate + epilogue
    input_dim, hidden_dim, output_dim = 8, 32, 4
    num_edges = 600

    key = jax.random.PRNGKey(0)
    kx, ke, kp = jax.random.split(key, 3)

    x = jax.random.normal(kx, (num_nodes, input_dim), jnp.float32)
    edge_index = jax.random.randint(ke, (2, num_edges), 0, num_nodes, jnp.int32)
    params = init_params(kp, input_dim, hidden_dim, output_dim)

    fwd = jax.jit(gcn_forward)
    out = jax.block_until_ready(fwd(x, edge_index, params))

    assert out.shape == (num_nodes, output_dim)
    assert bool(jnp.all(jnp.isfinite(out)))
    # rows of log_softmax exponentiate+sum to ~1
    assert bool(jnp.allclose(jnp.sum(jnp.exp(out), axis=1), 1.0, atol=1e-3))
    # matches pure-f32 reference; loose tolerance since A_hat / XW are streamed in bf16
    ref = gcn_reference(x, edge_index, params)
    assert bool(jnp.max(jnp.abs(out - ref)) < 0.3), float(jnp.max(jnp.abs(out - ref)))
    print("KERNEL_OK")
</pallas_src>

<mosaic_0001>
module attributes {stable_mosaic.version = 11 : i64} {
  func.func private @main(%arg0: i32) attributes {dimension_semantics = [#tpu.dimension_semantics<core_parallel>], iteration_bounds = array<i64: 2>, tpu.core_type = #tpu.core_type<sc_scalar_subcore>, window_params = []} {
    return
  }
}

module attributes {stable_mosaic.version = 11 : i64} {
  func.func private @main(%arg0: i32) attributes {dimension_semantics = [#tpu.dimension_semantics<core_parallel>], iteration_bounds = array<i64: 2>, tpu.core_type = #tpu.core_type<sc_scalar_subcore>, window_params = []} {
    return
  }
}

module attributes {stable_mosaic.version = 11 : i64} {
  func.func @xw_kernel(%arg0: i32, %arg1: memref<256x8xf32, #tpu.memory_space<vmem>>, %arg2: memref<8x128xf32, #tpu.memory_space<vmem>>, %arg3: memref<256x128xbf16, #tpu.memory_space<vmem>>) attributes {dimension_semantics = [#tpu.dimension_semantics<parallel>], iteration_bounds = array<i64: 2>, scalar_prefetch = 0 : i64, scratch_operands = 0 : i64, tpu.core_type = #tpu.core_type<tc>, window_params = [{transform_indices = @transform_0, window_bounds = array<i64: 256, 8>}, {pipeline_mode = #tpu.pipeline_mode<synchronous>, transform_indices = @transform_1, window_bounds = array<i64: 8, 128>}, {transform_indices = @transform_2, window_bounds = array<i64: 256, 128>}]} {
    %c0 = arith.constant 0 : index
    %c0_0 = arith.constant 0 : index
    %0 = vector.load %arg1[%c0, %c0_0] : memref<256x8xf32, #tpu.memory_space<vmem>>, vector<256x8xf32>
    %c0_1 = arith.constant 0 : index
    %c0_2 = arith.constant 0 : index
    %1 = vector.load %arg2[%c0_1, %c0_2] : memref<8x128xf32, #tpu.memory_space<vmem>>, vector<8x128xf32>
    %cst = arith.constant dense<0.000000e+00> : vector<256x128xf32>
    %2 = tpu.matmul %0, %1, %cst {dimension_numbers = #tpu.dot_dimension_numbers<[1], [0], [0], [1], [0, 0, 1, 1], [], []>} : vector<256x8xf32>, vector<8x128xf32>, vector<256x128xf32> -> vector<256x128xf32>
    %3 = arith.truncf %2 : vector<256x128xf32> to vector<256x128xbf16>
    %c0_3 = arith.constant 0 : index
    %c0_4 = arith.constant 0 : index
    %4 = vector.load %arg3[%c0_3, %c0_4] : memref<256x128xbf16, #tpu.memory_space<vmem>>, vector<256x128xbf16>
    tpu.vector_store %arg3[%c0_3, %c0_4], %3 {strides = array<i32>} : memref<256x128xbf16, #tpu.memory_space<vmem>>, vector<256x128xbf16>,
    return
  }
  func.func @transform_0(%arg0: i32) -> (i32, i32) {
    %c0_i32 = arith.constant 0 : i32
    %c0_i32_0 = arith.constant 0 : i32
    return %arg0, %c0_i32 : i32, i32
  }
  func.func @transform_1(%arg0: i32) -> (i32, i32) {
    %c0_i32 = arith.constant 0 : i32
    %c0_i32_0 = arith.constant 0 : i32
    %c0_i32_1 = arith.constant 0 : i32
    return %c0_i32, %c0_i32_0 : i32, i32
  }
  func.func @transform_2(%arg0: i32) -> (i32, i32) {
    %c0_i32 = arith.constant 0 : i32
    %c0_i32_0 = arith.constant 0 : i32
    return %arg0, %c0_i32 : i32, i32
  }
}

module attributes {stable_mosaic.version = 11 : i64} {
  func.func @gcn_layer1_kernel(%arg0: i32, %arg1: i32, %arg2: memref<256x256xbf16, #tpu.memory_space<vmem>>, %arg3: memref<256x128xbf16, #tpu.memory_space<vmem>>, %arg4: memref<1x128xf32, #tpu.memory_space<vmem>>, %arg5: memref<1x128xf32, #tpu.memory_space<vmem>>, %arg6: memref<1x128xf32, #tpu.memory_space<vmem>>, %arg7: memref<128x128xbf16, #tpu.memory_space<vmem>>, %arg8: memref<256x128xbf16, #tpu.memory_space<vmem>>, %arg9: memref<256x128xf32, #tpu.memory_space<vmem>>) attributes {dimension_semantics = [#tpu.dimension_semantics<parallel>, #tpu.dimension_semantics<arbitrary>], iteration_bounds = array<i64: 2, 2>, scalar_prefetch = 0 : i64, scratch_operands = 1 : i64, tpu.core_type = #tpu.core_type<tc>, window_params = [{transform_indices = @transform_0, window_bounds = array<i64: 256, 256>}, {transform_indices = @transform_1, window_bounds = array<i64: 256, 128>}, {pipeline_mode = #tpu.pipeline_mode<synchronous>, transform_indices = @transform_2, window_bounds = array<i64: 1, 128>}, {pipeline_mode = #tpu.pipeline_mode<synchronous>, transform_indices = @transform_3, window_bounds = array<i64: 1, 128>}, {pipeline_mode = #tpu.pipeline_mode<synchronous>, transform_indices = @transform_4, window_bounds = array<i64: 1, 128>}, {pipeline_mode = #tpu.pipeline_mode<synchronous>, transform_indices = @transform_5, window_bounds = array<i64: 128, 128>}, {transform_indices = @transform_6, window_bounds = array<i64: 256, 128>}]} {
    %c0_i32 = arith.constant 0 : i32
    %0 = arith.cmpi eq, %arg1, %c0_i32 : i32
    %1 = arith.extui %0 : i1 to i32
    %c0_i32_0 = arith.constant 0 : i32
    %2 = arith.cmpi ne, %1, %c0_i32_0 : i32
    scf.if %2 {
      %cst_9 = arith.constant 0.000000e+00 : f32
      %12 = vector.broadcast %cst_9 : f32 to vector<256x128xf32>
      %c0_10 = arith.constant 0 : index
      %c0_11 = arith.constant 0 : index
      %13 = vector.load %arg9[%c0_10, %c0_11] : memref<256x128xf32, #tpu.memory_space<vmem>>, vector<256x128xf32>
      tpu.vector_store %arg9[%c0_10, %c0_11], %12 {strides = array<i32>} : memref<256x128xf32, #tpu.memory_space<vmem>>, vector<256x128xf32>,
    } else {
    }
    %c0 = arith.constant 0 : index
    %c0_1 = arith.constant 0 : index
    %3 = vector.load %arg9[%c0, %c0_1] : memref<256x128xf32, #tpu.memory_space<vmem>>, vector<256x128xf32>
    %c0_2 = arith.constant 0 : index
    %c0_3 = arith.constant 0 : index
    %4 = vector.load %arg2[%c0_2, %c0_3] : memref<256x256xbf16, #tpu.memory_space<vmem>>, vector<256x256xbf16>
    %c0_4 = arith.constant 0 : index
    %c0_5 = arith.constant 0 : index
    %5 = vector.load %arg3[%c0_4, %c0_5] : memref<256x128xbf16, #tpu.memory_space<vmem>>, vector<256x128xbf16>
    %cst = arith.constant dense<0.000000e+00> : vector<256x128xf32>
    %6 = tpu.matmul %4, %5, %cst {dimension_numbers = #tpu.dot_dimension_numbers<[1], [0], [0], [1], [0, 0, 1, 1], [], []>} : vector<256x256xbf16>, vector<256x128xbf16>, vector<256x128xf32> -> vector<256x128xf32>
    %7 = arith.addf %3, %6 : vector<256x128xf32>
    %c0_6 = arith.constant 0 : index
    %c0_7 = arith.constant 0 : index
    %8 = vector.load %arg9[%c0_6, %c0_7] : memref<256x128xf32, #tpu.memory_space<vmem>>, vector<256x128xf32>
    tpu.vector_store %arg9[%c0_6, %c0_7], %7 {strides = array<i32>} : memref<256x128xf32, #tpu.memory_space<vmem>>, vector<256x128xf32>,
    %c1_i32 = arith.constant 1 : i32
    %9 = arith.cmpi eq, %arg1, %c1_i32 : i32
    %10 = arith.extui %9 : i1 to i32
    %c0_i32_8 = arith.constant 0 : i32
    %11 = arith.cmpi ne, %10, %c0_i32_8 : i32
    scf.if %11 {
      %c0_9 = arith.constant 0 : index
      %c0_10 = arith.constant 0 : index
      %12 = vector.load %arg9[%c0_9, %c0_10] : memref<256x128xf32, #tpu.memory_space<vmem>>, vector<256x128xf32>
      %c0_11 = arith.constant 0 : index
      %c0_12 = arith.constant 0 : index
      %13 = vector.load %arg4[%c0_11, %c0_12] : memref<1x128xf32, #tpu.memory_space<vmem>>, vector<1x128xf32>
      %14 = vector.broadcast %13 : vector<1x128xf32> to vector<256x128xf32>
      %15 = arith.addf %12, %14 : vector<256x128xf32>
      %c0_13 = arith.constant 0 : index
      %c0_14 = arith.constant 0 : index
      %16 = vector.load %arg5[%c0_13, %c0_14] : memref<1x128xf32, #tpu.memory_space<vmem>>, vector<1x128xf32>
      %c0_15 = arith.constant 0 : index
      %c0_16 = arith.constant 0 : index
      %17 = vector.load %arg6[%c0_15, %c0_16] : memref<1x128xf32, #tpu.memory_space<vmem>>, vector<1x128xf32>
      %18 = tpu.iota {dimensions = array<i32: 1>} : vector<256x128xi32>
      %c32_i32 = arith.constant 32 : i32
      %19 = vector.broadcast %c32_i32 : i32 to vector<256x128xi32>
      %20 = arith.cmpi slt, %18, %19 : vector<256x128xi32>
      %cst_17 = arith.constant 0.000000e+00 : f32
      %21 = vector.broadcast %cst_17 : f32 to vector<256x128xf32>
      %22 = arith.select %20, %15, %21 : vector<256x128xi1>, vector<256x128xf32>
      %cst_18 = arith.constant dense<0.000000e+00> : vector<256xf32>
      %23 = vector.multi_reduction <add>, %22, %cst_18 [1] : vector<256x128xf32> to vector<256xf32>
      %24 = vector.shape_cast %23 : vector<256xf32> to vector<256x1xf32>
      %cst_19 = arith.constant 3.125000e-02 : f32
      %25 = vector.broadcast %cst_19 : f32 to vector<256x1xf32>
      %26 = arith.mulf %24, %25 : vector<256x1xf32>
      %27 = vector.broadcast %26 : vector<256x1xf32> to vector<256x128xf32>
      %28 = arith.subf %15, %27 : vector<256x128xf32>
      %cst_20 = arith.constant 0.000000e+00 : f32
      %29 = vector.broadcast %cst_20 : f32 to vector<256x128xf32>
      %30 = arith.select %20, %28, %29 : vector<256x128xi1>, vector<256x128xf32>
      %31 = arith.mulf %30, %30 : vector<256x128xf32>
      %cst_21 = arith.constant dense<0.000000e+00> : vector<256xf32>
      %32 = vector.multi_reduction <add>, %31, %cst_21 [1] : vector<256x128xf32> to vector<256xf32>
      %33 = vector.shape_cast %32 : vector<256xf32> to vector<256x1xf32>
      %cst_22 = arith.constant 3.125000e-02 : f32
      %34 = vector.broadcast %cst_22 : f32 to vector<256x1xf32>
      %35 = arith.mulf %33, %34 : vector<256x1xf32>
      %cst_23 = arith.constant 9.99999974E-6 : f32
      %36 = vector.broadcast %cst_23 : f32 to vector<256x1xf32>
      %37 = arith.addf %35, %36 : vector<256x1xf32>
      %38 = math.rsqrt %37 : vector<256x1xf32>
      %39 = vector.broadcast %38 : vector<256x1xf32> to vector<256x128xf32>
      %40 = arith.mulf %30, %39 : vector<256x128xf32>
      %41 = vector.broadcast %16 : vector<1x128xf32> to vector<256x128xf32>
      %42 = arith.mulf %40, %41 : vector<256x128xf32>
      %43 = vector.broadcast %17 : vector<1x128xf32> to vector<256x128xf32>
      %44 = arith.addf %42, %43 : vector<256x128xf32>
      %cst_24 = arith.constant 0.000000e+00 : f32
      %45 = vector.broadcast %cst_24 : f32 to vector<256x128xf32>
      %46 = arith.maximumf %44, %45 : vector<256x128xf32>
      %47 = arith.truncf %46 : vector<256x128xf32> to vector<256x128xbf16>
      %c0_25 = arith.constant 0 : index
      %c0_26 = arith.constant 0 : index
      %48 = vector.load %arg7[%c0_25, %c0_26] : memref<128x128xbf16, #tpu.memory_space<vmem>>, vector<128x128xbf16>
      %cst_27 = arith.constant dense<0.000000e+00> : vector<256x128xf32>
      %49 = tpu.matmul %47, %48, %cst_27 {dimension_numbers = #tpu.dot_dimension_numbers<[1], [0], [0], [1], [0, 0, 1, 1], [], []>} : vector<256x128xbf16>, vector<128x128xbf16>, vector<256x128xf32> -> vector<256x128xf32>
      %50 = arith.truncf %49 : vector<256x128xf32> to vector<256x128xbf16>
      %c0_28 = arith.constant 0 : index
      %c0_29 = arith.constant 0 : index
      %51 = vector.load %arg8[%c0_28, %c0_29] : memref<256x128xbf16, #tpu.memory_space<vmem>>, vector<256x128xbf16>
      tpu.vector_store %arg8[%c0_28, %c0_29], %50 {strides = array<i32>} : memref<256x128xbf16, #tpu.memory_space<vmem>>, vector<256x128xbf16>,
    } else {
    }
    return
  }
  func.func @transform_0(%arg0: i32, %arg1: i32) -> (i32, i32) {
    %c0_i32 = arith.constant 0 : i32
    return %arg0, %arg1 : i32, i32
  }
  func.func @transform_1(%arg0: i32, %arg1: i32) -> (i32, i32) {
    %c0_i32 = arith.constant 0 : i32
    %c0_i32_0 = arith.constant 0 : i32
    return %arg1, %c0_i32 : i32, i32
  }
  func.func @transform_2(%arg0: i32, %arg1: i32) -> (i32, i32) {
    %c0_i32 = arith.constant 0 : i32
    %c0_i32_0 = arith.constant 0 : i32
    %c0_i32_1 = arith.constant 0 : i32
    return %c0_i32, %c0_i32_0 : i32, i32
  }
  func.func @transform_3(%arg0: i32, %arg1: i32) -> (i32, i32) {
    %c0_i32 = arith.constant 0 : i32
    %c0_i32_0 = arith.constant 0 : i32
    %c0_i32_1 = arith.constant 0 : i32
    return %c0_i32, %c0_i32_0 : i32, i32
  }
  func.func @transform_4(%arg0: i32, %arg1: i32) -> (i32, i32) {
    %c0_i32 = arith.constant 0 : i32
    %c0_i32_0 = arith.constant 0 : i32
    %c0_i32_1 = arith.constant 0 : i32
    return %c0_i32, %c0_i32_0 : i32, i32
  }
  func.func @transform_5(%arg0: i32, %arg1: i32) -> (i32, i32) {
    %c0_i32 = arith.constant 0 : i32
    %c0_i32_0 = arith.constant 0 : i32
    %c0_i32_1 = arith.constant 0 : i32
    return %c0_i32, %c0_i32_0 : i32, i32
  }
  func.func @transform_6(%arg0: i32, %arg1: i32) -> (i32, i32) {
    %c0_i32 = arith.constant 0 : i32
    %c0_i32_0 = arith.constant 0 : i32
    return %arg0, %c0_i32 : i32, i32
  }
}

module attributes {stable_mosaic.version = 11 : i64} {
  func.func @gcn_layer2_kernel(%arg0: i32, %arg1: i32, %arg2: memref<256x256xbf16, #tpu.memory_space<vmem>>, %arg3: memref<256x128xbf16, #tpu.memory_space<vmem>>, %arg4: memref<1x128xf32, #tpu.memory_space<vmem>>, %arg5: memref<1x128xf32, #tpu.memory_space<vmem>>, %arg6: memref<1x128xf32, #tpu.memory_space<vmem>>, %arg7: memref<256x128xf32, #tpu.memory_space<vmem>>, %arg8: memref<256x128xf32, #tpu.memory_space<vmem>>) attributes {dimension_semantics = [#tpu.dimension_semantics<parallel>, #tpu.dimension_semantics<arbitrary>], iteration_bounds = array<i64: 2, 2>, scalar_prefetch = 0 : i64, scratch_operands = 1 : i64, tpu.core_type = #tpu.core_type<tc>, window_params = [{transform_indices = @transform_0, window_bounds = array<i64: 256, 256>}, {transform_indices = @transform_1, window_bounds = array<i64: 256, 128>}, {pipeline_mode = #tpu.pipeline_mode<synchronous>, transform_indices = @transform_2, window_bounds = array<i64: 1, 128>}, {pipeline_mode = #tpu.pipeline_mode<synchronous>, transform_indices = @transform_3, window_bounds = array<i64: 1, 128>}, {pipeline_mode = #tpu.pipeline_mode<synchronous>, transform_indices = @transform_4, window_bounds = array<i64: 1, 128>}, {transform_indices = @transform_5, window_bounds = array<i64: 256, 128>}]} {
    %c0_i32 = arith.constant 0 : i32
    %0 = arith.cmpi eq, %arg1, %c0_i32 : i32
    %1 = arith.extui %0 : i1 to i32
    %c0_i32_0 = arith.constant 0 : i32
    %2 = arith.cmpi ne, %1, %c0_i32_0 : i32
    scf.if %2 {
      %cst_9 = arith.constant 0.000000e+00 : f32
      %12 = vector.broadcast %cst_9 : f32 to vector<256x128xf32>
      %c0_10 = arith.constant 0 : index
      %c0_11 = arith.constant 0 : index
      %13 = vector.load %arg8[%c0_10, %c0_11] : memref<256x128xf32, #tpu.memory_space<vmem>>, vector<256x128xf32>
      tpu.vector_store %arg8[%c0_10, %c0_11], %12 {strides = array<i32>} : memref<256x128xf32, #tpu.memory_space<vmem>>, vector<256x128xf32>,
    } else {
    }
    %c0 = arith.constant 0 : index
    %c0_1 = arith.constant 0 : index
    %3 = vector.load %arg8[%c0, %c0_1] : memref<256x128xf32, #tpu.memory_space<vmem>>, vector<256x128xf32>
    %c0_2 = arith.constant 0 : index
    %c0_3 = arith.constant 0 : index
    %4 = vector.load %arg2[%c0_2, %c0_3] : memref<256x256xbf16, #tpu.memory_space<vmem>>, vector<256x256xbf16>
    %c0_4 = arith.constant 0 : index
    %c0_5 = arith.constant 0 : index
    %5 = vector.load %arg3[%c0_4, %c0_5] : memref<256x128xbf16, #tpu.memory_space<vmem>>, vector<256x128xbf16>
    %cst = arith.constant dense<0.000000e+00> : vector<256x128xf32>
    %6 = tpu.matmul %4, %5, %cst {dimension_numbers = #tpu.dot_dimension_numbers<[1], [0], [0], [1], [0, 0, 1, 1], [], []>} : vector<256x256xbf16>, vector<256x128xbf16>, vector<256x128xf32> -> vector<256x128xf32>
    %7 = arith.addf %3, %6 : vector<256x128xf32>
    %c0_6 = arith.constant 0 : index
    %c0_7 = arith.constant 0 : index
    %8 = vector.load %arg8[%c0_6, %c0_7] : memref<256x128xf32, #tpu.memory_space<vmem>>, vector<256x128xf32>
    tpu.vector_store %arg8[%c0_6, %c0_7], %7 {strides = array<i32>} : memref<256x128xf32, #tpu.memory_space<vmem>>, vector<256x128xf32>,
    %c1_i32 = arith.constant 1 : i32
    %9 = arith.cmpi eq, %arg1, %c1_i32 : i32
    %10 = arith.extui %9 : i1 to i32
    %c0_i32_8 = arith.constant 0 : i32
    %11 = arith.cmpi ne, %10, %c0_i32_8 : i32
    scf.if %11 {
      %c0_9 = arith.constant 0 : index
      %c0_10 = arith.constant 0 : index
      %12 = vector.load %arg8[%c0_9, %c0_10] : memref<256x128xf32, #tpu.memory_space<vmem>>, vector<256x128xf32>
      %c0_11 = arith.constant 0 : index
      %c0_12 = arith.constant 0 : index
      %13 = vector.load %arg4[%c0_11, %c0_12] : memref<1x128xf32, #tpu.memory_space<vmem>>, vector<1x128xf32>
      %14 = vector.broadcast %13 : vector<1x128xf32> to vector<256x128xf32>
      %15 = arith.addf %12, %14 : vector<256x128xf32>
      %c0_13 = arith.constant 0 : index
      %c0_14 = arith.constant 0 : index
      %16 = vector.load %arg5[%c0_13, %c0_14] : memref<1x128xf32, #tpu.memory_space<vmem>>, vector<1x128xf32>
      %c0_15 = arith.constant 0 : index
      %c0_16 = arith.constant 0 : index
      %17 = vector.load %arg6[%c0_15, %c0_16] : memref<1x128xf32, #tpu.memory_space<vmem>>, vector<1x128xf32>
      %18 = tpu.iota {dimensions = array<i32: 1>} : vector<256x128xi32>
      %c4_i32 = arith.constant 4 : i32
      %19 = vector.broadcast %c4_i32 : i32 to vector<256x128xi32>
      %20 = arith.cmpi slt, %18, %19 : vector<256x128xi32>
      %cst_17 = arith.constant 0.000000e+00 : f32
      %21 = vector.broadcast %cst_17 : f32 to vector<256x128xf32>
      %22 = arith.select %20, %15, %21 : vector<256x128xi1>, vector<256x128xf32>
      %cst_18 = arith.constant dense<0.000000e+00> : vector<256xf32>
      %23 = vector.multi_reduction <add>, %22, %cst_18 [1] : vector<256x128xf32> to vector<256xf32>
      %24 = vector.shape_cast %23 : vector<256xf32> to vector<256x1xf32>
      %cst_19 = arith.constant 2.500000e-01 : f32
      %25 = vector.broadcast %cst_19 : f32 to vector<256x1xf32>
      %26 = arith.mulf %24, %25 : vector<256x1xf32>
      %27 = vector.broadcast %26 : vector<256x1xf32> to vector<256x128xf32>
      %28 = arith.subf %15, %27 : vector<256x128xf32>
      %cst_20 = arith.constant 0.000000e+00 : f32
      %29 = vector.broadcast %cst_20 : f32 to vector<256x128xf32>
      %30 = arith.select %20, %28, %29 : vector<256x128xi1>, vector<256x128xf32>
      %31 = arith.mulf %30, %30 : vector<256x128xf32>
      %cst_21 = arith.constant dense<0.000000e+00> : vector<256xf32>
      %32 = vector.multi_reduction <add>, %31, %cst_21 [1] : vector<256x128xf32> to vector<256xf32>
      %33 = vector.shape_cast %32 : vector<256xf32> to vector<256x1xf32>
      %cst_22 = arith.constant 2.500000e-01 : f32
      %34 = vector.broadcast %cst_22 : f32 to vector<256x1xf32>
      %35 = arith.mulf %33, %34 : vector<256x1xf32>
      %cst_23 = arith.constant 9.99999974E-6 : f32
      %36 = vector.broadcast %cst_23 : f32 to vector<256x1xf32>
      %37 = arith.addf %35, %36 : vector<256x1xf32>
      %38 = math.rsqrt %37 : vector<256x1xf32>
      %39 = vector.broadcast %38 : vector<256x1xf32> to vector<256x128xf32>
      %40 = arith.mulf %30, %39 : vector<256x128xf32>
      %41 = vector.broadcast %16 : vector<1x128xf32> to vector<256x128xf32>
      %42 = arith.mulf %40, %41 : vector<256x128xf32>
      %43 = vector.broadcast %17 : vector<1x128xf32> to vector<256x128xf32>
      %44 = arith.addf %42, %43 : vector<256x128xf32>
      %cst_24 = arith.constant -1.000000e+30 : f32
      %45 = vector.broadcast %cst_24 : f32 to vector<256x128xf32>
      %46 = arith.select %20, %44, %45 : vector<256x128xi1>, vector<256x128xf32>
      %cst_25 = arith.constant dense<0xFF800000> : vector<256xf32>
      %47 = vector.multi_reduction <maximumf>, %46, %cst_25 [1] : vector<256x128xf32> to vector<256xf32>
      %48 = vector.shape_cast %47 : vector<256xf32> to vector<256x1xf32>
      %49 = vector.broadcast %48 : vector<256x1xf32> to vector<256x128xf32>
      %50 = arith.subf %44, %49 : vector<256x128xf32>
      %51 = math.exp %50 : vector<256x128xf32>
      %cst_26 = arith.constant 0.000000e+00 : f32
      %52 = vector.broadcast %cst_26 : f32 to vector<256x128xf32>
      %53 = arith.select %20, %51, %52 : vector<256x128xi1>, vector<256x128xf32>
      %cst_27 = arith.constant dense<0.000000e+00> : vector<256xf32>
      %54 = vector.multi_reduction <add>, %53, %cst_27 [1] : vector<256x128xf32> to vector<256xf32>
      %55 = vector.shape_cast %54 : vector<256xf32> to vector<256x1xf32>
      %56 = math.log %55 : vector<256x1xf32>
      %57 = arith.addf %48, %56 : vector<256x1xf32>
      %58 = vector.broadcast %57 : vector<256x1xf32> to vector<256x128xf32>
      %59 = arith.subf %44, %58 : vector<256x128xf32>
      %cst_28 = arith.constant 0.000000e+00 : f32
      %60 = vector.broadcast %cst_28 : f32 to vector<256x128xf32>
      %61 = arith.select %20, %59, %60 : vector<256x128xi1>, vector<256x128xf32>
      %c0_29 = arith.constant 0 : index
      %c0_30 = arith.constant 0 : index
      %62 = vector.load %arg7[%c0_29, %c0_30] : memref<256x128xf32, #tpu.memory_space<vmem>>, vector<256x128xf32>
      tpu.vector_store %arg7[%c0_29, %c0_30], %61 {strides = array<i32>} : memref<256x128xf32, #tpu.memory_space<vmem>>, vector<256x128xf32>,
    } else {
    }
    return
  }
  func.func @transform_0(%arg0: i32, %arg1: i32) -> (i32, i32) {
    %c0_i32 = arith.constant 0 : i32
    return %arg0, %arg1 : i32, i32
  }
  func.func @transform_1(%arg0: i32, %arg1: i32) -> (i32, i32) {
    %c0_i32 = arith.constant 0 : i32
    %c0_i32_0 = arith.constant 0 : i32
    return %arg1, %c0_i32 : i32, i32
  }
  func.func @transform_2(%arg0: i32, %arg1: i32) -> (i32, i32) {
    %c0_i32 = arith.constant 0 : i32
    %c0_i32_0 = arith.constant 0 : i32
    %c0_i32_1 = arith.constant 0 : i32
    return %c0_i32, %c0_i32_0 : i32, i32
  }
  func.func @transform_3(%arg0: i32, %arg1: i32) -> (i32, i32) {
    %c0_i32 = arith.constant 0 : i32
    %c0_i32_0 = arith.constant 0 : i32
    %c0_i32_1 = arith.constant 0 : i32
    return %c0_i32, %c0_i32_0 : i32, i32
  }
  func.func @transform_4(%arg0: i32, %arg1: i32) -> (i32, i32) {
    %c0_i32 = arith.constant 0 : i32
    %c0_i32_0 = arith.constant 0 : i32
    %c0_i32_1 = arith.constant 0 : i32
    return %c0_i32, %c0_i32_0 : i32, i32
  }
  func.func @transform_5(%arg0: i32, %arg1: i32) -> (i32, i32) {
    %c0_i32 = arith.constant 0 : i32
    %c0_i32_0 = arith.constant 0 : i32
    return %arg0, %c0_i32 : i32, i32
  }
}

</mosaic_0001>

<bundles_post_ra>
// kernel: gcn_forward.3
= control target key start
LH: loop header
LB: loop body
LE: loop exit
PB: predicated region body
PF: predicated region fallthrough
CT: control target
= control target key end

     0   :  { %s1036_s9 = smov 0   ;;  %s1144_s0 = inlined_call_operand.vmem [shape: f32[512,8], index: 0, kind: input, shape index: {}]   ;;  %s1145_s1 = inlined_call_operand.vmem [shape: f32[8,128], index: 1, kind: input, shape index: {}]   ;;  %s1146_s2 = inlined_call_operand.vmem [shape: bf16[512,128], index: 2, kind: output, shape index: {}]  }
   0x1 LB: > { %s718_s10 = sadd.s32 4294967295, %s1019_s9   ;;  %p722_p0 = scmp.ge.s32.totalorder %s1019_s9, 1  ;;  %s1019_s9 = sphi %s1036_s9, %s12_s9  }
   0x2   : > { %p113_p1 = scmp.lt.s32.totalorder %s1019_s9, 3 }
   0x4   : > { %p114_p2 = pnand %p722_p0, %p113_p1 }
   0x5   : > { %s723_s13 = sshll.u32 (!%p114_p2), %s718_s10, 5 }
   0x6   : > { %117 = sbr.rel (%p114_p2) target bundleno = 243 (0xf3), region = 28  ;;  %p136_p3 = scmp.lt.s32.totalorder (!%p114_p2), %s723_s13, 63 }
   0xb   : > { %v179_v0 = vld [vmem:[%s1145_s1] sm:$0xff]  ;;  %s1148_s13 = smov (!%p136_p3, %s723_s13), 63  ;;  %vm180_vm0 = vcmask 64512  }
   0xc   : > { %953 = vmatprep.subr.mxu0 %v179_v0  ;;  %1003 = vmatprep.subr.mxu1 %v179_v0  ;;  %s724_s14 = sshll.u32 %s1148_s13, 3  ;;  %s726_s18 = sshll.u32 %s1148_s13, 2 }
   0xd   : > { %954 = vmatpush3.msra.mxu0 %v179_v0  ;;  %1004 = vmatpush3.msra.mxu1 %v179_v0  ;;  %s1053_s17 = scalar_lea.vmem %s1144_s0, %s724_s14  ;;  %s1123_s21 = scalar_lea.vmem %s1146_s2, %s726_s18 }
   0xe   : > { %v147_v1 = vld [vmem:[%s1053_s17] sm:$0xff]  ;;  %v148_v3 = vld [vmem:[%s1053_s17 + $0x8] sm:$0xff]  ;;  %v149_v5 = vld [vmem:[%s1053_s17 + $0x10] sm:$0xff] }
   0xf   : > { %v163_v2 = vld [vmem:[%s1053_s17 + $0x80] sm:$0xff]  ;;  %955 = vmatprep.mubr.msk.f32.mxu0 %vm180_vm0, %v147_v1  ;;  %v164_v4 = vld [vmem:[%s1053_s17 + $0x88] sm:$0xff]  ;;  %v165_v6 = vld [vmem:[%s1053_s17 + $0x90] sm:$0xff] }
  0x10   : > { %979 = vmatprep.mubr.msk.f32.mxu1 %vm180_vm0, %v163_v2  ;;  %956 = vmatmul.mubr.msk.f32.vlgmr.msra.gmra.mxu0 %vm180_vm0, %v148_v3  ;;  %v150_v7 = vld [vmem:[%s1053_s17 + $0x18] sm:$0xff]  ;;  %v151_v9 = vld [vmem:[%s1053_s17 + $0x20] sm:$0xff]  ;;  %v152_v11 = vld [vmem:[%s1053_s17 + $0x28] sm:$0xff] }
  0x11   : > { %980 = vmatmul.mubr.msk.f32.vlgmr.msra.gmra.mxu1 %vm180_vm0, %v164_v4  ;;  %958 = vmatprep.mubr.msk.f32.mxu0 %vm180_vm0, %v149_v5  ;;  %v166_v8 = vld [vmem:[%s1053_s17 + $0x98] sm:$0xff]  ;;  %v167_v10 = vld [vmem:[%s1053_s17 + $0xa0] sm:$0xff]  ;;  %v168_v12 = vld [vmem:[%s1053_s17 + $0xa8] sm:$0xff] }
  0x12   : > { %982 = vmatprep.mubr.msk.f32.mxu1 %vm180_vm0, %v165_v6  ;;  %v153_v13 = vld [vmem:[%s1053_s17 + $0x30] sm:$0xff]  ;;  %v154_v15 = vld [vmem:[%s1053_s17 + $0x38] sm:$0xff]  ;;  %v155_v17 = vld [vmem:[%s1053_s17 + $0x40] sm:$0xff] }
  0x13   : > { %v169_v14 = vld [vmem:[%s1053_s17 + $0xb0] sm:$0xff]  ;;  %v170_v16 = vld [vmem:[%s1053_s17 + $0xb8] sm:$0xff]  ;;  %v171_v18 = vld [vmem:[%s1053_s17 + $0xc0] sm:$0xff] }
  0x14   : > { %959 = vmatmul.mubr.msk.f32.gmra.mxu0 %vm180_vm0, %v150_v7  ;;  %v156_v19 = vld [vmem:[%s1053_s17 + $0x48] sm:$0xff]  ;;  %v157_v21 = vld [vmem:[%s1053_s17 + $0x50] sm:$0xff]  ;;  %v158_v23 = vld [vmem:[%s1053_s17 + $0x58] sm:$0xff] }
  0x15   : > { %983 = vmatmul.mubr.msk.f32.gmra.mxu1 %vm180_vm0, %v166_v8  ;;  %961 = vmatprep.mubr.msk.f32.mxu0 %vm180_vm0, %v151_v9  ;;  %v172_v20 = vld [vmem:[%s1053_s17 + $0xc8] sm:$0xff]  ;;  %v173_v22 = vld [vmem:[%s1053_s17 + $0xd0] sm:$0xff]  ;;  %v174_v24 = vld [vmem:[%s1053_s17 + $0xd8] sm:$0xff] }
  0x16   : > { %985 = vmatprep.mubr.msk.f32.mxu1 %vm180_vm0, %v167_v10  ;;  %v159_v25 = vld [vmem:[%s1053_s17 + $0x60] sm:$0xff]  ;;  %v160_v27 = vld [vmem:[%s1053_s17 + $0x68] sm:$0xff]  ;;  %v161_v29 = vld [vmem:[%s1053_s17 + $0x70] sm:$0xff] }
  0x17   : > { %v175_v26 = vld [vmem:[%s1053_s17 + $0xe0] sm:$0xff]  ;;  %v176_v28 = vld [vmem:[%s1053_s17 + $0xe8] sm:$0xff]  ;;  %v177_v30 = vld [vmem:[%s1053_s17 + $0xf0] sm:$0xff] }
  0x18   : > { %962 = vmatmul.mubr.msk.f32.gmra.mxu0 %vm180_vm0, %v152_v11  ;;  %v162_v31 = vld [vmem:[%s1053_s17 + $0x78] sm:$0xff] }
  0x19   : > { %986 = vmatmul.mubr.msk.f32.gmra.mxu1 %vm180_vm0, %v168_v12  ;;  %964 = vmatprep.mubr.msk.f32.mxu0 %vm180_vm0, %v153_v13  ;;  %v178_v32 = vld [vmem:[%s1053_s17 + $0xf8] sm:$0xff] }
  0x1a   : > { %988 = vmatprep.mubr.msk.f32.mxu1 %vm180_vm0, %v169_v14 }
  0x1c   : > { %965 = vmatmul.mubr.msk.f32.gmra.mxu0 %vm180_vm0, %v154_v15 }
  0x1d   : > { %989 = vmatmul.mubr.msk.f32.gmra.mxu1 %vm180_vm0, %v170_v16  ;;  %967 = vmatprep.mubr.msk.f32.mxu0 %vm180_vm0, %v155_v17 }
  0x1e   : > { %991 = vmatprep.mubr.msk.f32.mxu1 %vm180_vm0, %v171_v18 }
  0x20   : > { %968 = vmatmul.mubr.msk.f32.gmra.mxu0 %vm180_vm0, %v156_v19 }
  0x21   : > { %992 = vmatmul.mubr.msk.f32.gmra.mxu1 %vm180_vm0, %v172_v20  ;;  %970 = vmatprep.mubr.msk.f32.mxu0 %vm180_vm0, %v157_v21 }
  0x22   : > { %994 = vmatprep.mubr.msk.f32.mxu1 %vm180_vm0, %v173_v22 }
  0x24   : > { %971 = vmatmul.mubr.msk.f32.gmra.mxu0 %vm180_vm0, %v158_v23 }
  0x25   : > { %995 = vmatmul.mubr.msk.f32.gmra.mxu1 %vm180_vm0, %v174_v24  ;;  %973 = vmatprep.mubr.msk.f32.mxu0 %vm180_vm0, %v159_v25 }
  0x26   : > { %997 = vmatprep.mubr.msk.f32.mxu1 %vm180_vm0, %v175_v26 }
  0x28   : > { %974 = vmatmul.mubr.msk.f32.gmra.mxu0 %vm180_vm0, %v160_v27 }
  0x29   : > { %998 = vmatmul.mubr.msk.f32.gmra.mxu1 %vm180_vm0, %v176_v28  ;;  %976 = vmatprep.mubr.msk.f32.mxu0 %vm180_vm0, %v161_v29 }
  0x2a   : > { %1000 = vmatprep.mubr.msk.f32.mxu1 %vm180_vm0, %v177_v30 }
  0x2c   : > { %977 = vmatmul.mubr.msk.f32.gmra.mxu0 %vm180_vm0, %v162_v31 }
  0x2d   : > { %1001 = vmatmul.mubr.msk.f32.gmra.mxu1 %vm180_vm0, %v178_v32 }
  0xd0   : > { %v957_v33 = vpop.f32.mrf.mxu0 }
  0xd1   : > { %v981_v34 = vpop.f32.mrf.mxu1 }
  0xd2   : > { %v343_v35 = vpop.f32.mrf.mxu0 }
  0xd3   : > { %v423_v36 = vpop.f32.mrf.mxu1  ;;  %v828_v37 = vpack.c.bf16 %v957_v33, %v343_v35 }
  0xd4   : > { %v868_v38 = vpack.c.bf16 %v981_v34, %v423_v36  ;;  %v960_v39 = vpop.f32.mrf.mxu0 }
  0xd5   : > { %v984_v40 = vpop.f32.mrf.mxu1  ;;  %829 = vst [vmem:[%s1123_s21] sm:$0xff] %v828_v37  }
  0xd6   : > { %912 = vst [vmem:[%s1123_s21 + $0x40] sm:$0xff] %v868_v38   ;;  %v353_v41 = vpop.f32.mrf.mxu0 }
  0xd7   : > { %v433_v42 = vpop.f32.mrf.mxu1  ;;  %v833_v43 = vpack.c.bf16 %v960_v39, %v353_v41 }
  0xd8   : > { %v873_v44 = vpack.c.bf16 %v984_v40, %v433_v42  ;;  %v963_v45 = vpop.f32.mrf.mxu0 }
  0xd9   : > { %v987_v46 = vpop.f32.mrf.mxu1  ;;  %905 = vst [vmem:[%s1123_s21 + $0x8] sm:$0xff] %v833_v43  }
  0xda   : > { %913 = vst [vmem:[%s1123_s21 + $0x48] sm:$0xff] %v873_v44   ;;  %v363_v47 = vpop.f32.mrf.mxu0 }
  0xdb   : > { %v443_v48 = vpop.f32.mrf.mxu1  ;;  %v838_v49 = vpack.c.bf16 %v963_v45, %v363_v47 }
  0xdc   : > { %v878_v50 = vpack.c.bf16 %v987_v46, %v443_v48  ;;  %v966_v51 = vpop.f32.mrf.mxu0 }
  0xdd   : > { %v990_v52 = vpop.f32.mrf.mxu1  ;;  %906 = vst [vmem:[%s1123_s21 + $0x10] sm:$0xff] %v838_v49  }
  0xde   : > { %914 = vst [vmem:[%s1123_s21 + $0x50] sm:$0xff] %v878_v50   ;;  %v373_v53 = vpop.f32.mrf.mxu0 }
  0xdf   : > { %v453_v54 = vpop.f32.mrf.mxu1  ;;  %v843_v55 = vpack.c.bf16 %v966_v51, %v373_v53 }
  0xe0   : > { %v883_v56 = vpack.c.bf16 %v990_v52, %v453_v54  ;;  %v969_v57 = vpop.f32.mrf.mxu0 }
  0xe1   : > { %v993_v58 = vpop.f32.mrf.mxu1  ;;  %907 = vst [vmem:[%s1123_s21 + $0x18] sm:$0xff] %v843_v55  }
  0xe2   : > { %915 = vst [vmem:[%s1123_s21 + $0x58] sm:$0xff] %v883_v56   ;;  %v383_v59 = vpop.f32.mrf.mxu0 }
  0xe3   : > { %v463_v60 = vpop.f32.mrf.mxu1  ;;  %v848_v61 = vpack.c.bf16 %v969_v57, %v383_v59 }
  0xe4   : > { %v888_v62 = vpack.c.bf16 %v993_v58, %v463_v60  ;;  %v972_v63 = vpop.f32.mrf.mxu0 }
  0xe5   : > { %v996_v0 = vpop.f32.mrf.mxu1  ;;  %908 = vst [vmem:[%s1123_s21 + $0x20] sm:$0xff] %v848_v61  }
  0xe6   : > { %916 = vst [vmem:[%s1123_s21 + $0x60] sm:$0xff] %v888_v62   ;;  %v393_v1 = vpop.f32.mrf.mxu0 }
  0xe7   : > { %v473_v2 = vpop.f32.mrf.mxu1  ;;  %v853_v3 = vpack.c.bf16 %v972_v63, %v393_v1 }
  0xe8   : > { %v893_v4 = vpack.c.bf16 %v996_v0, %v473_v2  ;;  %v975_v5 = vpop.f32.mrf.mxu0 }
  0xe9   : > { %v999_v6 = vpop.f32.mrf.mxu1  ;;  %909 = vst [vmem:[%s1123_s21 + $0x28] sm:$0xff] %v853_v3  }
  0xea   : > { %917 = vst [vmem:[%s1123_s21 + $0x68] sm:$0xff] %v893_v4   ;;  %v403_v7 = vpop.f32.mrf.mxu0 }
  0xeb   : > { %v483_v8 = vpop.f32.mrf.mxu1  ;;  %v858_v9 = vpack.c.bf16 %v975_v5, %v403_v7 }
  0xec   : > { %v898_v10 = vpack.c.bf16 %v999_v6, %v483_v8  ;;  %v978_v11 = vpop.f32.mrf.mxu0 }
  0xed   : > { %v1002_v12 = vpop.f32.mrf.mxu1  ;;  %910 = vst [vmem:[%s1123_s21 + $0x30] sm:$0xff] %v858_v9  }
  0xee   : > { %918 = vst [vmem:[%s1123_s21 + $0x70] sm:$0xff] %v898_v10   ;;  %v413_v13 = vpop.f32.mrf.mxu0 }
  0xef   : > { %v493_v14 = vpop.f32.mrf.mxu1  ;;  %v863_v15 = vpack.c.bf16 %v978_v11, %v413_v13 }
  0xf0   : > { %v903_v16 = vpack.c.bf16 %v1002_v12, %v493_v14 }
  0xf1   : > { %911 = vst [vmem:[%s1123_s21 + $0x38] sm:$0xff] %v863_v15  }
  0xf2   : > { %919 = vst [vmem:[%s1123_s21 + $0x78] sm:$0xff] %v903_v16  }
  0xf3 PF: > { %s12_s9 = sadd.s32 1, %s1019_s9  }
  0xf4   : > { %p9_p4 = scmp.ge.s32.totalorder %s12_s9, 4  }
  0xf6   :  { %11 = sbr.rel (!%p9_p4) target bundleno = 1 (0x1), region = 58 }

// kernel: gcn_forward.4
= control target key start
LH: loop header
LB: loop body
LE: loop exit
PB: predicated region body
PF: predicated region fallthrough
CT: control target
= control target key end

     0   :  { %s2901_s21 = smov 0   ;;  %s2903_s22 = smov 0   ;;  %s3687_s0 = inlined_call_operand.vmem [shape: bf16[512,512], index: 0, kind: input, shape index: {}]   ;;  %s3688_s1 = inlined_call_operand.vmem [shape: bf16[512,128], index: 1, kind: input, shape index: {}]   ;;  %s3689_s2 = inlined_call_operand.vmem [shape: f32[1,128], index: 2, kind: input, shape index: {}]   ;;  %s3690_s3 = inlined_call_operand.vmem [shape: f32[1,128], index: 3, kind: input, shape index: {}]   ;;  %s3691_s4 = inlined_call_operand.vmem [shape: f32[1,128], index: 4, kind: input, shape index: {}]   ;;  %s3692_s5 = inlined_call_operand.vmem [shape: bf16[128,128], index: 5, kind: input, shape index: {}]   ;;  %s3693_s6 = inlined_call_operand.vmem [shape: bf16[512,128], index: 6, kind: output, shape index: {}]  }
   0x1   :  { %s2905_s23 = smov 0   ;;  %s2907_s24 = smov 0  }
   0x2   :  { %s2909_s25 = smov 0   ;;  %s2911_s26 = smov 0  }
   0x3   :  { %s2913_s27 = smov 0  }
   0x4 LB: > { %s25_s28 = sadd.s32 1, %s2855_s25  ;;  %s28_s29 = sadd.s32 1, %s2859_s26  ;;  %s2863_s27 = sphi %s2913_s27, %s16_s27   ;;  %s2859_s26 = sphi %s2911_s26, %s3699_s26   ;;  %s2855_s25 = sphi %s2909_s25, %s3698_s25   ;;  %s2851_s24 = sphi %s2907_s24, %s3697_s24   ;;  %s2847_s23 = sphi %s2905_s23, %s3696_s23   ;;  %s2843_s22 = sphi %s2903_s22, %s3695_s22   ;;  %s2839_s21 = sphi %s2901_s21, %s3694_s21  }
   0x5   : > { %p26_p0 = scmp.ge.s32.totalorder %s25_s28, 2  ;;  %p44_p1 = scmp.ne.s32.totalorder %s2843_s22, %s2839_s21 }
   0x6   : > { %p45_p2 = scmp.eq.s32.totalorder %s2863_s27, 0  ;;  %s37_s9 = sadd.s32 1, %s2843_s22 }
   0x7   : > { %s3701_s28 = smov (%p26_p0, %s25_s28), 0  ;;  %s3703_s29 = smov (!%p26_p0, %s28_s29), %s2859_s26 }
   0x8   : > { %p46_p3 = por %p45_p2, %p44_p1  ;;  %p30_p4 = scmp.ge.s32.totalorder %s3703_s29, 2 }
   0x9   : > { %s33_s30 = ssub.s32 %s2855_s25, %s3701_s28  ;;  %p2165_p6 = scmp.ge.s32.totalorder %s2863_s27, 4 }
   0xa   : > { %s3705_s29 = smov (%p30_p4, %s3703_s29), 0 }
   0xb   : > { %s32_s7 = ssub.s32 %s2859_s26, %s3705_s29  ;;  %218 = sbr.rel (%p2165_p6) target bundleno = 39 (0x27), region = 32 }
   0xc   : > { %s34_s8 = sor.u32 %s33_s30, %s32_s7 }
   0xd   : > { %p35_p5 = scmp.eq.s32.totalorder %s34_s8, 0 }
   0xf   : > { %s2952_s10 = scalar_select %p35_p5, %s2843_s22, %s37_s9  }
  0x10   : > { %221 = sbr.rel (!%p46_p3) target bundleno = 39 (0x27), region = 36  ;;  %s223_s11 = sand.u32 (%p46_p3), 1, %s2843_s22  }
  0x11   : > { %s2168_s12 = sshll.u32 (%p46_p3), %s2855_s25, 1  ;;  %s2166_s13 = sshll.u32 (%p46_p3), %s223_s11, 8 }
  0x12   : > { %s2272_s14 = sshll.u32 (%p46_p3), %s2859_s26, 7  ;;  %s2966_s20 = scalar_lea.vmem (%p46_p3), [#allocation3], %s2166_s13 }
  0x13   : > { %s229_s15 = sadd.s32 (%p46_p3), %s2272_s14, %s2168_s12 }
  0x14   : > { %s2170_s16 = sshll.u32 (%p46_p3), %s229_s15, 2 }
  0x15   : > { %s2961_s19 = scalar_lea.vmem %s3687_s0, %s2170_s16 }
  0x16   : > { %v322_v0 = vld [vmem:[%s2961_s19] sm:$0xff]  ;;  %v324_v1 = vld [vmem:[%s2961_s19 + $0x10] sm:$0xff] }
  0x17   : > { %v326_v2 = vld [vmem:[%s2961_s19 + $0x20] sm:$0xff]  ;;  %323 = vst [vmem:[%s2966_s20] sm:$0xff] %v322_v0  ;;  %325 = vst [vmem:[%s2966_s20 + $0x8] sm:$0xff] %v324_v1  ;;  %v328_v3 = vld [vmem:[%s2961_s19 + $0x30] sm:$0xff] }
  0x18   : > { %327 = vst [vmem:[%s2966_s20 + $0x10] sm:$0xff] %v326_v2  ;;  %v330_v4 = vld [vmem:[%s2961_s19 + $0x40] sm:$0xff]  ;;  %v332_v5 = vld [vmem:[%s2961_s19 + $0x50] sm:$0xff]  ;;  %329 = vst [vmem:[%s2966_s20 + $0x18] sm:$0xff] %v328_v3 }
  0x19   : > { %331 = vst [vmem:[%s2966_s20 + $0x20] sm:$0xff] %v330_v4  ;;  %333 = vst [vmem:[%s2966_s20 + $0x28] sm:$0xff] %v332_v5  ;;  %v334_v6 = vld [vmem:[%s2961_s19 + $0x60] sm:$0xff]  ;;  %v336_v7 = vld [vmem:[%s2961_s19 + $0x70] sm:$0xff] }
  0x1a   : > { %v338_v8 = vld [vmem:[%s2961_s19 + $0x80] sm:$0xff]  ;;  %335 = vst [vmem:[%s2966_s20 + $0x30] sm:$0xff] %v334_v6  ;;  %337 = vst [vmem:[%s2966_s20 + $0x38] sm:$0xff] %v336_v7  ;;  %v340_v9 = vld [vmem:[%s2961_s19 + $0x90] sm:$0xff] }
  0x1b   : > { %339 = vst [vmem:[%s2966_s20 + $0x40] sm:$0xff] %v338_v8  ;;  %v342_v10 = vld [vmem:[%s2961_s19 + $0xa0] sm:$0xff]  ;;  %v344_v11 = vld [vmem:[%s2961_s19 + $0xb0] sm:$0xff]  ;;  %341 = vst [vmem:[%s2966_s20 + $0x48] sm:$0xff] %v340_v9 }
  0x1c   : > { %343 = vst [vmem:[%s2966_s20 + $0x50] sm:$0xff] %v342_v10  ;;  %345 = vst [vmem:[%s2966_s20 + $0x58] sm:$0xff] %v344_v11  ;;  %v346_v12 = vld [vmem:[%s2961_s19 + $0xc0] sm:$0xff]  ;;  %v348_v13 = vld [vmem:[%s2961_s19 + $0xd0] sm:$0xff] }
  0x1d   : > { %v350_v14 = vld [vmem:[%s2961_s19 + $0xe0] sm:$0xff]  ;;  %347 = vst [vmem:[%s2966_s20 + $0x60] sm:$0xff] %v346_v12  ;;  %349 = vst [vmem:[%s2966_s20 + $0x68] sm:$0xff] %v348_v13  ;;  %v352_v15 = vld [vmem:[%s2961_s19 + $0xf0] sm:$0xff] }
  0x1e   : > { %351 = vst [vmem:[%s2966_s20 + $0x70] sm:$0xff] %v350_v14  ;;  %v354_v16 = vld [vmem:[%s2961_s19 + $0x100] sm:$0xff]  ;;  %v356_v17 = vld [vmem:[%s2961_s19 + $0x110] sm:$0xff]  ;;  %353 = vst [vmem:[%s2966_s20 + $0x78] sm:$0xff] %v352_v15 }
  0x1f   : > { %355 = vst [vmem:[%s2966_s20 + $0x80] sm:$0xff] %v354_v16  ;;  %357 = vst [vmem:[%s2966_s20 + $0x88] sm:$0xff] %v356_v17  ;;  %v358_v18 = vld [vmem:[%s2961_s19 + $0x120] sm:$0xff]  ;;  %v360_v19 = vld [vmem:[%s2961_s19 + $0x130] sm:$0xff] }
  0x20   : > { %v362_v20 = vld [vmem:[%s2961_s19 + $0x140] sm:$0xff]  ;;  %359 = vst [vmem:[%s2966_s20 + $0x90] sm:$0xff] %v358_v18  ;;  %361 = vst [vmem:[%s2966_s20 + $0x98] sm:$0xff] %v360_v19  ;;  %v364_v21 = vld [vmem:[%s2961_s19 + $0x150] sm:$0xff] }
  0x21   : > { %363 = vst [vmem:[%s2966_s20 + $0xa0] sm:$0xff] %v362_v20  ;;  %v366_v22 = vld [vmem:[%s2961_s19 + $0x160] sm:$0xff]  ;;  %v368_v23 = vld [vmem:[%s2961_s19 + $0x170] sm:$0xff]  ;;  %365 = vst [vmem:[%s2966_s20 + $0xa8] sm:$0xff] %v364_v21 }
  0x22   : > { %367 = vst [vmem:[%s2966_s20 + $0xb0] sm:$0xff] %v366_v22  ;;  %369 = vst [vmem:[%s2966_s20 + $0xb8] sm:$0xff] %v368_v23  ;;  %v370_v24 = vld [vmem:[%s2961_s19 + $0x180] sm:$0xff]  ;;  %v372_v25 = vld [vmem:[%s2961_s19 + $0x190] sm:$0xff] }
  0x23   : > { %v374_v26 = vld [vmem:[%s2961_s19 + $0x1a0] sm:$0xff]  ;;  %371 = vst [vmem:[%s2966_s20 + $0xc0] sm:$0xff] %v370_v24  ;;  %373 = vst [vmem:[%s2966_s20 + $0xc8] sm:$0xff] %v372_v25  ;;  %v376_v27 = vld [vmem:[%s2961_s19 + $0x1b0] sm:$0xff] }
  0x24   : > { %375 = vst [vmem:[%s2966_s20 + $0xd0] sm:$0xff] %v374_v26  ;;  %v378_v28 = vld [vmem:[%s2961_s19 + $0x1c0] sm:$0xff]  ;;  %v380_v29 = vld [vmem:[%s2961_s19 + $0x1d0] sm:$0xff]  ;;  %377 = vst [vmem:[%s2966_s20 + $0xd8] sm:$0xff] %v376_v27 }
  0x25   : > { %379 = vst [vmem:[%s2966_s20 + $0xe0] sm:$0xff] %v378_v28  ;;  %381 = vst [vmem:[%s2966_s20 + $0xe8] sm:$0xff] %v380_v29  ;;  %v382_v30 = vld [vmem:[%s2961_s19 + $0x1e0] sm:$0xff]  ;;  %v384_v31 = vld [vmem:[%s2961_s19 + $0x1f0] sm:$0xff] }
  0x26   : > { %383 = vst [vmem:[%s2966_s20 + $0xf0] sm:$0xff] %v382_v30  ;;  %385 = vst [vmem:[%s2966_s20 + $0xf8] sm:$0xff] %v384_v31 }
  0x27 PF: > { %p2171_p7 = scmp.ge.s32.totalorder %s2863_s27, 1  ;;  %p399_p8 = scmp.lt.s32.totalorder %s2863_s27, 5 }
  0x29   : > { %p400_p9 = pnand %p2171_p7, %p399_p8 }
  0x2a   : > { %s406_s30 = sand.u32 (!%p400_p9), 1, %s2839_s21   ;;  %s2173_s7 = sshll.u32 (!%p400_p9), %s2847_s23, 5 }
  0x2b   : > { %403 = sbr.rel (%p400_p9) target bundleno = 949 (0x3b5), region = 78  ;;  %s2172_s8 = sshll.u32 (!%p400_p9), %s406_s30, 8 }
  0x2c   : > { %p443_p10 = scmp.lt.s32.totalorder (!%p400_p9), %s2173_s7, 63  ;;  %s2175_s9 = sshll.u32 (!%p400_p9), %s2851_s24, 5 }
  0x2d   : > { %p449_p11 = scmp.lt.s32.totalorder (!%p400_p9), %s2175_s9, 63  ;;  %s3044_s21 = scalar_lea.vmem (!%p400_p9), [#allocation3], %s2172_s8 }
  0x2e   : > { %p2177_p12 = scmp.ne.s32.totalorder (!%p400_p9), %s2847_s23, 0 }
  0x30   : > { %s3707_s7 = smov (!%p443_p10, %s2173_s7), 63  ;;  %s3709_s9 = smov (!%p449_p11, %s2175_s9), 63 }
  0x31   : > { %s2174_s11 = sshll.u32 %s3707_s7, 2  ;;  %s2176_s15 = sshll.u32 %s3709_s9, 2 }
  0x32   : > { %s3037_s14 = scalar_lea.vmem %s3688_s1, %s2174_s11  ;;  %s3042_s18 = scalar_lea.vmem %s3693_s6, %s2176_s15 }
  0x33   : > { %458 = sbr.rel (%p2177_p12) target bundleno = 73 (0x49), region = 86 }
  0x38   : > { %v2865_v32 = vmov 0.0  }
  0x39   : > { %459 = vst [vmem:[#allocation2 + $0xb0] sm:$0xff] %v2865_v32  ;;  %460 = vst [vmem:[#allocation2] sm:$0xff] %v2865_v32 }
  0x3a   : > { %461 = vst [vmem:[#allocation2 + $0xd8] sm:$0xff] %v2865_v32  ;;  %462 = vst [vmem:[#allocation2 + $0x18] sm:$0xff] %v2865_v32 }
  0x3b   : > { %463 = vst [vmem:[#allocation2 + $0x50] sm:$0xff] %v2865_v32  ;;  %464 = vst [vmem:[#allocation2 + $0x68] sm:$0xff] %v2865_v32 }
  0x3c   : > { %465 = vst [vmem:[#allocation2 + $0x30] sm:$0xff] %v2865_v32  ;;  %466 = vst [vmem:[#allocation2 + $0x48] sm:$0xff] %v2865_v32 }
  0x3d   : > { %467 = vst [vmem:[#allocation2 + $0x80] sm:$0xff] %v2865_v32  ;;  %468 = vst [vmem:[#allocation2 + $0x88] sm:$0xff] %v2865_v32 }
  0x3e   : > { %469 = vst [vmem:[#allocation2 + $0xe8] sm:$0xff] %v2865_v32  ;;  %470 = vst [vmem:[#allocation2 + $0xb8] sm:$0xff] %v2865_v32 }
  0x3f   : > { %471 = vst [vmem:[#allocation2 + $0x60] sm:$0xff] %v2865_v32  ;;  %472 = vst [vmem:[#allocation2 + $0xf0] sm:$0xff] %v2865_v32 }
  0x40   : > { %473 = vst [vmem:[#allocation2 + $0x8] sm:$0xff] %v2865_v32  ;;  %474 = vst [vmem:[#allocation2 + $0x78] sm:$0xff] %v2865_v32 }
  0x41   : > { %475 = vst [vmem:[#allocation2 + $0x38] sm:$0xff] %v2865_v32  ;;  %476 = vst [vmem:[#allocation2 + $0x58] sm:$0xff] %v2865_v32 }
  0x42   : > { %477 = vst [vmem:[#allocation2 + $0x40] sm:$0xff] %v2865_v32  ;;  %478 = vst [vmem:[#allocation2 + $0xc8] sm:$0xff] %v2865_v32 }
  0x43   : > { %479 = vst [vmem:[#allocation2 + $0xe0] sm:$0xff] %v2865_v32  ;;  %480 = vst [vmem:[#allocation2 + $0x90] sm:$0xff] %v2865_v32 }
  0x44   : > { %481 = vst [vmem:[#allocation2 + $0x70] sm:$0xff] %v2865_v32  ;;  %482 = vst [vmem:[#allocation2 + $0xc0] sm:$0xff] %v2865_v32 }
  0x45   : > { %483 = vst [vmem:[#allocation2 + $0xa8] sm:$0xff] %v2865_v32  ;;  %484 = vst [vmem:[#allocation2 + $0xd0] sm:$0xff] %v2865_v32 }
  0x46   : > { %485 = vst [vmem:[#allocation2 + $0x10] sm:$0xff] %v2865_v32  ;;  %486 = vst [vmem:[#allocation2 + $0x28] sm:$0xff] %v2865_v32 }
  0x47   : > { %487 = vst [vmem:[#allocation2 + $0xa0] sm:$0xff] %v2865_v32  ;;  %488 = vst [vmem:[#allocation2 + $0xf8] sm:$0xff] %v2865_v32 }
  0x48   : > { %489 = vst [vmem:[#allocation2 + $0x20] sm:$0xff] %v2865_v32  ;;  %490 = vst [vmem:[#allocation2 + $0x98] sm:$0xff] %v2865_v32 }
  0x49 PF: > { %v2673_v33 = vld [vmem:[%s3037_s14 + $0x78] sm:$0xff]   ;;  %v2675_v35 = vld [vmem:[%s3037_s14 + $0x70] sm:$0xff]   ;;  %v2677_v37 = vld [vmem:[%s3037_s14 + $0x68] sm:$0xff]   ;;  %p2226_p13 = scmp.ne.s32.totalorder %s2847_s23, 1 }
  0x4a   : > { %v2674_v34 = vld [vmem:[%s3037_s14 + $0x38] sm:$0xff]   ;;  %2400 = vmatprep.subr.bf16.mxu0 %v2673_v33  ;;  %2584 = vmatprep.subr.bf16.mxu1 %v2673_v33  ;;  %v2676_v36 = vld [vmem:[%s3037_s14 + $0x30] sm:$0xff]   ;;  %v2678_v38 = vld [vmem:[%s3037_s14 + $0x28] sm:$0xff]  }
  0x4b   : > { %2401 = vmatpush3.bf16.msra.mxu0 %v2674_v34  ;;  %2592 = vmatpush3.bf16.msra.mxu1 %v2674_v34  ;;  %v2679_v39 = vld [vmem:[%s3037_s14 + $0x60] sm:$0xff]   ;;  %v2681_v41 = vld [vmem:[%s3037_s14 + $0x58] sm:$0xff]   ;;  %v2683_v43 = vld [vmem:[%s3037_s14 + $0x50] sm:$0xff]  }
  0x4c   : > { %2402 = vmatprep.subr.bf16.mxu0 %v2675_v35  ;;  %2585 = vmatprep.subr.bf16.mxu1 %v2675_v35  ;;  %v2680_v40 = vld [vmem:[%s3037_s14 + $0x20] sm:$0xff]   ;;  %v2682_v42 = vld [vmem:[%s3037_s14 + $0x18] sm:$0xff]   ;;  %v2684_v46 = vld [vmem:[%s3037_s14 + $0x10] sm:$0xff]  }
  0x4d   : > { %v2691_v44 = vld [vmem:[%s3044_s21 + $0x4] ss:$8 sps:$4 sm:$0xff]   ;;  %v2689_v51 = vld [vmem:[%s3044_s21] ss:$8 sps:$4 sm:$0xff]   ;;  %v2695_v53 = vld [vmem:[%s3044_s21 + $0x14] ss:$8 sps:$4 sm:$0xff]  }
  0x4e   : > { %v2694_v45 = vld [vmem:[%s3044_s21 + $0x84] ss:$8 sps:$4 sm:$0xff]   ;;  %875 = vmatprep.mubr.bf16.mxu0 %v2691_v44  ;;  %v2692_v52 = vld [vmem:[%s3044_s21 + $0x80] ss:$8 sps:$4 sm:$0xff]   ;;  %v2697_v54 = vld [vmem:[%s3044_s21 + $0x94] ss:$8 sps:$4 sm:$0xff]  }
  0x4f   : > { %2403 = vmatpush3.bf16.msra.mxu0 %v2676_v36  ;;  %2593 = vmatpush3.bf16.msra.mxu1 %v2676_v36  ;;  %v2685_v47 = vld [vmem:[%s3037_s14 + $0x48] sm:$0xff]   ;;  %v2687_v49 = vld [vmem:[%s3037_s14 + $0x40] sm:$0xff]   ;;  %v2699_v55 = vld [vmem:[%s3044_s21 + $0x10] ss:$8 sps:$4 sm:$0xff]  }
  0x50   : > { %2404 = vmatprep.subr.bf16.mxu0 %v2677_v37  ;;  %2586 = vmatprep.subr.bf16.mxu1 %v2677_v37  ;;  %v2686_v48 = vld [vmem:[%s3037_s14 + $0x8] sm:$0xff]   ;;  %v2688_v50 = vld [vmem:[%s3037_s14] sm:$0xff]   ;;  %v2700_v56 = vld [vmem:[%s3044_s21 + $0x90] ss:$8 sps:$4 sm:$0xff]  }
  0x51   : > { %939 = vmatprep.mubr.bf16.mxu1 %v2694_v45  ;;  %v2701_v57 = vld [vmem:[%s3044_s21 + $0x24] ss:$8 sps:$4 sm:$0xff]   ;;  %v2705_v59 = vld [vmem:[%s3044_s21 + $0x20] ss:$8 sps:$4 sm:$0xff]   ;;  %v2707_v61 = vld [vmem:[%s3044_s21 + $0x34] ss:$8 sps:$4 sm:$0xff]  }
  0x52   : > { %v2703_v58 = vld [vmem:[%s3044_s21 + $0xa4] ss:$8 sps:$4 sm:$0xff]   ;;  %v2706_v60 = vld [vmem:[%s3044_s21 + $0xa0] ss:$8 sps:$4 sm:$0xff]   ;;  %v2709_v62 = vld [vmem:[%s3044_s21 + $0xb4] ss:$8 sps:$4 sm:$0xff]  }
  0x53   : > { %2405 = vmatpush3.bf16.msra.mxu0 %v2678_v38  ;;  %2594 = vmatpush3.bf16.msra.mxu1 %v2678_v38  ;;  %v2711_v63 = vld [vmem:[%s3044_s21 + $0x30] ss:$8 sps:$4 sm:$0xff]   ;;  %v2713_v1 = vld [vmem:[%s3044_s21 + $0x44] ss:$8 sps:$4 sm:$0xff]   ;;  %v2717_v3 = vld [vmem:[%s3044_s21 + $0x40] ss:$8 sps:$4 sm:$0xff]  }
  0x54   : > { %2406 = vmatprep.subr.bf16.mxu0 %v2679_v39  ;;  %2587 = vmatprep.subr.bf16.mxu1 %v2679_v39  ;;  %v2712_v0 = vld [vmem:[%s3044_s21 + $0xb0] ss:$8 sps:$4 sm:$0xff]   ;;  %v2715_v2 = vld [vmem:[%s3044_s21 + $0xc4] ss:$8 sps:$4 sm:$0xff]   ;;  %v2718_v4 = vld [vmem:[%s3044_s21 + $0xc0] ss:$8 sps:$4 sm:$0xff]  }
  0x55   : > { %v2719_v5 = vld [vmem:[%s3044_s21 + $0x54] ss:$8 sps:$4 sm:$0xff]   ;;  %v2723_v7 = vld [vmem:[%s3044_s21 + $0x50] ss:$8 sps:$4 sm:$0xff]   ;;  %v2725_v9 = vld [vmem:[%s3044_s21 + $0x64] ss:$8 sps:$4 sm:$0xff]  }
  0x56   : > { %v2721_v6 = vld [vmem:[%s3044_s21 + $0xd4] ss:$8 sps:$4 sm:$0xff]   ;;  %v2724_v8 = vld [vmem:[%s3044_s21 + $0xd0] ss:$8 sps:$4 sm:$0xff]   ;;  %v2727_v10 = vld [vmem:[%s3044_s21 + $0xe4] ss:$8 sps:$4 sm:$0xff]  }
  0x57   : > { %2407 = vmatpush3.bf16.msra.mxu0 %v2680_v40  ;;  %2595 = vmatpush3.bf16.msra.mxu1 %v2680_v40  ;;  %v2729_v11 = vld [vmem:[%s3044_s21 + $0x60] ss:$8 sps:$4 sm:$0xff]   ;;  %v2731_v13 = vld [vmem:[%s3044_s21 + $0x74] ss:$8 sps:$4 sm:$0xff]   ;;  %v2735_v15 = vld [vmem:[%s3044_s21 + $0x70] ss:$8 sps:$4 sm:$0xff]  }
  0x58   : > { %2408 = vmatprep.subr.bf16.mxu0 %v2681_v41  ;;  %2588 = vmatprep.subr.bf16.mxu1 %v2681_v41  ;;  %v2730_v12 = vld [vmem:[%s3044_s21 + $0xe0] ss:$8 sps:$4 sm:$0xff]   ;;  %v2733_v14 = vld [vmem:[%s3044_s21 + $0xf4] ss:$8 sps:$4 sm:$0xff]   ;;  %v2736_v16 = vld [vmem:[%s3044_s21 + $0xf0] ss:$8 sps:$4 sm:$0xff]  }
  0x59   : > { %v491_v19 = vld [vmem:[#allocation2 + $0xb0] sm:$0xff]  ;;  %v507_v21 = vld [vmem:[#allocation2 + $0x38] sm:$0xff]  ;;  %v492_v29 = vld [vmem:[#allocation2] sm:$0xff] }
  0x5a   : > { %v508_v31 = vld [vmem:[#allocation2 + $0x58] sm:$0xff]  ;;  %v509_v41 = vld [vmem:[#allocation2 + $0x40] sm:$0xff] }
  0x5b   : > { %2409 = vmatpush3.bf16.msra.mxu0 %v2682_v42  ;;  %2596 = vmatpush3.bf16.msra.mxu1 %v2682_v42  ;;  %v493_v39 = vld [vmem:[#allocation2 + $0xd8] sm:$0xff] }
  0x5c   : > { %2410 = vmatprep.subr.bf16.mxu0 %v2683_v43  ;;  %2589 = vmatprep.subr.bf16.mxu1 %v2683_v43 }
  0x5f   : > { %2411 = vmatpush3.bf16.msra.mxu0 %v2684_v46  ;;  %2597 = vmatpush3.bf16.msra.mxu1 %v2684_v46 }
  0x60   : > { %2412 = vmatprep.subr.bf16.mxu0 %v2685_v47  ;;  %2590 = vmatprep.subr.bf16.mxu1 %v2685_v47 }
  0x63   : > { %2413 = vmatpush3.bf16.msra.mxu0 %v2686_v48  ;;  %2598 = vmatpush3.bf16.msra.mxu1 %v2686_v48 }
  0x64   : > { %2414 = vmatprep.subr.bf16.mxu0 %v2687_v49  ;;  %2591 = vmatprep.subr.bf16.mxu1 %v2687_v49  ;;  %v494_v49 = vld [vmem:[#allocation2 + $0x18] sm:$0xff] }
  0x67   : > { %2415 = vmatpush3.bf16.msra.mxu0 %v2688_v50  ;;  %2599 = vmatpush3.bf16.msra.mxu1 %v2688_v50 }
  0x6a   : > { %876 = vmatmul.mubr.bf16.vlgmr.msra.gmra.mxu0 %v2689_v51  ;;  %940 = vmatmul.mubr.bf16.vlgmr.msra.gmra.mxu1 %v2692_v52  ;;  %v510_v51 = vld [vmem:[#allocation2 + $0xc8] sm:$0xff] }
  0x6b   : > { %883 = vmatprep.mubr.bf16.mxu0 %v2695_v53  ;;  %947 = vmatprep.mubr.bf16.mxu1 %v2697_v54 }
  0x72   : > { %884 = vmatmul.mubr.bf16.gmra.mxu0 %v2699_v55  ;;  %948 = vmatmul.mubr.bf16.gmra.mxu1 %v2700_v56 }
  0x73   : > { %891 = vmatprep.mubr.bf16.mxu0 %v2701_v57  ;;  %955 = vmatprep.mubr.bf16.mxu1 %v2703_v58 }
  0x7a   : > { %892 = vmatmul.mubr.bf16.gmra.mxu0 %v2705_v59  ;;  %956 = vmatmul.mubr.bf16.gmra.mxu1 %v2706_v60  ;;  %v495_v59 = vld [vmem:[#allocation2 + $0x50] sm:$0xff] }
  0x7b   : > { %899 = vmatprep.mubr.bf16.mxu0 %v2707_v61  ;;  %963 = vmatprep.mubr.bf16.mxu1 %v2709_v62  ;;  %v511_v61 = vld [vmem:[#allocation2 + $0xe0] sm:$0xff] }
  0x82   : > { %900 = vmatmul.mubr.bf16.gmra.mxu0 %v2711_v63  ;;  %964 = vmatmul.mubr.bf16.gmra.mxu1 %v2712_v0 }
  0x83   : > { %907 = vmatprep.mubr.bf16.mxu0 %v2713_v1  ;;  %971 = vmatprep.mubr.bf16.mxu1 %v2715_v2 }
  0x8a   : > { %908 = vmatmul.mubr.bf16.gmra.mxu0 %v2717_v3  ;;  %972 = vmatmul.mubr.bf16.gmra.mxu1 %v2718_v4 }
  0x8b   : > { %915 = vmatprep.mubr.bf16.mxu0 %v2719_v5  ;;  %979 = vmatprep.mubr.bf16.mxu1 %v2721_v6  ;;  %v496_v5 = vld [vmem:[#allocation2 + $0x68] sm:$0xff] }
  0x92   : > { %916 = vmatmul.mubr.bf16.gmra.mxu0 %v2723_v7  ;;  %980 = vmatmul.mubr.bf16.gmra.mxu1 %v2724_v8  ;;  %v512_v7 = vld [vmem:[#allocation2 + $0x90] sm:$0xff] }
  0x93   : > { %923 = vmatprep.mubr.bf16.mxu0 %v2725_v9  ;;  %987 = vmatprep.mubr.bf16.mxu1 %v2727_v10 }
  0x9a   : > { %924 = vmatmul.mubr.bf16.gmra.mxu0 %v2729_v11  ;;  %988 = vmatmul.mubr.bf16.gmra.mxu1 %v2730_v12 }
  0x9b   : > { %931 = vmatprep.mubr.bf16.mxu0 %v2731_v13  ;;  %995 = vmatprep.mubr.bf16.mxu1 %v2733_v14 }
  0xa2   : > { %932 = vmatmul.mubr.bf16.gmra.mxu0 %v2735_v15  ;;  %996 = vmatmul.mubr.bf16.gmra.mxu1 %v2736_v16  ;;  %v497_v15 = vld [vmem:[#allocation2 + $0x30] sm:$0xff] }
 0x12a   : > { %v2416_v17 = vpop.f32.mrf.mxu0  ;;  %v2464_v18 = vpop.f32.mrf.mxu1 }
 0x12c   : > { %v2417_v20 = vpop.f32.mrf.mxu0  ;;  %v2465_v22 = vpop.f32.mrf.mxu1 }
 0x12d   : > { %v2418_v23 = vadd.f32 %v2417_v20, %v2416_v17  ;;  %v2466_v24 = vadd.f32 %v2465_v22, %v2464_v18  ;;  %v513_v17 = vld [vmem:[#allocation2 + $0x70] sm:$0xff] }
 0x12e   : > { %v2419_v25 = vpop.f32.mrf.mxu0  ;;  %v2467_v26 = vpop.f32.mrf.mxu1 }
 0x12f   : > { %v1004_v27 = vadd.f32 %v2418_v23, %v491_v19  ;;  %v1020_v28 = vadd.f32 %v2466_v24, %v507_v21 }
 0x130   : > { %v2420_v30 = vpop.f32.mrf.mxu0  ;;  %v2468_v32 = vpop.f32.mrf.mxu1 }
 0x131   : > { %1036 = vst [vmem:[#allocation2 + $0xb0] sm:$0xff] %v1004_v27  ;;  %1052 = vst [vmem:[#allocation2 + $0x38] sm:$0xff] %v1020_v28  ;;  %v2421_v33 = vadd.f32 %v2420_v30, %v2419_v25  ;;  %v2469_v34 = vadd.f32 %v2468_v32, %v2467_v26  ;;  %v498_v25 = vld [vmem:[#allocation2 + $0x48] sm:$0xff]  ;;  %v514_v27 = vld [vmem:[#allocation2 + $0xc0] sm:$0xff] }
 0x132   : > { %v2422_v35 = vpop.f32.mrf.mxu0  ;;  %v2470_v36 = vpop.f32.mrf.mxu1 }
 0x133   : > { %v1005_v37 = vadd.f32 %v2421_v33, %v492_v29  ;;  %v1021_v38 = vadd.f32 %v2469_v34, %v508_v31 }
 0x134   : > { %v2423_v40 = vpop.f32.mrf.mxu0  ;;  %v2471_v42 = vpop.f32.mrf.mxu1 }
 0x135   : > { %1037 = vst [vmem:[#allocation2] sm:$0xff] %v1005_v37  ;;  %1053 = vst [vmem:[#allocation2 + $0x58] sm:$0xff] %v1021_v38  ;;  %v2424_v43 = vadd.f32 %v2423_v40, %v2422_v35  ;;  %v2472_v44 = vadd.f32 %v2471_v42, %v2470_v36  ;;  %v499_v35 = vld [vmem:[#allocation2 + $0x80] sm:$0xff]  ;;  %v515_v37 = vld [vmem:[#allocation2 + $0xa8] sm:$0xff] }
 0x136   : > { %v2425_v45 = vpop.f32.mrf.mxu0  ;;  %v2473_v46 = vpop.f32.mrf.mxu1 }
 0x137   : > { %v1006_v47 = vadd.f32 %v2424_v43, %v493_v39  ;;  %v1022_v48 = vadd.f32 %v2472_v44, %v509_v41 }
 0x138   : > { %v2426_v50 = vpop.f32.mrf.mxu0  ;;  %v2474_v52 = vpop.f32.mrf.mxu1 }
 0x139   : > { %1038 = vst [vmem:[#allocation2 + $0xd8] sm:$0xff] %v1006_v47  ;;  %1054 = vst [vmem:[#allocation2 + $0x40] sm:$0xff] %v1022_v48  ;;  %v2427_v53 = vadd.f32 %v2426_v50, %v2425_v45  ;;  %v2475_v54 = vadd.f32 %v2474_v52, %v2473_v46  ;;  %v500_v45 = vld [vmem:[#allocation2 + $0x88] sm:$0xff]  ;;  %v516_v47 = vld [vmem:[#allocation2 + $0xd0] sm:$0xff] }
 0x13a   : > { %v2428_v55 = vpop.f32.mrf.mxu0  ;;  %v2476_v56 = vpop.f32.mrf.mxu1 }
 0x13b   : > { %v1007_v57 = vadd.f32 %v2427_v53, %v494_v49  ;;  %v1023_v58 = vadd.f32 %v2475_v54, %v510_v51 }
 0x13c   : > { %v2429_v60 = vpop.f32.mrf.mxu0  ;;  %v2477_v62 = vpop.f32.mrf.mxu1 }
 0x13d   : > { %1039 = vst [vmem:[#allocation2 + $0x18] sm:$0xff] %v1007_v57  ;;  %1055 = vst [vmem:[#allocation2 + $0xc8] sm:$0xff] %v1023_v58  ;;  %v2430_v63 = vadd.f32 %v2429_v60, %v2428_v55  ;;  %v2478_v0 = vadd.f32 %v2477_v62, %v2476_v56  ;;  %v501_v55 = vld [vmem:[#allocation2 + $0xe8] sm:$0xff]  ;;  %v517_v57 = vld [vmem:[#allocation2 + $0x10] sm:$0xff] }
 0x13e   : > { %v2431_v1 = vpop.f32.mrf.mxu0  ;;  %v2479_v2 = vpop.f32.mrf.mxu1 }
 0x13f   : > { %v1008_v3 = vadd.f32 %v2430_v63, %v495_v59  ;;  %v1024_v4 = vadd.f32 %v2478_v0, %v511_v61 }
 0x140   : > { %v2432_v6 = vpop.f32.mrf.mxu0  ;;  %v2480_v8 = vpop.f32.mrf.mxu1 }
 0x141   : > { %1040 = vst [vmem:[#allocation2 + $0x50] sm:$0xff] %v1008_v3  ;;  %1056 = vst [vmem:[#allocation2 + $0xe0] sm:$0xff] %v1024_v4  ;;  %v2433_v9 = vadd.f32 %v2432_v6, %v2431_v1  ;;  %v2481_v10 = vadd.f32 %v2480_v8, %v2479_v2  ;;  %v502_v1 = vld [vmem:[#allocation2 + $0xb8] sm:$0xff]  ;;  %v518_v3 = vld [vmem:[#allocation2 + $0x28] sm:$0xff] }
 0x142   : > { %v2434_v11 = vpop.f32.mrf.mxu0  ;;  %v2482_v12 = vpop.f32.mrf.mxu1 }
 0x143   : > { %v1009_v13 = vadd.f32 %v2433_v9, %v496_v5  ;;  %v1025_v14 = vadd.f32 %v2481_v10, %v512_v7 }
 0x144   : > { %v2435_v16 = vpop.f32.mrf.mxu0  ;;  %v2483_v18 = vpop.f32.mrf.mxu1 }
 0x145   : > { %1041 = vst [vmem:[#allocation2 + $0x68] sm:$0xff] %v1009_v13  ;;  %1057 = vst [vmem:[#allocation2 + $0x90] sm:$0xff] %v1025_v14  ;;  %v2436_v19 = vadd.f32 %v2435_v16, %v2434_v11  ;;  %v2484_v20 = vadd.f32 %v2483_v18, %v2482_v12  ;;  %v503_v11 = vld [vmem:[#allocation2 + $0x60] sm:$0xff] }
 0x146   : > { %v2437_v21 = vpop.f32.mrf.mxu0  ;;  %v2485_v22 = vpop.f32.mrf.mxu1  ;;  %v519_v13 = vld [vmem:[#allocation2 + $0xa0] sm:$0xff] }
 0x147   : > { %v1010_v23 = vadd.f32 %v2436_v19, %v497_v15  ;;  %v1026_v24 = vadd.f32 %v2484_v20, %v513_v17 }
 0x148   : > { %v2438_v26 = vpop.f32.mrf.mxu0  ;;  %v2486_v28 = vpop.f32.mrf.mxu1 }
 0x149   : > { %1042 = vst [vmem:[#allocation2 + $0x30] sm:$0xff] %v1010_v23  ;;  %1058 = vst [vmem:[#allocation2 + $0x70] sm:$0xff] %v1026_v24  ;;  %v2439_v29 = vadd.f32 %v2438_v26, %v2437_v21  ;;  %v2487_v30 = vadd.f32 %v2486_v28, %v2485_v22  ;;  %v504_v21 = vld [vmem:[#allocation2 + $0xf0] sm:$0xff]  ;;  %v520_v23 = vld [vmem:[#allocation2 + $0xf8] sm:$0xff] }
 0x14a   : > { %v2440_v31 = vpop.f32.mrf.mxu0  ;;  %v2488_v32 = vpop.f32.mrf.mxu1 }
 0x14b   : > { %v1011_v33 = vadd.f32 %v2439_v29, %v498_v25  ;;  %v1027_v34 = vadd.f32 %v2487_v30, %v514_v27 }
 0x14c   : > { %v2441_v36 = vpop.f32.mrf.mxu0  ;;  %v2489_v38 = vpop.f32.mrf.mxu1 }
 0x14d   : > { %1043 = vst [vmem:[#allocation2 + $0x48] sm:$0xff] %v1011_v33  ;;  %1059 = vst [vmem:[#allocation2 + $0xc0] sm:$0xff] %v1027_v34  ;;  %v2442_v39 = vadd.f32 %v2441_v36, %v2440_v31  ;;  %v2490_v40 = vadd.f32 %v2489_v38, %v2488_v32  ;;  %v505_v31 = vld [vmem:[#allocation2 + $0x8] sm:$0xff]  ;;  %v521_v33 = vld [vmem:[#allocation2 + $0x20] sm:$0xff] }
 0x14e   : > { %v2443_v41 = vpop.f32.mrf.mxu0  ;;  %v2491_v42 = vpop.f32.mrf.mxu1 }
 0x14f   : > { %v1012_v43 = vadd.f32 %v2442_v39, %v499_v35  ;;  %v1028_v44 = vadd.f32 %v2490_v40, %v515_v37 }
 0x150   : > { %v2444_v46 = vpop.f32.mrf.mxu0  ;;  %v2492_v48 = vpop.f32.mrf.mxu1 }
 0x151   : > { %1044 = vst [vmem:[#allocation2 + $0x80] sm:$0xff] %v1012_v43  ;;  %1060 = vst [vmem:[#allocation2 + $0xa8] sm:$0xff] %v1028_v44  ;;  %v2445_v49 = vadd.f32 %v2444_v46, %v2443_v41  ;;  %v2493_v50 = vadd.f32 %v2492_v48, %v2491_v42  ;;  %v506_v41 = vld [vmem:[#allocation2 + $0x78] sm:$0xff] }
 0x152   : > { %v2446_v51 = vpop.f32.mrf.mxu0  ;;  %v2494_v52 = vpop.f32.mrf.mxu1  ;;  %v522_v43 = vld [vmem:[#allocation2 + $0x98] sm:$0xff] }
 0x153   : > { %v1013_v53 = vadd.f32 %v2445_v49, %v500_v45  ;;  %v1029_v54 = vadd.f32 %v2493_v50, %v516_v47 }
 0x154   : > { %v2447_v56 = vpop.f32.mrf.mxu0  ;;  %v2495_v58 = vpop.f32.mrf.mxu1 }
 0x155   : > { %1045 = vst [vmem:[#allocation2 + $0x88] sm:$0xff] %v1013_v53  ;;  %1061 = vst [vmem:[#allocation2 + $0xd0] sm:$0xff] %v1029_v54  ;;  %v2448_v59 = vadd.f32 %v2447_v56, %v2446_v51  ;;  %v2496_v60 = vadd.f32 %v2495_v58, %v2494_v52 }
 0x156   : > { %v2449_v61 = vpop.f32.mrf.mxu0  ;;  %v2497_v62 = vpop.f32.mrf.mxu1 }
 0x157   : > { %v1014_v63 = vadd.f32 %v2448_v59, %v501_v55  ;;  %v1030_v0 = vadd.f32 %v2496_v60, %v517_v57 }
 0x158   : > { %v2450_v2 = vpop.f32.mrf.mxu0  ;;  %v2498_v4 = vpop.f32.mrf.mxu1 }
 0x159   : > { %1046 = vst [vmem:[#allocation2 + $0xe8] sm:$0xff] %v1014_v63  ;;  %1062 = vst [vmem:[#allocation2 + $0x10] sm:$0xff] %v1030_v0  ;;  %v2451_v5 = vadd.f32 %v2450_v2, %v2449_v61  ;;  %v2499_v6 = vadd.f32 %v2498_v4, %v2497_v62 }
 0x15a   : > { %v2452_v7 = vpop.f32.mrf.mxu0  ;;  %v2500_v8 = vpop.f32.mrf.mxu1 }
 0x15b   : > { %v1015_v9 = vadd.f32 %v2451_v5, %v502_v1  ;;  %v1031_v10 = vadd.f32 %v2499_v6, %v518_v3 }
 0x15c   : > { %v2453_v12 = vpop.f32.mrf.mxu0  ;;  %v2501_v14 = vpop.f32.mrf.mxu1 }
 0x15d   : > { %1047 = vst [vmem:[#allocation2 + $0xb8] sm:$0xff] %v1015_v9  ;;  %1063 = vst [vmem:[#allocation2 + $0x28] sm:$0xff] %v1031_v10  ;;  %v2454_v15 = vadd.f32 %v2453_v12, %v2452_v7  ;;  %v2502_v16 = vadd.f32 %v2501_v14, %v2500_v8 }
 0x15e   : > { %v2455_v17 = vpop.f32.mrf.mxu0  ;;  %v2503_v18 = vpop.f32.mrf.mxu1 }
 0x15f   : > { %v1016_v19 = vadd.f32 %v2454_v15, %v503_v11  ;;  %v1032_v20 = vadd.f32 %v2502_v16, %v519_v13 }
 0x160   : > { %v2456_v22 = vpop.f32.mrf.mxu0  ;;  %v2504_v24 = vpop.f32.mrf.mxu1 }
 0x161   : > { %1048 = vst [vmem:[#allocation2 + $0x60] sm:$0xff] %v1016_v19  ;;  %1064 = vst [vmem:[#allocation2 + $0xa0] sm:$0xff] %v1032_v20  ;;  %v2457_v25 = vadd.f32 %v2456_v22, %v2455_v17  ;;  %v2505_v26 = vadd.f32 %v2504_v24, %v2503_v18 }
 0x162   : > { %v2458_v27 = vpop.f32.mrf.mxu0  ;;  %v2506_v28 = vpop.f32.mrf.mxu1 }
 0x163   : > { %v1017_v29 = vadd.f32 %v2457_v25, %v504_v21  ;;  %v1033_v30 = vadd.f32 %v2505_v26, %v520_v23 }
 0x164   : > { %v2459_v32 = vpop.f32.mrf.mxu0  ;;  %v2507_v34 = vpop.f32.mrf.mxu1 }
 0x165   : > { %1049 = vst [vmem:[#allocation2 + $0xf0] sm:$0xff] %v1017_v29  ;;  %1065 = vst [vmem:[#allocation2 + $0xf8] sm:$0xff] %v1033_v30  ;;  %v2460_v35 = vadd.f32 %v2459_v32, %v2458_v27  ;;  %v2508_v36 = vadd.f32 %v2507_v34, %v2506_v28 }
 0x166   : > { %v2461_v37 = vpop.f32.mrf.mxu0  ;;  %v2509_v38 = vpop.f32.mrf.mxu1 }
 0x167   : > { %v1018_v39 = vadd.f32 %v2460_v35, %v505_v31  ;;  %v1034_v40 = vadd.f32 %v2508_v36, %v521_v33 }
 0x168   : > { %v2462_v42 = vpop.f32.mrf.mxu0  ;;  %v2510_v44 = vpop.f32.mrf.mxu1 }
 0x169   : > { %1050 = vst [vmem:[#allocation2 + $0x8] sm:$0xff] %v1018_v39  ;;  %1066 = vst [vmem:[#allocation2 + $0x20] sm:$0xff] %v1034_v40  ;;  %v2463_v45 = vadd.f32 %v2462_v42, %v2461_v37  ;;  %v2511_v46 = vadd.f32 %v2510_v44, %v2509_v38  ;;  %1071 = sbr.rel (%p2226_p13) target bundleno = 949 (0x3b5), region = 90 }
 0x16b   : > { %v1019_v47 = vadd.f32 %v2463_v45, %v506_v41  ;;  %v1035_v48 = vadd.f32 %v2511_v46, %v522_v43 }
 0x16d   : > { %1051 = vst [vmem:[#allocation2 + $0x78] sm:$0xff] %v1019_v47  ;;  %1067 = vst [vmem:[#allocation2 + $0x98] sm:$0xff] %v1035_v48 }
 0x16e   : > { %v1072_v49 = vld [vmem:[#allocation2 + $0xb0] sm:$0xff]  ;;  %v3099_v50 = vld [vmem:[%s3689_s2] ss:$0 sm:$0xff]  ;;  %v1145_v51 = vlaneseq  ;;  %v1088_v52 = vld [vmem:[#allocation2 + $0x38] sm:$0xff] }
 0x16f   : > { %v3102_v53 = vadd.f32 %v3099_v50, %v1072_v49  ;;  %v3105_v54 = vadd.f32 %v3099_v50, %v1088_v52  ;;  %v1073_v55 = vld [vmem:[#allocation2] sm:$0xff]  ;;  %v1089_v56 = vld [vmem:[#allocation2 + $0x58] sm:$0xff]  ;;  %v1091_v5 = vld [vmem:[#allocation2 + $0xc8] sm:$0xff] }
 0x170   : > { %v3107_v57 = vand.u32 127, %v1145_v51  ;;  %v3110_v58 = vadd.f32 %v3099_v50, %v1073_v55  ;;  %v3113_v59 = vadd.f32 %v3099_v50, %v1089_v56  ;;  %v1074_v60 = vld [vmem:[#allocation2 + $0xd8] sm:$0xff]  ;;  %v1090_v4 = vld [vmem:[#allocation2 + $0x40] sm:$0xff]  ;;  %v3144_v9 = vadd.f32 %v3099_v50, %v1091_v5  ;;  %v1076_v10 = vld [vmem:[#allocation2 + $0x50] sm:$0xff] }
 0x171   : > { %v1075_v61 = vld [vmem:[#allocation2 + $0x18] sm:$0xff]  ;;  %v3129_v2 = vadd.f32 %v3099_v50, %v1074_v60  ;;  %v3141_v8 = vadd.f32 %v3099_v50, %v1090_v4  ;;  %v1077_v11 = vld [vmem:[#allocation2 + $0x68] sm:$0xff]  ;;  %v3147_v12 = vadd.f32 %v3099_v50, %v1076_v10  ;;  %v1092_v16 = vld [vmem:[#allocation2 + $0xe0] sm:$0xff] }
 0x172   : > { %vm1147_vm0 = vcmp.lt.s32.totalorder %v3107_v57, 32  ;;  %v3132_v3 = vadd.f32 %v3099_v50, %v1075_v61  ;;  %v3150_v13 = vadd.f32 %v3099_v50, %v1077_v11  ;;  %v1093_v17 = vld [vmem:[#allocation2 + $0x90] sm:$0xff]  ;;  %v3165_v20 = vadd.f32 %v3099_v50, %v1092_v16  ;;  %v1079_v23 = vld [vmem:[#allocation2 + $0x48] sm:$0xff]  ;;  %v1095_v29 = vld [vmem:[#allocation2 + $0xc0] sm:$0xff] }
 0x173   : > { %v1148_v62 = vsel %vm1147_vm0, %v3102_v53, 0.0  ;;  %v1164_v63 = vsel %vm1147_vm0, %v3105_v54, 0.0  ;;  %v1149_v0 = vsel %vm1147_vm0, %v3110_v58, 0.0  ;;  %v1165_v1 = vsel %vm1147_vm0, %v3113_v59, 0.0  ;;  %v1078_v22 = vld [vmem:[#allocation2 + $0x30] sm:$0xff]  ;;  %v1080_v34 = vld [vmem:[#allocation2 + $0x80] sm:$0xff] }
 0x174   : > { %1180 = vadd.xlane.f32.xlu0 %v1148_v62  ;;  %1212 = vadd.xlane.f32.xlu1 %v1164_v63  ;;  %v1150_v6 = vsel %vm1147_vm0, %v3129_v2, 0.0  ;;  %v1151_v7 = vsel %vm1147_vm0, %v3132_v3, 0.0  ;;  %v1166_v14 = vsel %vm1147_vm0, %v3141_v8, 0.0  ;;  %v1167_v15 = vsel %vm1147_vm0, %v3144_v9, 0.0  ;;  %v1094_v28 = vld [vmem:[#allocation2 + $0x70] sm:$0xff]  ;;  %v1081_v35 = vld [vmem:[#allocation2 + $0x88] sm:$0xff] }
 0x175   : > { %v1152_v18 = vsel %vm1147_vm0, %v3147_v12, 0.0  ;;  %v1153_v19 = vsel %vm1147_vm0, %v3150_v13, 0.0  ;;  %v3168_v21 = vadd.f32 %v3099_v50, %v1093_v17  ;;  %v1168_v24 = vsel %vm1147_vm0, %v3165_v20, 0.0  ;;  %v1096_v40 = vld [vmem:[#allocation2 + $0xa8] sm:$0xff]  ;;  %v1097_v41 = vld [vmem:[#allocation2 + $0xd0] sm:$0xff]  ;;  %v1083_v47 = vld [vmem:[#allocation2 + $0xb8] sm:$0xff] }
 0x176   : > { %v3177_v26 = vadd.f32 %v3099_v50, %v1078_v22  ;;  %v3180_v27 = vadd.f32 %v3099_v50, %v1079_v23  ;;  %v3189_v32 = vadd.f32 %v3099_v50, %v1094_v28  ;;  %v3192_v33 = vadd.f32 %v3099_v50, %v1095_v29  ;;  %v1082_v46 = vld [vmem:[#allocation2 + $0xe8] sm:$0xff]  ;;  %v1098_v55 = vld [vmem:[#allocation2 + $0x10] sm:$0xff]  ;;  %v1100_v10 = vld [vmem:[#allocation2 + $0xa0] sm:$0xff] }
 0x177   : > { %v1169_v25 = vsel %vm1147_vm0, %v3168_v21, 0.0  ;;  %v3201_v38 = vadd.f32 %v3099_v50, %v1080_v34  ;;  %v3204_v39 = vadd.f32 %v3099_v50, %v1081_v35  ;;  %v3213_v44 = vadd.f32 %v3099_v50, %v1096_v40  ;;  %v1099_v56 = vld [vmem:[#allocation2 + $0x28] sm:$0xff]  ;;  %v1101_v11 = vld [vmem:[#allocation2 + $0xf8] sm:$0xff]  ;;  %v1102_v28 = vld [vmem:[#allocation2 + $0x20] sm:$0xff] }
 0x178   : > { %1182 = vadd.xlane.f32.xlu0 %v1149_v0  ;;  %1214 = vadd.xlane.f32.xlu1 %v1165_v1  ;;  %v1154_v30 = vsel %vm1147_vm0, %v3177_v26, 0.0  ;;  %v1155_v31 = vsel %vm1147_vm0, %v3180_v27, 0.0  ;;  %v1170_v36 = vsel %vm1147_vm0, %v3189_v32, 0.0  ;;  %v1171_v37 = vsel %vm1147_vm0, %v3192_v33, 0.0  ;;  %v1084_v0 = vld [vmem:[#allocation2 + $0x60] sm:$0xff]  ;;  %v1085_v1 = vld [vmem:[#allocation2 + $0xf0] sm:$0xff] }
 0x179   : > { %v1156_v42 = vsel %vm1147_vm0, %v3201_v38, 0.0  ;;  %v1157_v43 = vsel %vm1147_vm0, %v3204_v39, 0.0  ;;  %v3216_v45 = vadd.f32 %v3099_v50, %v1097_v41  ;;  %v1172_v48 = vsel %vm1147_vm0, %v3213_v44, 0.0  ;;  %v1103_v29 = vld [vmem:[#allocation2 + $0x98] sm:$0xff] }
 0x17a   : > { %v3225_v51 = vadd.f32 %v3099_v50, %v1082_v46  ;;  %v3228_v52 = vadd.f32 %v3099_v50, %v1083_v47  ;;  %v3237_v62 = vadd.f32 %v3099_v50, %v1098_v55  ;;  %v3240_v63 = vadd.f32 %v3099_v50, %v1099_v56 }
 0x17b   : > { %v1173_v49 = vsel %vm1147_vm0, %v3216_v45, 0.0  ;;  %v3261_v16 = vadd.f32 %v3099_v50, %v1100_v10  ;;  %v3264_v17 = vadd.f32 %v3099_v50, %v1101_v11  ;;  %v3285_v34 = vadd.f32 %v3099_v50, %v1102_v28 }
 0x17c   : > { %1184 = vadd.xlane.f32.xlu0 %v1150_v6  ;;  %1186 = vadd.xlane.f32.xlu1 %v1151_v7  ;;  %v1158_v60 = vsel %vm1147_vm0, %v3225_v51, 0.0  ;;  %v1159_v61 = vsel %vm1147_vm0, %v3228_v52, 0.0  ;;  %v1174_v4 = vsel %vm1147_vm0, %v3237_v62, 0.0  ;;  %v1175_v5 = vsel %vm1147_vm0, %v3240_v63, 0.0 }
 0x17d   : > { %v3249_v6 = vadd.f32 %v3099_v50, %v1084_v0  ;;  %v3252_v7 = vadd.f32 %v3099_v50, %v1085_v1  ;;  %v1176_v22 = vsel %vm1147_vm0, %v3261_v16, 0.0  ;;  %v1177_v23 = vsel %vm1147_vm0, %v3264_v17, 0.0 }
 0x17e   : > { %v3288_v35 = vadd.f32 %v3099_v50, %v1103_v29 }
 0x180   : > { %1216 = vadd.xlane.f32.xlu0 %v1166_v14  ;;  %1218 = vadd.xlane.f32.xlu1 %v1167_v15  ;;  %v1160_v14 = vsel %vm1147_vm0, %v3249_v6, 0.0  ;;  %v1161_v15 = vsel %vm1147_vm0, %v3252_v7, 0.0 }
 0x184   : > { %1188 = vadd.xlane.f32.xlu0 %v1152_v18  ;;  %1190 = vadd.xlane.f32.xlu1 %v1153_v19  ;;  %v1086_v18 = vld [vmem:[#allocation2 + $0x8] sm:$0xff]  ;;  %v1087_v19 = vld [vmem:[#allocation2 + $0x78] sm:$0xff] }
 0x188   : > { %1220 = vadd.xlane.f32.xlu0 %v1168_v24  ;;  %1222 = vadd.xlane.f32.xlu1 %v1169_v25  ;;  %v3273_v24 = vadd.f32 %v3099_v50, %v1086_v18  ;;  %v3276_v25 = vadd.f32 %v3099_v50, %v1087_v19 }
 0x18c   : > { %1192 = vadd.xlane.f32.xlu0 %v1154_v30  ;;  %1194 = vadd.xlane.f32.xlu1 %v1155_v31  ;;  %v1162_v30 = vsel %vm1147_vm0, %v3273_v24, 0.0  ;;  %v1163_v31 = vsel %vm1147_vm0, %v3276_v25, 0.0 }
 0x190   : > { %1224 = vadd.xlane.f32.xlu0 %v1170_v36  ;;  %1226 = vadd.xlane.f32.xlu1 %v1171_v37  ;;  %v1178_v36 = vsel %vm1147_vm0, %v3285_v34, 0.0  ;;  %v1179_v37 = vsel %vm1147_vm0, %v3288_v35, 0.0 }
 0x194   : > { %1196 = vadd.xlane.f32.xlu0 %v1156_v42  ;;  %1198 = vadd.xlane.f32.xlu1 %v1157_v43 }
 0x198   : > { %1228 = vadd.xlane.f32.xlu0 %v1172_v48  ;;  %1230 = vadd.xlane.f32.xlu1 %v1173_v49 }
 0x19c   : > { %1200 = vadd.xlane.f32.xlu0 %v1158_v60  ;;  %1202 = vadd.xlane.f32.xlu1 %v1159_v61 }
 0x1a0   : > { %1232 = vadd.xlane.f32.xlu0 %v1174_v4  ;;  %1234 = vadd.xlane.f32.xlu1 %v1175_v5 }
 0x1a4   : > { %1204 = vadd.xlane.f32.xlu0 %v1160_v14  ;;  %1206 = vadd.xlane.f32.xlu1 %v1161_v15 }
 0x1a8   : > { %1236 = vadd.xlane.f32.xlu0 %v1176_v22  ;;  %1238 = vadd.xlane.f32.xlu1 %v1177_v23 }
 0x1ac   : > { %1208 = vadd.xlane.f32.xlu0 %v1162_v30  ;;  %1210 = vadd.xlane.f32.xlu1 %v1163_v31 }
 0x1b0   : > { %1240 = vadd.xlane.f32.xlu0 %v1178_v36  ;;  %1242 = vadd.xlane.f32.xlu1 %v1179_v37 }
 0x1fd   : > { %v1181_v40 = vpop.xlane.xlu0 %1180  ;;  %v1213_v41 = vpop.xlane.xlu1 %1212 }
 0x1fe   : > { %v1244_v42 = vmul.f32 0.03125, %v1181_v40  ;;  %v1260_v43 = vmul.f32 0.03125, %v1213_v41 }
 0x200   : > { %v1276_v46 = vsub.f32 %v3102_v53, %v1244_v42  ;;  %v1292_v50 = vsub.f32 %v3105_v54, %v1260_v43 }
 0x201   : > { %v1183_v47 = vpop.xlane.xlu0 %1182  ;;  %v1215_v48 = vpop.xlane.xlu1 %1214 }
 0x202   : > { %v1245_v49 = vmul.f32 0.03125, %v1183_v47  ;;  %v1261_v55 = vmul.f32 0.03125, %v1215_v48  ;;  %v3300_v56 = vsel %vm1147_vm0, %v1276_v46, 0.0  ;;  %v3304_v60 = vsel %vm1147_vm0, %v1292_v50, 0.0 }
 0x203   : > { %v1340_v61 = vmul.f32 %v3300_v56, %v3300_v56  ;;  %v1356_v4 = vmul.f32 %v3304_v60, %v3304_v60 }
 0x204   : > { %v1277_v0 = vsub.f32 %v3110_v58, %v1245_v49  ;;  %v1293_v53 = vsub.f32 %v3113_v59, %v1261_v55 }
 0x205   : > { %1372 = vadd.xlane.f32.xlu0 %v1340_v61  ;;  %v1185_v54 = vpop.xlane.xlu0 %1184  ;;  %v1187_v1 = vpop.xlane.xlu1 %1186 }
 0x206   : > { %v1246_v5 = vmul.f32 0.03125, %v1185_v54  ;;  %v1247_v10 = vmul.f32 0.03125, %v1187_v1  ;;  %v3314_v11 = vsel %vm1147_vm0, %v1277_v0, 0.0  ;;  %v3318_v14 = vsel %vm1147_vm0, %v1293_v53, 0.0 }
 0x207   : > { %v1341_v58 = vmul.f32 %v3314_v11, %v3314_v11  ;;  %v1357_v22 = vmul.f32 %v3318_v14, %v3318_v14 }
 0x208   : > { %v1278_v59 = vsub.f32 %v3129_v2, %v1246_v5  ;;  %v1279_v15 = vsub.f32 %v3132_v3, %v1247_v10 }
 0x209   : > { %1404 = vadd.xlane.f32.xlu0 %v1356_v4  ;;  %1374 = vadd.xlane.f32.xlu1 %v1341_v58  ;;  %v1217_v18 = vpop.xlane.xlu0 %1216  ;;  %v1219_v19 = vpop.xlane.xlu1 %1218 }
 0x20a   : > { %v1262_v23 = vmul.f32 0.03125, %v1217_v18  ;;  %v1263_v28 = vmul.f32 0.03125, %v1219_v19  ;;  %v3328_v29 = vsel %vm1147_vm0, %v1278_v59, 0.0  ;;  %v3332_v30 = vsel %vm1147_vm0, %v1279_v15, 0.0 }
 0x20b   : > { %v1342_v2 = vmul.f32 %v3328_v29, %v3328_v29  ;;  %v1343_v40 = vmul.f32 %v3332_v30, %v3332_v30 }
 0x20c   : > { %v1294_v3 = vsub.f32 %v3141_v8, %v1262_v23  ;;  %v1295_v31 = vsub.f32 %v3144_v9, %v1263_v28 }
 0x20d   : > { %1406 = vadd.xlane.f32.xlu1 %v1357_v22  ;;  %1376 = vadd.xlane.f32.xlu0 %v1342_v2  ;;  %v1189_v36 = vpop.xlane.xlu0 %1188  ;;  %v1191_v37 = vpop.xlane.xlu1 %1190 }
 0x20e   : > { %v1248_v41 = vmul.f32 0.03125, %v1189_v36  ;;  %v1249_v42 = vmul.f32 0.03125, %v1191_v37  ;;  %v3342_v43 = vsel %vm1147_vm0, %v1294_v3, 0.0  ;;  %v3346_v46 = vsel %vm1147_vm0, %v1295_v31, 0.0 }
 0x20f   : > { %v1358_v8 = vmul.f32 %v3342_v43, %v3342_v43  ;;  %v1359_v49 = vmul.f32 %v3346_v46, %v3346_v46 }
 0x210   : > { %v1280_v9 = vsub.f32 %v3147_v12, %v1248_v41  ;;  %v1281_v50 = vsub.f32 %v3150_v13, %v1249_v42 }
 0x211   : > { %1378 = vadd.xlane.f32.xlu1 %v1343_v40  ;;  %1408 = vadd.xlane.f32.xlu0 %v1358_v8  ;;  %v1221_v47 = vpop.xlane.xlu0 %1220  ;;  %v1223_v48 = vpop.xlane.xlu1 %1222 }
 0x212   : > { %v1264_v55 = vmul.f32 0.03125, %v1221_v47  ;;  %v1265_v61 = vmul.f32 0.03125, %v1223_v48  ;;  %v3356_v0 = vsel %vm1147_vm0, %v1280_v9, 0.0  ;;  %v3360_v53 = vsel %vm1147_vm0, %v1281_v50, 0.0 }
 0x213   : > { %v1344_v12 = vmul.f32 %v3356_v0, %v3356_v0  ;;  %v1345_v5 = vmul.f32 %v3360_v53, %v3360_v53 }
 0x214   : > { %v1296_v13 = vsub.f32 %v3165_v20, %v1264_v55  ;;  %v1297_v54 = vsub.f32 %v3168_v21, %v1265_v61  ;;  %v2737_v20 = vld [vmem:[%s3692_s5 + $0x38] sm:$0xff]  }
 0x215   : > { %1410 = vadd.xlane.f32.xlu1 %v1359_v49  ;;  %1380 = vadd.xlane.f32.xlu0 %v1344_v12  ;;  %v1193_v1 = vpop.xlane.xlu0 %1192  ;;  %v1195_v4 = vpop.xlane.xlu1 %1194 }
 0x216   : > { %v1250_v10 = vmul.f32 0.03125, %v1193_v1  ;;  %v1251_v58 = vmul.f32 0.03125, %v1195_v4  ;;  %v3370_v59 = vsel %vm1147_vm0, %v1296_v13, 0.0  ;;  %v3374_v15 = vsel %vm1147_vm0, %v1297_v54, 0.0  ;;  %2536 = vmatprep.subr.bf16.mxu0 %v2737_v20  ;;  %2600 = vmatprep.subr.bf16.mxu1 %v2737_v20 }
 0x217   : > { %v1360_v21 = vmul.f32 %v3370_v59, %v3370_v59  ;;  %v1361_v28 = vmul.f32 %v3374_v15, %v3374_v15  ;;  %2537 = vmatpush3.bf16.msra.mxu0 %v2737_v20  ;;  %2608 = vmatpush3.bf16.msra.mxu1 %v2737_v20 }
 0x218   : > { %v1282_v18 = vsub.f32 %v3177_v26, %v1250_v10  ;;  %v1283_v19 = vsub.f32 %v3180_v27, %v1251_v58  ;;  %v2738_v27 = vld [vmem:[%s3692_s5 + $0x30] sm:$0xff]  }
 0x219   : > { %1382 = vadd.xlane.f32.xlu1 %v1345_v5  ;;  %1412 = vadd.xlane.f32.xlu0 %v1360_v21  ;;  %v1225_v22 = vpop.xlane.xlu0 %1224  ;;  %v1227_v23 = vpop.xlane.xlu1 %1226 }
 0x21a   : > { %v1266_v2 = vmul.f32 0.03125, %v1225_v22  ;;  %v1267_v3 = vmul.f32 0.03125, %v1227_v23  ;;  %v3387_v31 = vsel %vm1147_vm0, %v1282_v18, 0.0  ;;  %v3391_v26 = vsel %vm1147_vm0, %v1283_v19, 0.0  ;;  %2538 = vmatprep.subr.bf16.mxu0 %v2738_v27  ;;  %2601 = vmatprep.subr.bf16.mxu1 %v2738_v27 }
 0x21b   : > { %v1346_v36 = vmul.f32 %v3387_v31, %v3387_v31  ;;  %v1347_v8 = vmul.f32 %v3391_v26, %v3391_v26  ;;  %2539 = vmatpush3.bf16.msra.mxu0 %v2738_v27  ;;  %2609 = vmatpush3.bf16.msra.mxu1 %v2738_v27 }
 0x21c   : > { %v1298_v37 = vsub.f32 %v3189_v32, %v1266_v2  ;;  %v1299_v40 = vsub.f32 %v3192_v33, %v1267_v3  ;;  %v2739_v33 = vld [vmem:[%s3692_s5 + $0x28] sm:$0xff]  }
 0x21d   : > { %1414 = vadd.xlane.f32.xlu1 %v1361_v28  ;;  %1384 = vadd.xlane.f32.xlu0 %v1346_v36  ;;  %v1197_v41 = vpop.xlane.xlu0 %1196  ;;  %v1199_v42 = vpop.xlane.xlu1 %1198 }
 0x21e   : > { %v1252_v9 = vmul.f32 0.03125, %v1197_v41  ;;  %v1253_v50 = vmul.f32 0.03125, %v1199_v42  ;;  %v3404_v47 = vsel %vm1147_vm0, %v1298_v37, 0.0  ;;  %v3408_v32 = vsel %vm1147_vm0, %v1299_v40, 0.0  ;;  %2540 = vmatprep.subr.bf16.mxu0 %v2739_v33  ;;  %2602 = vmatprep.subr.bf16.mxu1 %v2739_v33 }
 0x21f   : > { %v1362_v48 = vmul.f32 %v3404_v47, %v3404_v47  ;;  %v1363_v13 = vmul.f32 %v3408_v32, %v3408_v32  ;;  %2541 = vmatpush3.bf16.msra.mxu0 %v2739_v33  ;;  %2610 = vmatpush3.bf16.msra.mxu1 %v2739_v33 }
 0x220   : > { %v1284_v49 = vsub.f32 %v3201_v38, %v1252_v9  ;;  %v1285_v55 = vsub.f32 %v3204_v39, %v1253_v50  ;;  %v2740_v39 = vld [vmem:[%s3692_s5 + $0x20] sm:$0xff]  }
 0x221   : > { %1386 = vadd.xlane.f32.xlu1 %v1347_v8  ;;  %1416 = vadd.xlane.f32.xlu0 %v1362_v48  ;;  %v1229_v61 = vpop.xlane.xlu0 %1228  ;;  %v1231_v12 = vpop.xlane.xlu1 %1230 }
 0x222   : > { %v1268_v54 = vmul.f32 0.03125, %v1229_v61  ;;  %v1269_v1 = vmul.f32 0.03125, %v1231_v12  ;;  %v3421_v4 = vsel %vm1147_vm0, %v1284_v49, 0.0  ;;  %v3425_v38 = vsel %vm1147_vm0, %v1285_v55, 0.0  ;;  %2542 = vmatprep.subr.bf16.mxu0 %v2740_v39  ;;  %2603 = vmatprep.subr.bf16.mxu1 %v2740_v39 }
 0x223   : > { %v1348_v5 = vmul.f32 %v3421_v4, %v3421_v4  ;;  %v1349_v18 = vmul.f32 %v3425_v38, %v3425_v38  ;;  %2543 = vmatpush3.bf16.msra.mxu0 %v2740_v39  ;;  %2611 = vmatpush3.bf16.msra.mxu1 %v2740_v39 }
 0x224   : > { %v1300_v10 = vsub.f32 %v3213_v44, %v1268_v54  ;;  %v1301_v58 = vsub.f32 %v3216_v45, %v1269_v1  ;;  %v2741_v45 = vld [vmem:[%s3692_s5 + $0x18] sm:$0xff]  }
 0x225   : > { %1418 = vadd.xlane.f32.xlu1 %v1363_v13  ;;  %1388 = vadd.xlane.f32.xlu0 %v1348_v5  ;;  %v1201_v20 = vpop.xlane.xlu0 %1200  ;;  %v1203_v21 = vpop.xlane.xlu1 %1202 }
 0x226   : > { %v1254_v19 = vmul.f32 0.03125, %v1201_v20  ;;  %v1255_v22 = vmul.f32 0.03125, %v1203_v21  ;;  %v3438_v23 = vsel %vm1147_vm0, %v1300_v10, 0.0  ;;  %v3442_v44 = vsel %vm1147_vm0, %v1301_v58, 0.0  ;;  %2544 = vmatprep.subr.bf16.mxu0 %v2741_v45  ;;  %2604 = vmatprep.subr.bf16.mxu1 %v2741_v45 }
 0x227   : > { %v1364_v28 = vmul.f32 %v3438_v23, %v3438_v23  ;;  %v1365_v37 = vmul.f32 %v3442_v44, %v3442_v44  ;;  %2545 = vmatpush3.bf16.msra.mxu0 %v2741_v45  ;;  %2612 = vmatpush3.bf16.msra.mxu1 %v2741_v45 }
 0x228   : > { %v1286_v2 = vsub.f32 %v3225_v51, %v1254_v19  ;;  %v1287_v3 = vsub.f32 %v3228_v52, %v1255_v22  ;;  %v2742_v52 = vld [vmem:[%s3692_s5 + $0x10] sm:$0xff]  }
 0x229   : > { %1390 = vadd.xlane.f32.xlu1 %v1349_v18  ;;  %1420 = vadd.xlane.f32.xlu0 %v1364_v28  ;;  %v1233_v27 = vpop.xlane.xlu0 %1232  ;;  %v1235_v36 = vpop.xlane.xlu1 %1234 }
 0x22a   : > { %v1270_v40 = vmul.f32 0.03125, %v1233_v27  ;;  %v1271_v41 = vmul.f32 0.03125, %v1235_v36  ;;  %v3455_v42 = vsel %vm1147_vm0, %v1286_v2, 0.0  ;;  %v3459_v51 = vsel %vm1147_vm0, %v1287_v3, 0.0  ;;  %2546 = vmatprep.subr.bf16.mxu0 %v2742_v52  ;;  %2605 = vmatprep.subr.bf16.mxu1 %v2742_v52 }
 0x22b   : > { %v1350_v8 = vmul.f32 %v3455_v42, %v3455_v42  ;;  %v1351_v49 = vmul.f32 %v3459_v51, %v3459_v51  ;;  %2547 = vmatpush3.bf16.msra.mxu0 %v2742_v52  ;;  %2613 = vmatpush3.bf16.msra.mxu1 %v2742_v52 }
 0x22c   : > { %v1302_v9 = vsub.f32 %v3237_v62, %v1270_v40  ;;  %v1303_v50 = vsub.f32 %v3240_v63, %v1271_v41  ;;  %v2743_v63 = vld [vmem:[%s3692_s5 + $0x8] sm:$0xff]  }
 0x22d   : > { %1422 = vadd.xlane.f32.xlu1 %v1365_v37  ;;  %1392 = vadd.xlane.f32.xlu0 %v1350_v8  ;;  %v1205_v33 = vpop.xlane.xlu0 %1204  ;;  %v1207_v48 = vpop.xlane.xlu1 %1206 }
 0x22e   : > { %v1256_v55 = vmul.f32 0.03125, %v1205_v33  ;;  %v1257_v61 = vmul.f32 0.03125, %v1207_v48  ;;  %v3472_v12 = vsel %vm1147_vm0, %v1302_v9, 0.0  ;;  %v3476_v62 = vsel %vm1147_vm0, %v1303_v50, 0.0  ;;  %2548 = vmatprep.subr.bf16.mxu0 %v2743_v63  ;;  %2606 = vmatprep.subr.bf16.mxu1 %v2743_v63 }
 0x22f   : > { %v1366_v13 = vmul.f32 %v3472_v12, %v3472_v12  ;;  %v1367_v10 = vmul.f32 %v3476_v62, %v3476_v62  ;;  %2549 = vmatpush3.bf16.msra.mxu0 %v2743_v63  ;;  %2614 = vmatpush3.bf16.msra.mxu1 %v2743_v63 }
 0x230   : > { %v1288_v54 = vsub.f32 %v3249_v6, %v1256_v55  ;;  %v1289_v1 = vsub.f32 %v3252_v7, %v1257_v61  ;;  %v2744_v7 = vld [vmem:[%s3692_s5] sm:$0xff]  }
 0x231   : > { %1394 = vadd.xlane.f32.xlu1 %v1351_v49  ;;  %1424 = vadd.xlane.f32.xlu0 %v1366_v13  ;;  %v1237_v39 = vpop.xlane.xlu0 %1236  ;;  %v1239_v5 = vpop.xlane.xlu1 %1238 }
 0x232   : > { %v1272_v58 = vmul.f32 0.03125, %v1237_v39  ;;  %v1273_v20 = vmul.f32 0.03125, %v1239_v5  ;;  %v3489_v21 = vsel %vm1147_vm0, %v1288_v54, 0.0  ;;  %v3493_v6 = vsel %vm1147_vm0, %v1289_v1, 0.0  ;;  %2550 = vmatprep.subr.bf16.mxu0 %v2744_v7  ;;  %2607 = vmatprep.subr.bf16.mxu1 %v2744_v7 }
 0x233   : > { %v1352_v18 = vmul.f32 %v3489_v21, %v3489_v21  ;;  %v1353_v2 = vmul.f32 %v3493_v6, %v3493_v6  ;;  %2551 = vmatpush3.bf16.msra.mxu0 %v2744_v7  ;;  %2615 = vmatpush3.bf16.msra.mxu1 %v2744_v7 }
 0x234   : > { %v1304_v19 = vsub.f32 %v3261_v16, %v1272_v58  ;;  %v1305_v22 = vsub.f32 %v3264_v17, %v1273_v20 }
 0x235   : > { %1426 = vadd.xlane.f32.xlu1 %v1367_v10  ;;  %1396 = vadd.xlane.f32.xlu0 %v1352_v18  ;;  %v1209_v45 = vpop.xlane.xlu0 %1208  ;;  %v1211_v28 = vpop.xlane.xlu1 %1210 }
 0x236   : > { %v1258_v3 = vmul.f32 0.03125, %v1209_v45  ;;  %v1259_v27 = vmul.f32 0.03125, %v1211_v28  ;;  %v3506_v36 = vsel %vm1147_vm0, %v1304_v19, 0.0  ;;  %v3510_v16 = vsel %vm1147_vm0, %v1305_v22, 0.0 }
 0x237   : > { %v1368_v17 = vmul.f32 %v3506_v36, %v3506_v36  ;;  %v1369_v8 = vmul.f32 %v3510_v16, %v3510_v16 }
 0x238   : > { %v1290_v37 = vsub.f32 %v3273_v24, %v1258_v3  ;;  %v1291_v40 = vsub.f32 %v3276_v25, %v1259_v27 }
 0x239   : > { %1398 = vadd.xlane.f32.xlu1 %v1353_v2  ;;  %1428 = vadd.xlane.f32.xlu0 %v1368_v17  ;;  %v1241_v41 = vpop.xlane.xlu0 %1240  ;;  %v1243_v52 = vpop.xlane.xlu1 %1242 }
 0x23a   : > { %v1274_v9 = vmul.f32 0.03125, %v1241_v41  ;;  %v1275_v50 = vmul.f32 0.03125, %v1243_v52  ;;  %v3520_v33 = vsel %vm1147_vm0, %v1290_v37, 0.0  ;;  %v3524_v48 = vsel %vm1147_vm0, %v1291_v40, 0.0 }
 0x23b   : > { %v1354_v24 = vmul.f32 %v3520_v33, %v3520_v33  ;;  %v1355_v55 = vmul.f32 %v3524_v48, %v3524_v48 }
 0x23c   : > { %v1306_v25 = vsub.f32 %v3285_v34, %v1274_v9  ;;  %v1307_v49 = vsub.f32 %v3288_v35, %v1275_v50 }
 0x23d   : > { %1430 = vadd.xlane.f32.xlu1 %v1369_v8  ;;  %1400 = vadd.xlane.f32.xlu0 %v1354_v24  ;;  %v3547_v24 = vld [vmem:[%s3690_s3] ss:$0 sm:$0xff] }
 0x23e   : > { %v3534_v61 = vsel %vm1147_vm0, %v1306_v25, 0.0  ;;  %v3538_v63 = vsel %vm1147_vm0, %v1307_v49, 0.0 }
 0x23f   : > { %v1370_v13 = vmul.f32 %v3534_v61, %v3534_v61  ;;  %v1371_v34 = vmul.f32 %v3538_v63, %v3538_v63 }
 0x241   : > { %1402 = vadd.xlane.f32.xlu1 %v1355_v55  ;;  %1432 = vadd.xlane.f32.xlu0 %v1370_v13 }
 0x245   : > { %1434 = vadd.xlane.f32.xlu1 %v1371_v34 }
 0x28e   : > { %v1373_v35 = vpop.xlane.xlu0 %1372 }
 0x28f   : > { %v1436_v54 = vmul.f32 0.03125, %v1373_v35 }
 0x291   : > { %v1468_v1 = vadd.f32 1e-05, %v1436_v54 }
 0x292   : > { %v1375_v39 = vpop.xlane.xlu1 %1374  ;;  %v1405_v5 = vpop.xlane.xlu0 %1404 }
 0x293   : > { %2745 = vrsqrt.f32 %v1468_v1  ;;  %v1437_v10 = vmul.f32 0.03125, %v1375_v39  ;;  %v1452_v58 = vmul.f32 0.03125, %v1405_v5  ;;  %v3553_v1 = vld [vmem:[%s3691_s4] ss:$0 sm:$0xff] }
 0x295   : > { %v1469_v57 = vadd.f32 1e-05, %v1437_v10  ;;  %v1484_v20 = vadd.f32 1e-05, %v1452_v58 }
 0x296   : > { %v1407_v7 = vpop.xlane.xlu1 %1406  ;;  %v1377_v18 = vpop.xlane.xlu0 %1376 }
 0x297   : > { %2747 = vrsqrt.f32 %v1469_v57  ;;  %v1453_v19 = vmul.f32 0.03125, %v1407_v7  ;;  %v1438_v22 = vmul.f32 0.03125, %v1377_v18 }
 0x298   : > { %2749 = vrsqrt.f32 %v1484_v20 }
 0x299   : > { %v1485_v45 = vadd.f32 1e-05, %v1453_v19  ;;  %v1470_v28 = vadd.f32 1e-05, %v1438_v22 }
 0x29a   : > { %v1379_v2 = vpop.xlane.xlu1 %1378  ;;  %v1409_v3 = vpop.xlane.xlu0 %1408 }
 0x29b   : > { %2751 = vrsqrt.f32 %v1485_v45  ;;  %v1439_v27 = vmul.f32 0.03125, %v1379_v2  ;;  %v1454_v17 = vmul.f32 0.03125, %v1409_v3 }
 0x29c   : > { %2753 = vrsqrt.f32 %v1470_v28 }
 0x29d   : > { %v1471_v37 = vadd.f32 1e-05, %v1439_v27  ;;  %v1486_v40 = vadd.f32 1e-05, %v1454_v17 }
 0x29e   : > { %v1411_v41 = vpop.xlane.xlu1 %1410  ;;  %v1381_v52 = vpop.xlane.xlu0 %1380 }
 0x29f   : > { %2755 = vrsqrt.f32 %v1471_v37  ;;  %v1455_v8 = vmul.f32 0.03125, %v1411_v41  ;;  %v1440_v9 = vmul.f32 0.03125, %v1381_v52 }
 0x2a0   : > { %v2746_v50 = vpop.eup %2745  ;;  %2757 = vrsqrt.f32 %v1486_v40 }
 0x2a1   : > { %v1487_v25 = vadd.f32 1e-05, %v1455_v8  ;;  %v1472_v49 = vadd.f32 1e-05, %v1440_v9  ;;  %v1532_v55 = vmul.f32 %v2746_v50, %v3300_v56 }
 0x2a2   : > { %v1383_v13 = vpop.xlane.xlu1 %1382  ;;  %v1413_v34 = vpop.xlane.xlu0 %1412 }
 0x2a3   : > { %2759 = vrsqrt.f32 %v1487_v25  ;;  %v1441_v35 = vmul.f32 0.03125, %v1383_v13  ;;  %v1456_v54 = vmul.f32 0.03125, %v1413_v34  ;;  %v1570_v39 = vmul.f32 %v3547_v24, %v1532_v55 }
 0x2a4   : > { %v2748_v5 = vpop.eup %2747  ;;  %2761 = vrsqrt.f32 %v1472_v49 }
 0x2a5   : > { %v2750_v10 = vpop.eup %2749  ;;  %v1473_v58 = vadd.f32 1e-05, %v1441_v35  ;;  %v1488_v57 = vadd.f32 1e-05, %v1456_v54  ;;  %v1533_v20 = vmul.f32 %v2748_v5, %v3314_v11  ;;  %v1608_v18 = vadd.f32 %v3553_v1, %v1570_v39 }
 0x2a6   : > { %v1415_v56 = vpop.xlane.xlu1 %1414  ;;  %v1385_v7 = vpop.xlane.xlu0 %1384  ;;  %v1548_v19 = vmul.f32 %v2750_v10, %v3304_v60 }
 0x2a7   : > { %2763 = vrsqrt.f32 %v1473_v58  ;;  %v1457_v22 = vmul.f32 0.03125, %v1415_v56  ;;  %v1442_v45 = vmul.f32 0.03125, %v1385_v7  ;;  %v1571_v28 = vmul.f32 %v3547_v24, %v1533_v20 }
 0x2a8   : > { %v2752_v2 = vpop.eup %2751  ;;  %2765 = vrsqrt.f32 %v1488_v57  ;;  %v1586_v3 = vmul.f32 %v3547_v24, %v1548_v19  ;;  %v1640_v8 = vmax.f32 %v1608_v18, 0.0 }
 0x2a9   : > { %v2754_v27 = vpop.eup %2753  ;;  %v1489_v17 = vadd.f32 1e-05, %v1457_v22  ;;  %v1474_v37 = vadd.f32 1e-05, %v1442_v45  ;;  %v1609_v11 = vadd.f32 %v3553_v1, %v1571_v28  ;;  %v1549_v40 = vmul.f32 %v2752_v2, %v3318_v14 }
 0x2aa   : > { %v1387_v41 = vpop.xlane.xlu1 %1386  ;;  %v1417_v52 = vpop.xlane.xlu0 %1416  ;;  %v1534_v60 = vmul.f32 %v2754_v27, %v3328_v29  ;;  %v1624_v13 = vadd.f32 %v3553_v1, %v1586_v3 }
 0x2ab   : > { %2767 = vrsqrt.f32 %v1489_v17  ;;  %v1443_v9 = vmul.f32 0.03125, %v1387_v41  ;;  %v1458_v50 = vmul.f32 0.03125, %v1417_v52  ;;  %v1641_v25 = vmax.f32 %v1609_v11, 0.0 }
 0x2ac   : > { %v2756_v49 = vpop.eup %2755  ;;  %2769 = vrsqrt.f32 %v1474_v37  ;;  %v1587_v55 = vmul.f32 %v3547_v24, %v1549_v40  ;;  %v1572_v34 = vmul.f32 %v3547_v24, %v1534_v60  ;;  %v1656_v22 = vmax.f32 %v1624_v13, 0.0 }
 0x2ad   : > { %v2758_v35 = vpop.eup %2757  ;;  %v1475_v54 = vadd.f32 1e-05, %v1443_v9  ;;  %v1490_v14 = vadd.f32 1e-05, %v1458_v50  ;;  %v1672_v39 = vpack.c.bf16 %v1641_v25, %v1640_v8  ;;  %v1535_v5 = vmul.f32 %v2756_v49, %v3332_v30 }
 0x2ae   : > { %v1419_v10 = vpop.xlane.xlu1 %1418  ;;  %v1389_v29 = vpop.xlane.xlu0 %1388  ;;  %v1625_v58 = vadd.f32 %v3553_v1, %v1587_v55  ;;  %v1610_v57 = vadd.f32 %v3553_v1, %v1572_v34  ;;  %v1550_v20 = vmul.f32 %v2758_v35, %v3342_v43 }
 0x2af   : > { %2771 = vrsqrt.f32 %v1475_v54  ;;  %v1459_v56 = vmul.f32 0.03125, %v1419_v10  ;;  %v1444_v7 = vmul.f32 0.03125, %v1389_v29  ;;  %2552 = vmatprep.mubr.bf16.mxu0 %v1672_v39  ;;  %v1573_v18 = vmul.f32 %v3547_v24, %v1535_v5 }
 0x2b0   : > { %v2760_v19 = vpop.eup %2759  ;;  %2773 = vrsqrt.f32 %v1490_v14  ;;  %v1657_v45 = vmax.f32 %v1625_v58, 0.0  ;;  %v1588_v30 = vmul.f32 %v3547_v24, %v1550_v20  ;;  %v1642_v40 = vmax.f32 %v1610_v57, 0.0 }
 0x2b1   : > { %v2762_v28 = vpop.eup %2761  ;;  %v1491_v2 = vadd.f32 1e-05, %v1459_v56  ;;  %v1476_v3 = vadd.f32 1e-05, %v1444_v7  ;;  %v1611_v27 = vadd.f32 %v3553_v1, %v1573_v18  ;;  %v1551_v17 = vmul.f32 %v2760_v19, %v3346_v46 }
 0x2b2   : > { %v1391_v43 = vpop.xlane.xlu1 %1390  ;;  %v1421_v37 = vpop.xlane.xlu0 %1420  ;;  %v1680_v11 = vpack.c.bf16 %v1657_v45, %v1656_v22  ;;  %v1536_v41 = vmul.f32 %v2762_v28, %v3356_v0  ;;  %v1626_v25 = vadd.f32 %v3553_v1, %v1588_v30 }
 0x2b3   : > { %2775 = vrsqrt.f32 %v1491_v2  ;;  %v1445_v52 = vmul.f32 0.03125, %v1391_v43  ;;  %v1460_v8 = vmul.f32 0.03125, %v1421_v37  ;;  %v1643_v60 = vmax.f32 %v1611_v27, 0.0 }
 0x2b4   : > { %v2764_v9 = vpop.eup %2763  ;;  %2777 = vrsqrt.f32 %v1476_v3  ;;  %2568 = vmatprep.mubr.bf16.mxu1 %v1680_v11  ;;  %v1589_v50 = vmul.f32 %v3547_v24, %v1551_v17  ;;  %v1574_v49 = vmul.f32 %v3547_v24, %v1536_v41  ;;  %v1658_v20 = vmax.f32 %v1626_v25, 0.0 }
 0x2b5   : > { %v2766_v46 = vpop.eup %2765  ;;  %v1477_v55 = vadd.f32 1e-05, %v1445_v52  ;;  %v1492_v13 = vadd.f32 1e-05, %v1460_v8  ;;  %v1673_v34 = vpack.c.bf16 %v1643_v60, %v1642_v40  ;;  %v1537_v35 = vmul.f32 %v2764_v9, %v3360_v53 }
 0x2b6   : > { %v1423_v0 = vpop.xlane.xlu1 %1422  ;;  %v1393_v54 = vpop.xlane.xlu0 %1392  ;;  %v1627_v14 = vadd.f32 %v3553_v1, %v1589_v50  ;;  %v1612_v39 = vadd.f32 %v3553_v1, %v1574_v49  ;;  %v1552_v5 = vmul.f32 %v2766_v46, %v3370_v59 }
 0x2b7   : > { %2779 = vrsqrt.f32 %v1477_v55  ;;  %v1461_v10 = vmul.f32 0.03125, %v1423_v0  ;;  %v1446_v29 = vmul.f32 0.03125, %v1393_v54  ;;  %2553 = vmatmul.mubr.bf16.vlgmr.msra.gmra.mxu0 %v1673_v34  ;;  %v1575_v58 = vmul.f32 %v3547_v24, %v1537_v35 }
 0x2b8   : > { %v2768_v57 = vpop.eup %2767  ;;  %2781 = vrsqrt.f32 %v1492_v13  ;;  %v1659_v56 = vmax.f32 %v1627_v14, 0.0  ;;  %v1590_v53 = vmul.f32 %v3547_v24, %v1552_v5  ;;  %v1644_v2 = vmax.f32 %v1612_v39, 0.0 }
 0x2b9   : > { %v2770_v7 = vpop.eup %2769  ;;  %v1493_v18 = vadd.f32 1e-05, %v1461_v10  ;;  %v1478_v19 = vadd.f32 1e-05, %v1446_v29  ;;  %v1613_v22 = vadd.f32 %v3553_v1, %v1575_v58  ;;  %v1553_v45 = vmul.f32 %v2768_v57, %v3374_v15 }
 0x2ba   : > { %v1395_v59 = vpop.xlane.xlu1 %1394  ;;  %v1425_v30 = vpop.xlane.xlu0 %1424  ;;  %v1681_v28 = vpack.c.bf16 %v1659_v56, %v1658_v20  ;;  %v1538_v3 = vmul.f32 %v2770_v7, %v3387_v31  ;;  %v1628_v40 = vadd.f32 %v3553_v1, %v1590_v53 }
 0x2bb   : > { %2783 = vrsqrt.f32 %v1493_v18  ;;  %v1447_v27 = vmul.f32 0.03125, %v1395_v59  ;;  %v1462_v17 = vmul.f32 0.03125, %v1425_v30  ;;  %v1645_v43 = vmax.f32 %v1613_v22, 0.0 }
 0x2bc   : > { %v2772_v37 = vpop.eup %2771  ;;  %2785 = vrsqrt.f32 %v1478_v19  ;;  %2569 = vmatmul.mubr.bf16.vlgmr.msra.gmra.mxu1 %v1681_v28  ;;  %v1591_v11 = vmul.f32 %v3547_v24, %v1553_v45  ;;  %v1576_v41 = vmul.f32 %v3547_v24, %v1538_v3  ;;  %v1660_v0 = vmax.f32 %v1628_v40, 0.0 }
 0x2bd   : > { %v2774_v15 = vpop.eup %2773  ;;  %v1479_v52 = vadd.f32 1e-05, %v1447_v27  ;;  %v1494_v8 = vadd.f32 1e-05, %v1462_v17  ;;  %v1674_v60 = vpack.c.bf16 %v1645_v43, %v1644_v2  ;;  %v1539_v9 = vmul.f32 %v2772_v37, %v3391_v26 }
 0x2be   : > { %v1427_v31 = vpop.xlane.xlu1 %1426  ;;  %v1397_v50 = vpop.xlane.xlu0 %1396  ;;  %v1629_v25 = vadd.f32 %v3553_v1, %v1591_v11  ;;  %v1614_v49 = vadd.f32 %v3553_v1, %v1576_v41  ;;  %v1554_v46 = vmul.f32 %v2774_v15, %v3404_v47 }
 0x2bf   : > { %2787 = vrsqrt.f32 %v1479_v52  ;;  %v1463_v55 = vmul.f32 0.03125, %v1427_v31  ;;  %v1448_v13 = vmul.f32 0.03125, %v1397_v50  ;;  %2556 = vmatprep.mubr.bf16.mxu0 %v1674_v60  ;;  %v1577_v34 = vmul.f32 %v3547_v24, %v1539_v9 }
 0x2c0   : > { %v2776_v35 = vpop.eup %2775  ;;  %2789 = vrsqrt.f32 %v1494_v8  ;;  %v1661_v54 = vmax.f32 %v1629_v25, 0.0  ;;  %v1592_v26 = vmul.f32 %v3547_v24, %v1554_v46  ;;  %v1646_v20 = vmax.f32 %v1614_v49, 0.0 }
 0x2c1   : > { %v2778_v14 = vpop.eup %2777  ;;  %v1495_v39 = vadd.f32 1e-05, %v1463_v55  ;;  %v1480_v5 = vadd.f32 1e-05, %v1448_v13  ;;  %v1615_v10 = vadd.f32 %v3553_v1, %v1577_v34  ;;  %v1555_v29 = vmul.f32 %v2776_v35, %v3408_v32 }
 0x2c2   : > { %v1399_v47 = vpop.xlane.xlu1 %1398  ;;  %v1429_v58 = vpop.xlane.xlu0 %1428  ;;  %v1682_v57 = vpack.c.bf16 %v1661_v54, %v1660_v0  ;;  %v1540_v56 = vmul.f32 %v2778_v14, %v3421_v4  ;;  %v1630_v45 = vadd.f32 %v3553_v1, %v1592_v26 }
 0x2c3   : > { %2791 = vrsqrt.f32 %v1495_v39  ;;  %v1449_v53 = vmul.f32 0.03125, %v1399_v47  ;;  %v1464_v7 = vmul.f32 0.03125, %v1429_v58  ;;  %v1647_v18 = vmax.f32 %v1615_v10, 0.0 }
 0x2c4   : > { %v2780_v19 = vpop.eup %2779  ;;  %2793 = vrsqrt.f32 %v1480_v5  ;;  %2572 = vmatprep.mubr.bf16.mxu1 %v1682_v57  ;;  %v1593_v22 = vmul.f32 %v3547_v24, %v1555_v29  ;;  %v1578_v59 = vmul.f32 %v3547_v24, %v1540_v56  ;;  %v1662_v52 = vmax.f32 %v1630_v45, 0.0 }
 0x2c5   : > { %v2782_v32 = vpop.eup %2781  ;;  %v1481_v30 = vadd.f32 1e-05, %v1449_v53  ;;  %v1496_v28 = vadd.f32 1e-05, %v1464_v7  ;;  %v1675_v2 = vpack.c.bf16 %v1647_v18, %v1646_v20  ;;  %v1541_v3 = vmul.f32 %v2780_v19, %v3425_v38 }
 0x2c6   : > { %v1431_v4 = vpop.xlane.xlu1 %1430  ;;  %v1401_v27 = vpop.xlane.xlu0 %1400  ;;  %v1631_v17 = vadd.f32 %v3553_v1, %v1593_v22  ;;  %v1616_v43 = vadd.f32 %v3553_v1, %v1578_v59  ;;  %v1556_v37 = vmul.f32 %v2782_v32, %v3438_v23 }
 0x2c7   : > { %2795 = vrsqrt.f32 %v1481_v30  ;;  %v1465_v11 = vmul.f32 0.03125, %v1431_v4  ;;  %v1450_v40 = vmul.f32 0.03125, %v1401_v27  ;;  %2557 = vmatmul.mubr.bf16.gmra.mxu0 %v1675_v2  ;;  %v1579_v41 = vmul.f32 %v3547_v24, %v1541_v3 }
 0x2c8   : > { %v2784_v15 = vpop.eup %2783  ;;  %2797 = vrsqrt.f32 %v1496_v28  ;;  %v1663_v8 = vmax.f32 %v1631_v17, 0.0  ;;  %v1594_v38 = vmul.f32 %v3547_v24, %v1556_v37  ;;  %v1648_v55 = vmax.f32 %v1616_v43, 0.0 }
 0x2c9   : > { %v2786_v60 = vpop.eup %2785  ;;  %v1497_v9 = vadd.f32 1e-05, %v1465_v11  ;;  %v1482_v31 = vadd.f32 1e-05, %v1450_v40  ;;  %v1617_v50 = vadd.f32 %v3553_v1, %v1579_v41  ;;  %v1557_v25 = vmul.f32 %v2784_v15, %v3442_v44 }
 0x2ca   : > { %v1403_v23 = vpop.xlane.xlu1 %1402  ;;  %v1433_v49 = vpop.xlane.xlu0 %1432  ;;  %v1683_v46 = vpack.c.bf16 %v1663_v8, %v1662_v52  ;;  %v1542_v13 = vmul.f32 %v2786_v60, %v3455_v42  ;;  %v1632_v14 = vadd.f32 %v3553_v1, %v1594_v38 }
 0x2cb   : > { %2799 = vrsqrt.f32 %v1497_v9  ;;  %v1451_v34 = vmul.f32 0.03125, %v1403_v23  ;;  %v1466_v35 = vmul.f32 0.03125, %v1433_v49  ;;  %v1649_v0 = vmax.f32 %v1617_v50, 0.0 }
 0x2cc   : > { %v2788_v54 = vpop.eup %2787  ;;  %2801 = vrsqrt.f32 %v1482_v31  ;;  %2573 = vmatmul.mubr.bf16.gmra.mxu1 %v1683_v46  ;;  %v1595_v26 = vmul.f32 %v3547_v24, %v1557_v25  ;;  %v1580_v39 = vmul.f32 %v3547_v24, %v1542_v13  ;;  %v1664_v18 = vmax.f32 %v1632_v14, 0.0 }
 0x2cd   : > { %v2790_v44 = vpop.eup %2789  ;;  %v1483_v5 = vadd.f32 1e-05, %v1451_v34  ;;  %v1498_v10 = vadd.f32 1e-05, %v1466_v35  ;;  %v1676_v29 = vpack.c.bf16 %v1649_v0, %v1648_v55  ;;  %v1543_v47 = vmul.f32 %v2788_v54, %v3459_v51 }
 0x2ce   : > { %v1435_v42 = vpop.xlane.xlu1 %1434  ;;  %v1633_v58 = vadd.f32 %v3553_v1, %v1595_v26  ;;  %v1618_v57 = vadd.f32 %v3553_v1, %v1580_v39  ;;  %v1558_v20 = vmul.f32 %v2790_v44, %v3472_v12 }
 0x2cf   : > { %2803 = vrsqrt.f32 %v1483_v5  ;;  %v1467_v56 = vmul.f32 0.03125, %v1435_v42  ;;  %2560 = vmatprep.mubr.bf16.mxu0 %v1676_v29  ;;  %v1581_v53 = vmul.f32 %v3547_v24, %v1543_v47 }
 0x2d0   : > { %v2792_v7 = vpop.eup %2791  ;;  %2805 = vrsqrt.f32 %v1498_v10  ;;  %v1665_v19 = vmax.f32 %v1633_v58, 0.0  ;;  %v1596_v22 = vmul.f32 %v3547_v24, %v1558_v20  ;;  %v1650_v28 = vmax.f32 %v1618_v57, 0.0 }
 0x2d1   : > { %v2794_v45 = vpop.eup %2793  ;;  %v1499_v51 = vadd.f32 1e-05, %v1467_v56  ;;  %v1619_v59 = vadd.f32 %v3553_v1, %v1581_v53  ;;  %v1559_v32 = vmul.f32 %v2792_v7, %v3476_v62 }
 0x2d2   : > { %v1684_v30 = vpack.c.bf16 %v1665_v19, %v1664_v18  ;;  %v1544_v12 = vmul.f32 %v2794_v45, %v3489_v21  ;;  %v1634_v4 = vadd.f32 %v3553_v1, %v1596_v22 }
 0x2d3   : > { %2807 = vrsqrt.f32 %v1499_v51  ;;  %v1651_v2 = vmax.f32 %v1619_v59, 0.0  ;;  %v1597_v3 = vmul.f32 %v3547_v24, %v1559_v32 }
 0x2d4   : > { %v2796_v27 = vpop.eup %2795  ;;  %2576 = vmatprep.mubr.bf16.mxu1 %v1684_v30  ;;  %v1582_v17 = vmul.f32 %v3547_v24, %v1544_v12  ;;  %v1666_v21 = vmax.f32 %v1634_v4, 0.0 }
 0x2d5   : > { %v2798_v43 = vpop.eup %2797  ;;  %v1677_v37 = vpack.c.bf16 %v1651_v2, %v1650_v28  ;;  %v1635_v11 = vadd.f32 %v3553_v1, %v1597_v3  ;;  %v1545_v62 = vmul.f32 %v2796_v27, %v3493_v6 }
 0x2d6   : > { %v1560_v40 = vmul.f32 %v2798_v43, %v3506_v36  ;;  %v1620_v52 = vadd.f32 %v3553_v1, %v1582_v17 }
 0x2d7   : > { %2561 = vmatmul.mubr.bf16.gmra.mxu0 %v1677_v37  ;;  %v1667_v41 = vmax.f32 %v1635_v11, 0.0  ;;  %v1583_v15 = vmul.f32 %v3547_v24, %v1545_v62 }
 0x2d8   : > { %v2800_v8 = vpop.eup %2799  ;;  %v1598_v38 = vmul.f32 %v3547_v24, %v1560_v40  ;;  %v1652_v36 = vmax.f32 %v1620_v52, 0.0 }
 0x2d9   : > { %v2802_v60 = vpop.eup %2801  ;;  %v1685_v9 = vpack.c.bf16 %v1667_v41, %v1666_v21  ;;  %v1621_v31 = vadd.f32 %v3553_v1, %v1583_v15  ;;  %v1561_v50 = vmul.f32 %v2800_v8, %v3510_v16 }
 0x2da   : > { %v1546_v6 = vmul.f32 %v2802_v60, %v3520_v33  ;;  %v1636_v49 = vadd.f32 %v3553_v1, %v1598_v38 }
 0x2db   : > { %2577 = vmatmul.mubr.bf16.gmra.mxu1 %v1685_v9  ;;  %v1653_v25 = vmax.f32 %v1621_v31, 0.0  ;;  %v1599_v23 = vmul.f32 %v3547_v24, %v1561_v50 }
 0x2dc   : > { %v2804_v46 = vpop.eup %2803  ;;  %v1584_v55 = vmul.f32 %v3547_v24, %v1546_v6  ;;  %v1668_v33 = vmax.f32 %v1636_v49, 0.0 }
 0x2dd   : > { %v2806_v13 = vpop.eup %2805  ;;  %v1678_v34 = vpack.c.bf16 %v1653_v25, %v1652_v36  ;;  %v1637_v35 = vadd.f32 %v3553_v1, %v1599_v23  ;;  %v1547_v0 = vmul.f32 %v2804_v46, %v3524_v48 }
 0x2de   : > { %v1562_v16 = vmul.f32 %v2806_v13, %v3534_v61  ;;  %v1622_v14 = vadd.f32 %v3553_v1, %v1584_v55 }
 0x2df   : > { %2564 = vmatprep.mubr.bf16.mxu0 %v1678_v34  ;;  %v1669_v54 = vmax.f32 %v1637_v35, 0.0  ;;  %v1585_v26 = vmul.f32 %v3547_v24, %v1547_v0 }
 0x2e0   : > { %v2808_v39 = vpop.eup %2807  ;;  %v1600_v44 = vmul.f32 %v3547_v24, %v1562_v16  ;;  %v1654_v47 = vmax.f32 %v1622_v14, 0.0 }
 0x2e1   : > { %v1686_v5 = vpack.c.bf16 %v1669_v54, %v1668_v33  ;;  %v1623_v10 = vadd.f32 %v3553_v1, %v1585_v26  ;;  %v1563_v29 = vmul.f32 %v2808_v39, %v3538_v63 }
 0x2e2   : > { %v1638_v42 = vadd.f32 %v3553_v1, %v1600_v44 }
 0x2e3   : > { %2580 = vmatprep.mubr.bf16.mxu1 %v1686_v5  ;;  %v1655_v48 = vmax.f32 %v1623_v10, 0.0  ;;  %v1601_v61 = vmul.f32 %v3547_v24, %v1563_v29 }
 0x2e4   : > { %v1670_v20 = vmax.f32 %v1638_v42, 0.0 }
 0x2e5   : > { %v1679_v58 = vpack.c.bf16 %v1655_v48, %v1654_v47  ;;  %v1639_v57 = vadd.f32 %v3553_v1, %v1601_v61 }
 0x2e7   : > { %2565 = vmatmul.mubr.bf16.gmra.mxu0 %v1679_v58  ;;  %v1671_v56 = vmax.f32 %v1639_v57, 0.0 }
 0x2e9   : > { %v1687_v53 = vpack.c.bf16 %v1671_v56, %v1670_v20 }
 0x2eb   : > { %2581 = vmatmul.mubr.bf16.gmra.mxu1 %v1687_v53 }
 0x377   : > { %v2554_v63 = vpop.f32.mrf.mxu0 }
 0x379   : > { %v1786_v7 = vpop.f32.mrf.mxu0 }
 0x37b   : > { %v2555_v18 = vpop.f32.mrf.mxu0 }
 0x37c   : > { %v2313_v19 = vpack.c.bf16 %v2555_v18, %v2554_v63  ;;  %v2570_v22 = vpop.f32.mrf.mxu1 }
 0x37d   : > { %v1789_v45 = vpop.f32.mrf.mxu0 }
 0x37e   : > { %2385 = vst [vmem:[%s3042_s18 + $0x8] sm:$0xff] %v2313_v19   ;;  %v2308_v24 = vpack.c.bf16 %v1789_v45, %v1786_v7  ;;  %v1850_v51 = vpop.f32.mrf.mxu1 }
 0x380   : > { %2309 = vst [vmem:[%s3042_s18] sm:$0xff] %v2308_v24   ;;  %v2571_v1 = vpop.f32.mrf.mxu1 }
 0x381   : > { %v2353_v59 = vpack.c.bf16 %v2571_v1, %v2570_v22 }
 0x382   : > { %v1853_v32 = vpop.f32.mrf.mxu1 }
 0x383   : > { %2393 = vst [vmem:[%s3042_s18 + $0x48] sm:$0xff] %v2353_v59   ;;  %v2348_v30 = vpack.c.bf16 %v1853_v32, %v1850_v51 }
 0x385   : > { %2392 = vst [vmem:[%s3042_s18 + $0x40] sm:$0xff] %v2348_v30  }
 0x387   : > { %v2558_v28 = vpop.f32.mrf.mxu0 }
 0x389   : > { %v1802_v12 = vpop.f32.mrf.mxu0 }
 0x38b   : > { %v2559_v2 = vpop.f32.mrf.mxu0 }
 0x38c   : > { %v2323_v3 = vpack.c.bf16 %v2559_v2, %v2558_v28  ;;  %v2574_v4 = vpop.f32.mrf.mxu1 }
 0x38d   : > { %v1805_v27 = vpop.f32.mrf.mxu0 }
 0x38e   : > { %2387 = vst [vmem:[%s3042_s18 + $0x18] sm:$0xff] %v2323_v3   ;;  %v2318_v17 = vpack.c.bf16 %v1805_v27, %v1802_v12  ;;  %v1866_v43 = vpop.f32.mrf.mxu1 }
 0x390   : > { %2386 = vst [vmem:[%s3042_s18 + $0x10] sm:$0xff] %v2318_v17   ;;  %v2575_v37 = vpop.f32.mrf.mxu1 }
 0x391   : > { %v2363_v11 = vpack.c.bf16 %v2575_v37, %v2574_v4 }
 0x392   : > { %v1869_v62 = vpop.f32.mrf.mxu1 }
 0x393   : > { %2395 = vst [vmem:[%s3042_s18 + $0x58] sm:$0xff] %v2363_v11   ;;  %v2358_v40 = vpack.c.bf16 %v1869_v62, %v1866_v43 }
 0x395   : > { %2394 = vst [vmem:[%s3042_s18 + $0x50] sm:$0xff] %v2358_v40  }
 0x397   : > { %v2562_v21 = vpop.f32.mrf.mxu0 }
 0x399   : > { %v1818_v41 = vpop.f32.mrf.mxu0 }
 0x39b   : > { %v2563_v15 = vpop.f32.mrf.mxu0  ;;  %v2578_v52 = vpop.f32.mrf.mxu1 }
 0x39c   : > { %v2333_v8 = vpack.c.bf16 %v2563_v15, %v2562_v21 }
 0x39d   : > { %v1821_v38 = vpop.f32.mrf.mxu0  ;;  %v1882_v60 = vpop.f32.mrf.mxu1 }
 0x39e   : > { %2389 = vst [vmem:[%s3042_s18 + $0x28] sm:$0xff] %v2333_v8   ;;  %v2328_v9 = vpack.c.bf16 %v1821_v38, %v1818_v41 }
 0x39f   : > { %v2579_v31 = vpop.f32.mrf.mxu1 }
 0x3a0   : > { %2388 = vst [vmem:[%s3042_s18 + $0x20] sm:$0xff] %v2328_v9   ;;  %v2373_v50 = vpack.c.bf16 %v2579_v31, %v2578_v52 }
 0x3a1   : > { %v1885_v6 = vpop.f32.mrf.mxu1 }
 0x3a2   : > { %2397 = vst [vmem:[%s3042_s18 + $0x68] sm:$0xff] %v2373_v50   ;;  %v2368_v36 = vpack.c.bf16 %v1885_v6, %v1882_v60 }
 0x3a4   : > { %2396 = vst [vmem:[%s3042_s18 + $0x60] sm:$0xff] %v2368_v36  }
 0x3a7   : > { %v2566_v25 = vpop.f32.mrf.mxu0 }
 0x3a9   : > { %v1834_v23 = vpop.f32.mrf.mxu0 }
 0x3ab   : > { %v2567_v49 = vpop.f32.mrf.mxu0  ;;  %v2582_v46 = vpop.f32.mrf.mxu1 }
 0x3ac   : > { %v2343_v55 = vpack.c.bf16 %v2567_v49, %v2566_v25 }
 0x3ad   : > { %v1837_v13 = vpop.f32.mrf.mxu0  ;;  %v1898_v34 = vpop.f32.mrf.mxu1 }
 0x3ae   : > { %2391 = vst [vmem:[%s3042_s18 + $0x38] sm:$0xff] %v2343_v55   ;;  %v2338_v35 = vpack.c.bf16 %v1837_v13, %v1834_v23 }
 0x3af   : > { %v2583_v0 = vpop.f32.mrf.mxu1 }
 0x3b0   : > { %2390 = vst [vmem:[%s3042_s18 + $0x30] sm:$0xff] %v2338_v35   ;;  %v2383_v16 = vpack.c.bf16 %v2583_v0, %v2582_v46 }
 0x3b1   : > { %v1901_v33 = vpop.f32.mrf.mxu1 }
 0x3b2   : > { %2399 = vst [vmem:[%s3042_s18 + $0x78] sm:$0xff] %v2383_v16   ;;  %v2378_v54 = vpack.c.bf16 %v1901_v33, %v1898_v34 }
 0x3b4   : > { %2398 = vst [vmem:[%s3042_s18 + $0x70] sm:$0xff] %v2378_v54  }
 0x3b5 PF: > { %s16_s27 = sadd.s32 1, %s2863_s27   ;;  %s3694_s21 = smov %s2843_s22 }
 0x3b6   : > { %p13_p0 = scmp.ge.s32.totalorder %s16_s27, 6   ;;  %s3695_s22 = smov %s2952_s10 }
 0x3b7   : > { %s3696_s23 = smov %s2855_s25  ;;  %s3697_s24 = smov %s2859_s26 }
 0x3b8   : > { %s3698_s25 = smov %s3701_s28  ;;  %s3699_s26 = smov %s3705_s29 }
 0x3b9   :  { %15 = sbr.rel (!%p13_p0) target bundleno = 4 (0x4), region = 128 }

// kernel: gcn_forward.5
= control target key start
LH: loop header
LB: loop body
LE: loop exit
PB: predicated region body
PF: predicated region fallthrough
CT: control target
= control target key end

     0   :  { %s2781_s18 = smov 0   ;;  %s2783_s19 = smov 0   ;;  %s4039_s0 = inlined_call_operand.vmem [shape: bf16[512,512], index: 0, kind: input, shape index: {}]   ;;  %s4040_s1 = inlined_call_operand.vmem [shape: bf16[512,128], index: 1, kind: input, shape index: {}]   ;;  %s4041_s2 = inlined_call_operand.vmem [shape: f32[1,128], index: 2, kind: input, shape index: {}]   ;;  %s4042_s3 = inlined_call_operand.vmem [shape: f32[1,128], index: 3, kind: input, shape index: {}]   ;;  %s4043_s4 = inlined_call_operand.vmem [shape: f32[1,128], index: 4, kind: input, shape index: {}]   ;;  %s4044_s5 = inlined_call_operand.vmem [shape: f32[512,128], index: 5, kind: output, shape index: {}]  }
   0x1   :  { %s2785_s20 = smov 0   ;;  %s2787_s21 = smov 0  }
   0x2   :  { %s2789_s22 = smov 0   ;;  %s2791_s23 = smov 0  }
   0x3   :  { %s2793_s24 = smov 0  }
   0x4 LB: > { %s24_s25 = sadd.s32 1, %s2740_s22  ;;  %s27_s26 = sadd.s32 1, %s2744_s23  ;;  %s2748_s24 = sphi %s2793_s24, %s15_s24   ;;  %s2744_s23 = sphi %s2791_s23, %s4092_s23   ;;  %s2740_s22 = sphi %s2789_s22, %s4091_s22   ;;  %s2736_s21 = sphi %s2787_s21, %s4090_s21   ;;  %s2732_s20 = sphi %s2785_s20, %s4089_s20   ;;  %s2728_s19 = sphi %s2783_s19, %s4088_s19   ;;  %s2724_s18 = sphi %s2781_s18, %s4087_s18  }
   0x5   : > { %p25_p0 = scmp.ge.s32.totalorder %s24_s25, 2  ;;  %p43_p1 = scmp.ne.s32.totalorder %s2728_s19, %s2724_s18 }
   0x6   : > { %p44_p2 = scmp.eq.s32.totalorder %s2748_s24, 0  ;;  %s36_s30 = sadd.s32 1, %s2728_s19 }
   0x7   : > { %s4094_s25 = smov (%p25_p0, %s24_s25), 0  ;;  %s4096_s26 = smov (!%p25_p0, %s27_s26), %s2744_s23 }
   0x8   : > { %p45_p3 = por %p44_p2, %p43_p1  ;;  %p29_p4 = scmp.ge.s32.totalorder %s4096_s26, 2 }
   0x9   : > { %s32_s27 = ssub.s32 %s2740_s22, %s4094_s25  ;;  %p2185_p6 = scmp.ge.s32.totalorder %s2748_s24, 4 }
   0xa   : > { %s4098_s26 = smov (%p29_p4, %s4096_s26), 0 }
   0xb   : > { %s31_s28 = ssub.s32 %s2744_s23, %s4098_s26  ;;  %193 = sbr.rel (%p2185_p6) target bundleno = 39 (0x27), region = 28 }
   0xc   : > { %s33_s29 = sor.u32 %s32_s27, %s31_s28 }
   0xd   : > { %p34_p5 = scmp.eq.s32.totalorder %s33_s29, 0 }
   0xf   : > { %s2832_s6 = scalar_select %p34_p5, %s2728_s19, %s36_s30  }
  0x10   : > { %196 = sbr.rel (!%p45_p3) target bundleno = 39 (0x27), region = 32  ;;  %s198_s7 = sand.u32 (%p45_p3), 1, %s2728_s19  }
  0x11   : > { %s2188_s8 = sshll.u32 (%p45_p3), %s2740_s22, 1  ;;  %s2186_s9 = sshll.u32 (%p45_p3), %s198_s7, 8 }
  0x12   : > { %s2252_s10 = sshll.u32 (%p45_p3), %s2744_s23, 7  ;;  %s2846_s16 = scalar_lea.vmem (%p45_p3), [#allocation3], %s2186_s9 }
  0x13   : > { %s204_s11 = sadd.s32 (%p45_p3), %s2252_s10, %s2188_s8 }
  0x14   : > { %s2190_s12 = sshll.u32 (%p45_p3), %s204_s11, 2 }
  0x15   : > { %s2841_s15 = scalar_lea.vmem %s4039_s0, %s2190_s12 }
  0x16   : > { %v297_v0 = vld [vmem:[%s2841_s15] sm:$0xff]  ;;  %v299_v1 = vld [vmem:[%s2841_s15 + $0x10] sm:$0xff] }
  0x17   : > { %v301_v2 = vld [vmem:[%s2841_s15 + $0x20] sm:$0xff]  ;;  %298 = vst [vmem:[%s2846_s16] sm:$0xff] %v297_v0  ;;  %300 = vst [vmem:[%s2846_s16 + $0x8] sm:$0xff] %v299_v1  ;;  %v303_v3 = vld [vmem:[%s2841_s15 + $0x30] sm:$0xff] }
  0x18   : > { %302 = vst [vmem:[%s2846_s16 + $0x10] sm:$0xff] %v301_v2  ;;  %v305_v4 = vld [vmem:[%s2841_s15 + $0x40] sm:$0xff]  ;;  %v307_v5 = vld [vmem:[%s2841_s15 + $0x50] sm:$0xff]  ;;  %304 = vst [vmem:[%s2846_s16 + $0x18] sm:$0xff] %v303_v3 }
  0x19   : > { %306 = vst [vmem:[%s2846_s16 + $0x20] sm:$0xff] %v305_v4  ;;  %308 = vst [vmem:[%s2846_s16 + $0x28] sm:$0xff] %v307_v5  ;;  %v309_v6 = vld [vmem:[%s2841_s15 + $0x60] sm:$0xff]  ;;  %v311_v7 = vld [vmem:[%s2841_s15 + $0x70] sm:$0xff] }
  0x1a   : > { %v313_v8 = vld [vmem:[%s2841_s15 + $0x80] sm:$0xff]  ;;  %310 = vst [vmem:[%s2846_s16 + $0x30] sm:$0xff] %v309_v6  ;;  %312 = vst [vmem:[%s2846_s16 + $0x38] sm:$0xff] %v311_v7  ;;  %v315_v9 = vld [vmem:[%s2841_s15 + $0x90] sm:$0xff] }
  0x1b   : > { %314 = vst [vmem:[%s2846_s16 + $0x40] sm:$0xff] %v313_v8  ;;  %v317_v10 = vld [vmem:[%s2841_s15 + $0xa0] sm:$0xff]  ;;  %v319_v11 = vld [vmem:[%s2841_s15 + $0xb0] sm:$0xff]  ;;  %316 = vst [vmem:[%s2846_s16 + $0x48] sm:$0xff] %v315_v9 }
  0x1c   : > { %318 = vst [vmem:[%s2846_s16 + $0x50] sm:$0xff] %v317_v10  ;;  %320 = vst [vmem:[%s2846_s16 + $0x58] sm:$0xff] %v319_v11  ;;  %v321_v12 = vld [vmem:[%s2841_s15 + $0xc0] sm:$0xff]  ;;  %v323_v13 = vld [vmem:[%s2841_s15 + $0xd0] sm:$0xff] }
  0x1d   : > { %v325_v14 = vld [vmem:[%s2841_s15 + $0xe0] sm:$0xff]  ;;  %322 = vst [vmem:[%s2846_s16 + $0x60] sm:$0xff] %v321_v12  ;;  %324 = vst [vmem:[%s2846_s16 + $0x68] sm:$0xff] %v323_v13  ;;  %v327_v15 = vld [vmem:[%s2841_s15 + $0xf0] sm:$0xff] }
  0x1e   : > { %326 = vst [vmem:[%s2846_s16 + $0x70] sm:$0xff] %v325_v14  ;;  %v329_v16 = vld [vmem:[%s2841_s15 + $0x100] sm:$0xff]  ;;  %v331_v17 = vld [vmem:[%s2841_s15 + $0x110] sm:$0xff]  ;;  %328 = vst [vmem:[%s2846_s16 + $0x78] sm:$0xff] %v327_v15 }
  0x1f   : > { %330 = vst [vmem:[%s2846_s16 + $0x80] sm:$0xff] %v329_v16  ;;  %332 = vst [vmem:[%s2846_s16 + $0x88] sm:$0xff] %v331_v17  ;;  %v333_v18 = vld [vmem:[%s2841_s15 + $0x120] sm:$0xff]  ;;  %v335_v19 = vld [vmem:[%s2841_s15 + $0x130] sm:$0xff] }
  0x20   : > { %v337_v20 = vld [vmem:[%s2841_s15 + $0x140] sm:$0xff]  ;;  %334 = vst [vmem:[%s2846_s16 + $0x90] sm:$0xff] %v333_v18  ;;  %336 = vst [vmem:[%s2846_s16 + $0x98] sm:$0xff] %v335_v19  ;;  %v339_v21 = vld [vmem:[%s2841_s15 + $0x150] sm:$0xff] }
  0x21   : > { %338 = vst [vmem:[%s2846_s16 + $0xa0] sm:$0xff] %v337_v20  ;;  %v341_v22 = vld [vmem:[%s2841_s15 + $0x160] sm:$0xff]  ;;  %v343_v23 = vld [vmem:[%s2841_s15 + $0x170] sm:$0xff]  ;;  %340 = vst [vmem:[%s2846_s16 + $0xa8] sm:$0xff] %v339_v21 }
  0x22   : > { %342 = vst [vmem:[%s2846_s16 + $0xb0] sm:$0xff] %v341_v22  ;;  %344 = vst [vmem:[%s2846_s16 + $0xb8] sm:$0xff] %v343_v23  ;;  %v345_v24 = vld [vmem:[%s2841_s15 + $0x180] sm:$0xff]  ;;  %v347_v25 = vld [vmem:[%s2841_s15 + $0x190] sm:$0xff] }
  0x23   : > { %v349_v26 = vld [vmem:[%s2841_s15 + $0x1a0] sm:$0xff]  ;;  %346 = vst [vmem:[%s2846_s16 + $0xc0] sm:$0xff] %v345_v24  ;;  %348 = vst [vmem:[%s2846_s16 + $0xc8] sm:$0xff] %v347_v25  ;;  %v351_v27 = vld [vmem:[%s2841_s15 + $0x1b0] sm:$0xff] }
  0x24   : > { %350 = vst [vmem:[%s2846_s16 + $0xd0] sm:$0xff] %v349_v26  ;;  %v353_v28 = vld [vmem:[%s2841_s15 + $0x1c0] sm:$0xff]  ;;  %v355_v29 = vld [vmem:[%s2841_s15 + $0x1d0] sm:$0xff]  ;;  %352 = vst [vmem:[%s2846_s16 + $0xd8] sm:$0xff] %v351_v27 }
  0x25   : > { %354 = vst [vmem:[%s2846_s16 + $0xe0] sm:$0xff] %v353_v28  ;;  %356 = vst [vmem:[%s2846_s16 + $0xe8] sm:$0xff] %v355_v29  ;;  %v357_v30 = vld [vmem:[%s2841_s15 + $0x1e0] sm:$0xff]  ;;  %v359_v31 = vld [vmem:[%s2841_s15 + $0x1f0] sm:$0xff] }
  0x26   : > { %358 = vst [vmem:[%s2846_s16 + $0xf0] sm:$0xff] %v357_v30  ;;  %360 = vst [vmem:[%s2846_s16 + $0xf8] sm:$0xff] %v359_v31 }
  0x27 PF: > { %p2191_p7 = scmp.ge.s32.totalorder %s2748_s24, 1  ;;  %p374_p8 = scmp.lt.s32.totalorder %s2748_s24, 5 }
  0x29   : > { %p375_p9 = pnand %p2191_p7, %p374_p8 }
  0x2a   : > { %s381_s17 = sand.u32 (!%p375_p9), 1, %s2724_s18   ;;  %s2193_s27 = sshll.u32 (!%p375_p9), %s2732_s20, 5 }
  0x2b   : > { %378 = sbr.rel (%p375_p9) target bundleno = 1062 (0x426), region = 74  ;;  %s2192_s28 = sshll.u32 (!%p375_p9), %s381_s17, 8 }
  0x2c   : > { %p416_p10 = scmp.lt.s32.totalorder (!%p375_p9), %s2193_s27, 63  ;;  %s2195_s29 = sshll.u32 (!%p375_p9), %s2736_s21, 5 }
  0x2d   : > { %p422_p11 = scmp.lt.s32.totalorder (!%p375_p9), %s2195_s29, 63  ;;  %s2924_s18 = scalar_lea.vmem (!%p375_p9), [#allocation3], %s2192_s28 }
  0x2e   : > { %p2197_p12 = scmp.ne.s32.totalorder (!%p375_p9), %s2732_s20, 0 }
  0x30   : > { %s4100_s27 = smov (!%p416_p10, %s2193_s27), 63  ;;  %s4102_s29 = smov (!%p422_p11, %s2195_s29), 63 }
  0x31   : > { %s2194_s30 = sshll.u32 %s4100_s27, 2  ;;  %s2196_s10 = sshll.u32 %s4102_s29, 3 }
  0x32   : > { %s2917_s9 = scalar_lea.vmem %s4040_s1, %s2194_s30  ;;  %s2922_s13 = scalar_lea.vmem %s4044_s5, %s2196_s10 }
  0x33   : > { %431 = sbr.rel (%p2197_p12) target bundleno = 73 (0x49), region = 82 }
  0x38   : > { %v2750_v32 = vmov 0.0  }
  0x39   : > { %432 = vst [vmem:[#allocation2 + $0xb0] sm:$0xff] %v2750_v32  ;;  %433 = vst [vmem:[#allocation2] sm:$0xff] %v2750_v32 }
  0x3a   : > { %434 = vst [vmem:[#allocation2 + $0xd8] sm:$0xff] %v2750_v32  ;;  %435 = vst [vmem:[#allocation2 + $0x18] sm:$0xff] %v2750_v32 }
  0x3b   : > { %436 = vst [vmem:[#allocation2 + $0x50] sm:$0xff] %v2750_v32  ;;  %437 = vst [vmem:[#allocation2 + $0x68] sm:$0xff] %v2750_v32 }
  0x3c   : > { %438 = vst [vmem:[#allocation2 + $0x30] sm:$0xff] %v2750_v32  ;;  %439 = vst [vmem:[#allocation2 + $0x48] sm:$0xff] %v2750_v32 }
  0x3d   : > { %440 = vst [vmem:[#allocation2 + $0x80] sm:$0xff] %v2750_v32  ;;  %441 = vst [vmem:[#allocation2 + $0x88] sm:$0xff] %v2750_v32 }
  0x3e   : > { %442 = vst [vmem:[#allocation2 + $0xe8] sm:$0xff] %v2750_v32  ;;  %443 = vst [vmem:[#allocation2 + $0xb8] sm:$0xff] %v2750_v32 }
  0x3f   : > { %444 = vst [vmem:[#allocation2 + $0x60] sm:$0xff] %v2750_v32  ;;  %445 = vst [vmem:[#allocation2 + $0xf0] sm:$0xff] %v2750_v32 }
  0x40   : > { %446 = vst [vmem:[#allocation2 + $0x8] sm:$0xff] %v2750_v32  ;;  %447 = vst [vmem:[#allocation2 + $0x78] sm:$0xff] %v2750_v32 }
  0x41   : > { %448 = vst [vmem:[#allocation2 + $0x38] sm:$0xff] %v2750_v32  ;;  %449 = vst [vmem:[#allocation2 + $0x58] sm:$0xff] %v2750_v32 }
  0x42   : > { %450 = vst [vmem:[#allocation2 + $0x40] sm:$0xff] %v2750_v32  ;;  %451 = vst [vmem:[#allocation2 + $0xc8] sm:$0xff] %v2750_v32 }
  0x43   : > { %452 = vst [vmem:[#allocation2 + $0xe0] sm:$0xff] %v2750_v32  ;;  %453 = vst [vmem:[#allocation2 + $0x90] sm:$0xff] %v2750_v32 }
  0x44   : > { %454 = vst [vmem:[#allocation2 + $0x70] sm:$0xff] %v2750_v32  ;;  %455 = vst [vmem:[#allocation2 + $0xc0] sm:$0xff] %v2750_v32 }
  0x45   : > { %456 = vst [vmem:[#allocation2 + $0xa8] sm:$0xff] %v2750_v32  ;;  %457 = vst [vmem:[#allocation2 + $0xd0] sm:$0xff] %v2750_v32 }
  0x46   : > { %458 = vst [vmem:[#allocation2 + $0x10] sm:$0xff] %v2750_v32  ;;  %459 = vst [vmem:[#allocation2 + $0x28] sm:$0xff] %v2750_v32 }
  0x47   : > { %460 = vst [vmem:[#allocation2 + $0xa0] sm:$0xff] %v2750_v32  ;;  %461 = vst [vmem:[#allocation2 + $0xf8] sm:$0xff] %v2750_v32 }
  0x48   : > { %462 = vst [vmem:[#allocation2 + $0x20] sm:$0xff] %v2750_v32  ;;  %463 = vst [vmem:[#allocation2 + $0x98] sm:$0xff] %v2750_v32 }
  0x49 PF: > { %v2438_v33 = vld [vmem:[%s2917_s9 + $0x78] sm:$0xff]   ;;  %v2440_v35 = vld [vmem:[%s2917_s9 + $0x70] sm:$0xff]   ;;  %v2442_v37 = vld [vmem:[%s2917_s9 + $0x68] sm:$0xff]   ;;  %p2246_p13 = scmp.ne.s32.totalorder %s2732_s20, 1 }
  0x4a   : > { %v2439_v34 = vld [vmem:[%s2917_s9 + $0x38] sm:$0xff]   ;;  %2253 = vmatprep.subr.bf16.mxu0 %v2438_v33  ;;  %2365 = vmatprep.subr.bf16.mxu1 %v2438_v33  ;;  %v2441_v36 = vld [vmem:[%s2917_s9 + $0x30] sm:$0xff]   ;;  %v2443_v38 = vld [vmem:[%s2917_s9 + $0x28] sm:$0xff]  }
  0x4b   : > { %2254 = vmatpush3.bf16.msra.mxu0 %v2439_v34  ;;  %2373 = vmatpush3.bf16.msra.mxu1 %v2439_v34  ;;  %v2444_v39 = vld [vmem:[%s2917_s9 + $0x60] sm:$0xff]   ;;  %v2446_v41 = vld [vmem:[%s2917_s9 + $0x58] sm:$0xff]   ;;  %v2448_v43 = vld [vmem:[%s2917_s9 + $0x50] sm:$0xff]  }
  0x4c   : > { %2255 = vmatprep.subr.bf16.mxu0 %v2440_v35  ;;  %2366 = vmatprep.subr.bf16.mxu1 %v2440_v35  ;;  %v2445_v40 = vld [vmem:[%s2917_s9 + $0x20] sm:$0xff]   ;;  %v2447_v42 = vld [vmem:[%s2917_s9 + $0x18] sm:$0xff]   ;;  %v2449_v46 = vld [vmem:[%s2917_s9 + $0x10] sm:$0xff]  }
  0x4d   : > { %v2456_v44 = vld [vmem:[%s2924_s18 + $0x4] ss:$8 sps:$4 sm:$0xff]   ;;  %v2454_v51 = vld [vmem:[%s2924_s18] ss:$8 sps:$4 sm:$0xff]   ;;  %v2460_v53 = vld [vmem:[%s2924_s18 + $0x14] ss:$8 sps:$4 sm:$0xff]  }
  0x4e   : > { %v2459_v45 = vld [vmem:[%s2924_s18 + $0x84] ss:$8 sps:$4 sm:$0xff]   ;;  %848 = vmatprep.mubr.bf16.mxu0 %v2456_v44  ;;  %v2457_v52 = vld [vmem:[%s2924_s18 + $0x80] ss:$8 sps:$4 sm:$0xff]   ;;  %v2462_v54 = vld [vmem:[%s2924_s18 + $0x94] ss:$8 sps:$4 sm:$0xff]  }
  0x4f   : > { %2256 = vmatpush3.bf16.msra.mxu0 %v2441_v36  ;;  %2374 = vmatpush3.bf16.msra.mxu1 %v2441_v36  ;;  %v2450_v47 = vld [vmem:[%s2917_s9 + $0x48] sm:$0xff]   ;;  %v2452_v49 = vld [vmem:[%s2917_s9 + $0x40] sm:$0xff]   ;;  %v2464_v55 = vld [vmem:[%s2924_s18 + $0x10] ss:$8 sps:$4 sm:$0xff]  }
  0x50   : > { %2257 = vmatprep.subr.bf16.mxu0 %v2442_v37  ;;  %2367 = vmatprep.subr.bf16.mxu1 %v2442_v37  ;;  %v2451_v48 = vld [vmem:[%s2917_s9 + $0x8] sm:$0xff]   ;;  %v2453_v50 = vld [vmem:[%s2917_s9] sm:$0xff]   ;;  %v2465_v56 = vld [vmem:[%s2924_s18 + $0x90] ss:$8 sps:$4 sm:$0xff]  }
  0x51   : > { %912 = vmatprep.mubr.bf16.mxu1 %v2459_v45  ;;  %v2466_v57 = vld [vmem:[%s2924_s18 + $0x24] ss:$8 sps:$4 sm:$0xff]   ;;  %v2470_v59 = vld [vmem:[%s2924_s18 + $0x20] ss:$8 sps:$4 sm:$0xff]   ;;  %v2472_v61 = vld [vmem:[%s2924_s18 + $0x34] ss:$8 sps:$4 sm:$0xff]  }
  0x52   : > { %v2468_v58 = vld [vmem:[%s2924_s18 + $0xa4] ss:$8 sps:$4 sm:$0xff]   ;;  %v2471_v60 = vld [vmem:[%s2924_s18 + $0xa0] ss:$8 sps:$4 sm:$0xff]   ;;  %v2474_v62 = vld [vmem:[%s2924_s18 + $0xb4] ss:$8 sps:$4 sm:$0xff]  }
  0x53   : > { %2258 = vmatpush3.bf16.msra.mxu0 %v2443_v38  ;;  %2375 = vmatpush3.bf16.msra.mxu1 %v2443_v38  ;;  %v2476_v63 = vld [vmem:[%s2924_s18 + $0x30] ss:$8 sps:$4 sm:$0xff]   ;;  %v2478_v1 = vld [vmem:[%s2924_s18 + $0x44] ss:$8 sps:$4 sm:$0xff]   ;;  %v2482_v3 = vld [vmem:[%s2924_s18 + $0x40] ss:$8 sps:$4 sm:$0xff]  }
  0x54   : > { %2259 = vmatprep.subr.bf16.mxu0 %v2444_v39  ;;  %2368 = vmatprep.subr.bf16.mxu1 %v2444_v39  ;;  %v2477_v0 = vld [vmem:[%s2924_s18 + $0xb0] ss:$8 sps:$4 sm:$0xff]   ;;  %v2480_v2 = vld [vmem:[%s2924_s18 + $0xc4] ss:$8 sps:$4 sm:$0xff]   ;;  %v2483_v4 = vld [vmem:[%s2924_s18 + $0xc0] ss:$8 sps:$4 sm:$0xff]  }
  0x55   : > { %v2484_v5 = vld [vmem:[%s2924_s18 + $0x54] ss:$8 sps:$4 sm:$0xff]   ;;  %v2488_v7 = vld [vmem:[%s2924_s18 + $0x50] ss:$8 sps:$4 sm:$0xff]   ;;  %v2490_v9 = vld [vmem:[%s2924_s18 + $0x64] ss:$8 sps:$4 sm:$0xff]  }
  0x56   : > { %v2486_v6 = vld [vmem:[%s2924_s18 + $0xd4] ss:$8 sps:$4 sm:$0xff]   ;;  %v2489_v8 = vld [vmem:[%s2924_s18 + $0xd0] ss:$8 sps:$4 sm:$0xff]   ;;  %v2492_v10 = vld [vmem:[%s2924_s18 + $0xe4] ss:$8 sps:$4 sm:$0xff]  }
  0x57   : > { %2260 = vmatpush3.bf16.msra.mxu0 %v2445_v40  ;;  %2376 = vmatpush3.bf16.msra.mxu1 %v2445_v40  ;;  %v2494_v11 = vld [vmem:[%s2924_s18 + $0x60] ss:$8 sps:$4 sm:$0xff]   ;;  %v2496_v13 = vld [vmem:[%s2924_s18 + $0x74] ss:$8 sps:$4 sm:$0xff]   ;;  %v2500_v15 = vld [vmem:[%s2924_s18 + $0x70] ss:$8 sps:$4 sm:$0xff]  }
  0x58   : > { %2261 = vmatprep.subr.bf16.mxu0 %v2446_v41  ;;  %2369 = vmatprep.subr.bf16.mxu1 %v2446_v41  ;;  %v2495_v12 = vld [vmem:[%s2924_s18 + $0xe0] ss:$8 sps:$4 sm:$0xff]   ;;  %v2498_v14 = vld [vmem:[%s2924_s18 + $0xf4] ss:$8 sps:$4 sm:$0xff]   ;;  %v2501_v16 = vld [vmem:[%s2924_s18 + $0xf0] ss:$8 sps:$4 sm:$0xff]  }
  0x59   : > { %v464_v19 = vld [vmem:[#allocation2 + $0xb0] sm:$0xff]  ;;  %v480_v21 = vld [vmem:[#allocation2 + $0x38] sm:$0xff]  ;;  %v465_v29 = vld [vmem:[#allocation2] sm:$0xff] }
  0x5a   : > { %v481_v31 = vld [vmem:[#allocation2 + $0x58] sm:$0xff]  ;;  %v482_v41 = vld [vmem:[#allocation2 + $0x40] sm:$0xff] }
  0x5b   : > { %2262 = vmatpush3.bf16.msra.mxu0 %v2447_v42  ;;  %2377 = vmatpush3.bf16.msra.mxu1 %v2447_v42  ;;  %v466_v39 = vld [vmem:[#allocation2 + $0xd8] sm:$0xff] }
  0x5c   : > { %2263 = vmatprep.subr.bf16.mxu0 %v2448_v43  ;;  %2370 = vmatprep.subr.bf16.mxu1 %v2448_v43 }
  0x5f   : > { %2264 = vmatpush3.bf16.msra.mxu0 %v2449_v46  ;;  %2378 = vmatpush3.bf16.msra.mxu1 %v2449_v46 }
  0x60   : > { %2265 = vmatprep.subr.bf16.mxu0 %v2450_v47  ;;  %2371 = vmatprep.subr.bf16.mxu1 %v2450_v47 }
  0x63   : > { %2266 = vmatpush3.bf16.msra.mxu0 %v2451_v48  ;;  %2379 = vmatpush3.bf16.msra.mxu1 %v2451_v48 }
  0x64   : > { %2267 = vmatprep.subr.bf16.mxu0 %v2452_v49  ;;  %2372 = vmatprep.subr.bf16.mxu1 %v2452_v49  ;;  %v467_v49 = vld [vmem:[#allocation2 + $0x18] sm:$0xff] }
  0x67   : > { %2268 = vmatpush3.bf16.msra.mxu0 %v2453_v50  ;;  %2380 = vmatpush3.bf16.msra.mxu1 %v2453_v50 }
  0x6a   : > { %849 = vmatmul.mubr.bf16.vlgmr.msra.gmra.mxu0 %v2454_v51  ;;  %913 = vmatmul.mubr.bf16.vlgmr.msra.gmra.mxu1 %v2457_v52  ;;  %v483_v51 = vld [vmem:[#allocation2 + $0xc8] sm:$0xff] }
  0x6b   : > { %856 = vmatprep.mubr.bf16.mxu0 %v2460_v53  ;;  %920 = vmatprep.mubr.bf16.mxu1 %v2462_v54 }
  0x72   : > { %857 = vmatmul.mubr.bf16.gmra.mxu0 %v2464_v55  ;;  %921 = vmatmul.mubr.bf16.gmra.mxu1 %v2465_v56 }
  0x73   : > { %864 = vmatprep.mubr.bf16.mxu0 %v2466_v57  ;;  %928 = vmatprep.mubr.bf16.mxu1 %v2468_v58 }
  0x7a   : > { %865 = vmatmul.mubr.bf16.gmra.mxu0 %v2470_v59  ;;  %929 = vmatmul.mubr.bf16.gmra.mxu1 %v2471_v60  ;;  %v468_v59 = vld [vmem:[#allocation2 + $0x50] sm:$0xff] }
  0x7b   : > { %872 = vmatprep.mubr.bf16.mxu0 %v2472_v61  ;;  %936 = vmatprep.mubr.bf16.mxu1 %v2474_v62  ;;  %v484_v61 = vld [vmem:[#allocation2 + $0xe0] sm:$0xff] }
  0x82   : > { %873 = vmatmul.mubr.bf16.gmra.mxu0 %v2476_v63  ;;  %937 = vmatmul.mubr.bf16.gmra.mxu1 %v2477_v0 }
  0x83   : > { %880 = vmatprep.mubr.bf16.mxu0 %v2478_v1  ;;  %944 = vmatprep.mubr.bf16.mxu1 %v2480_v2 }
  0x8a   : > { %881 = vmatmul.mubr.bf16.gmra.mxu0 %v2482_v3  ;;  %945 = vmatmul.mubr.bf16.gmra.mxu1 %v2483_v4 }
  0x8b   : > { %888 = vmatprep.mubr.bf16.mxu0 %v2484_v5  ;;  %952 = vmatprep.mubr.bf16.mxu1 %v2486_v6  ;;  %v469_v5 = vld [vmem:[#allocation2 + $0x68] sm:$0xff] }
  0x92   : > { %889 = vmatmul.mubr.bf16.gmra.mxu0 %v2488_v7  ;;  %953 = vmatmul.mubr.bf16.gmra.mxu1 %v2489_v8  ;;  %v485_v7 = vld [vmem:[#allocation2 + $0x90] sm:$0xff] }
  0x93   : > { %896 = vmatprep.mubr.bf16.mxu0 %v2490_v9  ;;  %960 = vmatprep.mubr.bf16.mxu1 %v2492_v10 }
  0x9a   : > { %897 = vmatmul.mubr.bf16.gmra.mxu0 %v2494_v11  ;;  %961 = vmatmul.mubr.bf16.gmra.mxu1 %v2495_v12 }
  0x9b   : > { %904 = vmatprep.mubr.bf16.mxu0 %v2496_v13  ;;  %968 = vmatprep.mubr.bf16.mxu1 %v2498_v14 }
  0xa2   : > { %905 = vmatmul.mubr.bf16.gmra.mxu0 %v2500_v15  ;;  %969 = vmatmul.mubr.bf16.gmra.mxu1 %v2501_v16  ;;  %v470_v15 = vld [vmem:[#allocation2 + $0x30] sm:$0xff] }
 0x12a   : > { %v2269_v17 = vpop.f32.mrf.mxu0  ;;  %v2317_v18 = vpop.f32.mrf.mxu1 }
 0x12c   : > { %v2270_v20 = vpop.f32.mrf.mxu0  ;;  %v2318_v22 = vpop.f32.mrf.mxu1 }
 0x12d   : > { %v2271_v23 = vadd.f32 %v2270_v20, %v2269_v17  ;;  %v2319_v24 = vadd.f32 %v2318_v22, %v2317_v18  ;;  %v486_v17 = vld [vmem:[#allocation2 + $0x70] sm:$0xff] }
 0x12e   : > { %v2272_v25 = vpop.f32.mrf.mxu0  ;;  %v2320_v26 = vpop.f32.mrf.mxu1 }
 0x12f   : > { %v977_v27 = vadd.f32 %v2271_v23, %v464_v19  ;;  %v993_v28 = vadd.f32 %v2319_v24, %v480_v21 }
 0x130   : > { %v2273_v30 = vpop.f32.mrf.mxu0  ;;  %v2321_v32 = vpop.f32.mrf.mxu1 }
 0x131   : > { %1009 = vst [vmem:[#allocation2 + $0xb0] sm:$0xff] %v977_v27  ;;  %1025 = vst [vmem:[#allocation2 + $0x38] sm:$0xff] %v993_v28  ;;  %v2274_v33 = vadd.f32 %v2273_v30, %v2272_v25  ;;  %v2322_v34 = vadd.f32 %v2321_v32, %v2320_v26  ;;  %v471_v25 = vld [vmem:[#allocation2 + $0x48] sm:$0xff]  ;;  %v487_v27 = vld [vmem:[#allocation2 + $0xc0] sm:$0xff] }
 0x132   : > { %v2275_v35 = vpop.f32.mrf.mxu0  ;;  %v2323_v36 = vpop.f32.mrf.mxu1 }
 0x133   : > { %v978_v37 = vadd.f32 %v2274_v33, %v465_v29  ;;  %v994_v38 = vadd.f32 %v2322_v34, %v481_v31 }
 0x134   : > { %v2276_v40 = vpop.f32.mrf.mxu0  ;;  %v2324_v42 = vpop.f32.mrf.mxu1 }
 0x135   : > { %1010 = vst [vmem:[#allocation2] sm:$0xff] %v978_v37  ;;  %1026 = vst [vmem:[#allocation2 + $0x58] sm:$0xff] %v994_v38  ;;  %v2277_v43 = vadd.f32 %v2276_v40, %v2275_v35  ;;  %v2325_v44 = vadd.f32 %v2324_v42, %v2323_v36  ;;  %v472_v35 = vld [vmem:[#allocation2 + $0x80] sm:$0xff]  ;;  %v488_v37 = vld [vmem:[#allocation2 + $0xa8] sm:$0xff] }
 0x136   : > { %v2278_v45 = vpop.f32.mrf.mxu0  ;;  %v2326_v46 = vpop.f32.mrf.mxu1 }
 0x137   : > { %v979_v47 = vadd.f32 %v2277_v43, %v466_v39  ;;  %v995_v48 = vadd.f32 %v2325_v44, %v482_v41 }
 0x138   : > { %v2279_v50 = vpop.f32.mrf.mxu0  ;;  %v2327_v52 = vpop.f32.mrf.mxu1 }
 0x139   : > { %1011 = vst [vmem:[#allocation2 + $0xd8] sm:$0xff] %v979_v47  ;;  %1027 = vst [vmem:[#allocation2 + $0x40] sm:$0xff] %v995_v48  ;;  %v2280_v53 = vadd.f32 %v2279_v50, %v2278_v45  ;;  %v2328_v54 = vadd.f32 %v2327_v52, %v2326_v46  ;;  %v473_v45 = vld [vmem:[#allocation2 + $0x88] sm:$0xff]  ;;  %v489_v47 = vld [vmem:[#allocation2 + $0xd0] sm:$0xff] }
 0x13a   : > { %v2281_v55 = vpop.f32.mrf.mxu0  ;;  %v2329_v56 = vpop.f32.mrf.mxu1 }
 0x13b   : > { %v980_v57 = vadd.f32 %v2280_v53, %v467_v49  ;;  %v996_v58 = vadd.f32 %v2328_v54, %v483_v51 }
 0x13c   : > { %v2282_v60 = vpop.f32.mrf.mxu0  ;;  %v2330_v62 = vpop.f32.mrf.mxu1 }
 0x13d   : > { %1012 = vst [vmem:[#allocation2 + $0x18] sm:$0xff] %v980_v57  ;;  %1028 = vst [vmem:[#allocation2 + $0xc8] sm:$0xff] %v996_v58  ;;  %v2283_v63 = vadd.f32 %v2282_v60, %v2281_v55  ;;  %v2331_v0 = vadd.f32 %v2330_v62, %v2329_v56  ;;  %v474_v55 = vld [vmem:[#allocation2 + $0xe8] sm:$0xff]  ;;  %v490_v57 = vld [vmem:[#allocation2 + $0x10] sm:$0xff] }
 0x13e   : > { %v2284_v1 = vpop.f32.mrf.mxu0  ;;  %v2332_v2 = vpop.f32.mrf.mxu1 }
 0x13f   : > { %v981_v3 = vadd.f32 %v2283_v63, %v468_v59  ;;  %v997_v4 = vadd.f32 %v2331_v0, %v484_v61 }
 0x140   : > { %v2285_v6 = vpop.f32.mrf.mxu0  ;;  %v2333_v8 = vpop.f32.mrf.mxu1 }
 0x141   : > { %1013 = vst [vmem:[#allocation2 + $0x50] sm:$0xff] %v981_v3  ;;  %1029 = vst [vmem:[#allocation2 + $0xe0] sm:$0xff] %v997_v4  ;;  %v2286_v9 = vadd.f32 %v2285_v6, %v2284_v1  ;;  %v2334_v10 = vadd.f32 %v2333_v8, %v2332_v2  ;;  %v475_v1 = vld [vmem:[#allocation2 + $0xb8] sm:$0xff]  ;;  %v491_v3 = vld [vmem:[#allocation2 + $0x28] sm:$0xff] }
 0x142   : > { %v2287_v11 = vpop.f32.mrf.mxu0  ;;  %v2335_v12 = vpop.f32.mrf.mxu1 }
 0x143   : > { %v982_v13 = vadd.f32 %v2286_v9, %v469_v5  ;;  %v998_v14 = vadd.f32 %v2334_v10, %v485_v7 }
 0x144   : > { %v2288_v16 = vpop.f32.mrf.mxu0  ;;  %v2336_v18 = vpop.f32.mrf.mxu1 }
 0x145   : > { %1014 = vst [vmem:[#allocation2 + $0x68] sm:$0xff] %v982_v13  ;;  %1030 = vst [vmem:[#allocation2 + $0x90] sm:$0xff] %v998_v14  ;;  %v2289_v19 = vadd.f32 %v2288_v16, %v2287_v11  ;;  %v2337_v20 = vadd.f32 %v2336_v18, %v2335_v12  ;;  %v476_v11 = vld [vmem:[#allocation2 + $0x60] sm:$0xff] }
 0x146   : > { %v2290_v21 = vpop.f32.mrf.mxu0  ;;  %v2338_v22 = vpop.f32.mrf.mxu1  ;;  %v492_v13 = vld [vmem:[#allocation2 + $0xa0] sm:$0xff] }
 0x147   : > { %v983_v23 = vadd.f32 %v2289_v19, %v470_v15  ;;  %v999_v24 = vadd.f32 %v2337_v20, %v486_v17 }
 0x148   : > { %v2291_v26 = vpop.f32.mrf.mxu0  ;;  %v2339_v28 = vpop.f32.mrf.mxu1 }
 0x149   : > { %1015 = vst [vmem:[#allocation2 + $0x30] sm:$0xff] %v983_v23  ;;  %1031 = vst [vmem:[#allocation2 + $0x70] sm:$0xff] %v999_v24  ;;  %v2292_v29 = vadd.f32 %v2291_v26, %v2290_v21  ;;  %v2340_v30 = vadd.f32 %v2339_v28, %v2338_v22  ;;  %v477_v21 = vld [vmem:[#allocation2 + $0xf0] sm:$0xff]  ;;  %v493_v23 = vld [vmem:[#allocation2 + $0xf8] sm:$0xff] }
 0x14a   : > { %v2293_v31 = vpop.f32.mrf.mxu0  ;;  %v2341_v32 = vpop.f32.mrf.mxu1 }
 0x14b   : > { %v984_v33 = vadd.f32 %v2292_v29, %v471_v25  ;;  %v1000_v34 = vadd.f32 %v2340_v30, %v487_v27 }
 0x14c   : > { %v2294_v36 = vpop.f32.mrf.mxu0  ;;  %v2342_v38 = vpop.f32.mrf.mxu1 }
 0x14d   : > { %1016 = vst [vmem:[#allocation2 + $0x48] sm:$0xff] %v984_v33  ;;  %1032 = vst [vmem:[#allocation2 + $0xc0] sm:$0xff] %v1000_v34  ;;  %v2295_v39 = vadd.f32 %v2294_v36, %v2293_v31  ;;  %v2343_v40 = vadd.f32 %v2342_v38, %v2341_v32  ;;  %v478_v31 = vld [vmem:[#allocation2 + $0x8] sm:$0xff]  ;;  %v494_v33 = vld [vmem:[#allocation2 + $0x20] sm:$0xff] }
 0x14e   : > { %v2296_v41 = vpop.f32.mrf.mxu0  ;;  %v2344_v42 = vpop.f32.mrf.mxu1 }
 0x14f   : > { %v985_v43 = vadd.f32 %v2295_v39, %v472_v35  ;;  %v1001_v44 = vadd.f32 %v2343_v40, %v488_v37 }
 0x150   : > { %v2297_v46 = vpop.f32.mrf.mxu0  ;;  %v2345_v48 = vpop.f32.mrf.mxu1 }
 0x151   : > { %1017 = vst [vmem:[#allocation2 + $0x80] sm:$0xff] %v985_v43  ;;  %1033 = vst [vmem:[#allocation2 + $0xa8] sm:$0xff] %v1001_v44  ;;  %v2298_v49 = vadd.f32 %v2297_v46, %v2296_v41  ;;  %v2346_v50 = vadd.f32 %v2345_v48, %v2344_v42  ;;  %v479_v41 = vld [vmem:[#allocation2 + $0x78] sm:$0xff] }
 0x152   : > { %v2299_v51 = vpop.f32.mrf.mxu0  ;;  %v2347_v52 = vpop.f32.mrf.mxu1  ;;  %v495_v43 = vld [vmem:[#allocation2 + $0x98] sm:$0xff] }
 0x153   : > { %v986_v53 = vadd.f32 %v2298_v49, %v473_v45  ;;  %v1002_v54 = vadd.f32 %v2346_v50, %v489_v47 }
 0x154   : > { %v2300_v56 = vpop.f32.mrf.mxu0  ;;  %v2348_v58 = vpop.f32.mrf.mxu1 }
 0x155   : > { %1018 = vst [vmem:[#allocation2 + $0x88] sm:$0xff] %v986_v53  ;;  %1034 = vst [vmem:[#allocation2 + $0xd0] sm:$0xff] %v1002_v54  ;;  %v2301_v59 = vadd.f32 %v2300_v56, %v2299_v51  ;;  %v2349_v60 = vadd.f32 %v2348_v58, %v2347_v52 }
 0x156   : > { %v2302_v61 = vpop.f32.mrf.mxu0  ;;  %v2350_v62 = vpop.f32.mrf.mxu1 }
 0x157   : > { %v987_v63 = vadd.f32 %v2301_v59, %v474_v55  ;;  %v1003_v0 = vadd.f32 %v2349_v60, %v490_v57 }
 0x158   : > { %v2303_v2 = vpop.f32.mrf.mxu0  ;;  %v2351_v4 = vpop.f32.mrf.mxu1 }
 0x159   : > { %1019 = vst [vmem:[#allocation2 + $0xe8] sm:$0xff] %v987_v63  ;;  %1035 = vst [vmem:[#allocation2 + $0x10] sm:$0xff] %v1003_v0  ;;  %v2304_v5 = vadd.f32 %v2303_v2, %v2302_v61  ;;  %v2352_v6 = vadd.f32 %v2351_v4, %v2350_v62 }
 0x15a   : > { %v2305_v7 = vpop.f32.mrf.mxu0  ;;  %v2353_v8 = vpop.f32.mrf.mxu1 }
 0x15b   : > { %v988_v9 = vadd.f32 %v2304_v5, %v475_v1  ;;  %v1004_v10 = vadd.f32 %v2352_v6, %v491_v3 }
 0x15c   : > { %v2306_v12 = vpop.f32.mrf.mxu0  ;;  %v2354_v14 = vpop.f32.mrf.mxu1 }
 0x15d   : > { %1020 = vst [vmem:[#allocation2 + $0xb8] sm:$0xff] %v988_v9  ;;  %1036 = vst [vmem:[#allocation2 + $0x28] sm:$0xff] %v1004_v10  ;;  %v2307_v15 = vadd.f32 %v2306_v12, %v2305_v7  ;;  %v2355_v16 = vadd.f32 %v2354_v14, %v2353_v8 }
 0x15e   : > { %v2308_v17 = vpop.f32.mrf.mxu0  ;;  %v2356_v18 = vpop.f32.mrf.mxu1 }
 0x15f   : > { %v989_v19 = vadd.f32 %v2307_v15, %v476_v11  ;;  %v1005_v20 = vadd.f32 %v2355_v16, %v492_v13 }
 0x160   : > { %v2309_v22 = vpop.f32.mrf.mxu0  ;;  %v2357_v24 = vpop.f32.mrf.mxu1 }
 0x161   : > { %1021 = vst [vmem:[#allocation2 + $0x60] sm:$0xff] %v989_v19  ;;  %1037 = vst [vmem:[#allocation2 + $0xa0] sm:$0xff] %v1005_v20  ;;  %v2310_v25 = vadd.f32 %v2309_v22, %v2308_v17  ;;  %v2358_v26 = vadd.f32 %v2357_v24, %v2356_v18 }
 0x162   : > { %v2311_v27 = vpop.f32.mrf.mxu0  ;;  %v2359_v28 = vpop.f32.mrf.mxu1 }
 0x163   : > { %v990_v29 = vadd.f32 %v2310_v25, %v477_v21  ;;  %v1006_v30 = vadd.f32 %v2358_v26, %v493_v23 }
 0x164   : > { %v2312_v32 = vpop.f32.mrf.mxu0  ;;  %v2360_v34 = vpop.f32.mrf.mxu1 }
 0x165   : > { %1022 = vst [vmem:[#allocation2 + $0xf0] sm:$0xff] %v990_v29  ;;  %1038 = vst [vmem:[#allocation2 + $0xf8] sm:$0xff] %v1006_v30  ;;  %v2313_v35 = vadd.f32 %v2312_v32, %v2311_v27  ;;  %v2361_v36 = vadd.f32 %v2360_v34, %v2359_v28 }
 0x166   : > { %v2314_v37 = vpop.f32.mrf.mxu0  ;;  %v2362_v38 = vpop.f32.mrf.mxu1 }
 0x167   : > { %v991_v39 = vadd.f32 %v2313_v35, %v478_v31  ;;  %v1007_v40 = vadd.f32 %v2361_v36, %v494_v33 }
 0x168   : > { %v2315_v42 = vpop.f32.mrf.mxu0  ;;  %v2363_v44 = vpop.f32.mrf.mxu1 }
 0x169   : > { %1023 = vst [vmem:[#allocation2 + $0x8] sm:$0xff] %v991_v39  ;;  %1039 = vst [vmem:[#allocation2 + $0x20] sm:$0xff] %v1007_v40  ;;  %v2316_v45 = vadd.f32 %v2315_v42, %v2314_v37  ;;  %v2364_v46 = vadd.f32 %v2363_v44, %v2362_v38  ;;  %1044 = sbr.rel (%p2246_p13) target bundleno = 1062 (0x426), region = 86 }
 0x16b   : > { %v992_v47 = vadd.f32 %v2316_v45, %v479_v41  ;;  %v1008_v48 = vadd.f32 %v2364_v46, %v495_v43 }
 0x16d   : > { %1024 = vst [vmem:[#allocation2 + $0x78] sm:$0xff] %v992_v47  ;;  %1040 = vst [vmem:[#allocation2 + $0x98] sm:$0xff] %v1008_v48 }
 0x16e   : > { %v1045_v49 = vld [vmem:[#allocation2 + $0xb0] sm:$0xff]  ;;  %v2979_v50 = vld [vmem:[%s4041_s2] ss:$0 sm:$0xff]  ;;  %v1118_v51 = vlaneseq  ;;  %v1047_v52 = vld [vmem:[#allocation2 + $0xd8] sm:$0xff] }
 0x16f   : > { %v2982_v53 = vadd.f32 %v2979_v50, %v1045_v49  ;;  %v2985_v54 = vadd.f32 %v2979_v50, %v1047_v52  ;;  %v1046_v55 = vld [vmem:[#allocation2] sm:$0xff]  ;;  %v1048_v56 = vld [vmem:[#allocation2 + $0x18] sm:$0xff]  ;;  %v1049_v60 = vld [vmem:[#allocation2 + $0x50] sm:$0xff] }
 0x170   : > { %v2987_v57 = vand.u32 127, %v1118_v51  ;;  %v2990_v58 = vadd.f32 %v2979_v50, %v1046_v55  ;;  %v2993_v59 = vadd.f32 %v2979_v50, %v1048_v56  ;;  %v1050_v61 = vld [vmem:[#allocation2 + $0x68] sm:$0xff]  ;;  %v3009_v2 = vadd.f32 %v2979_v50, %v1049_v60  ;;  %v1051_v4 = vld [vmem:[#allocation2 + $0x30] sm:$0xff]  ;;  %v1053_v10 = vld [vmem:[#allocation2 + $0x80] sm:$0xff] }
 0x171   : > { %v3012_v3 = vadd.f32 %v2979_v50, %v1050_v61  ;;  %v1052_v5 = vld [vmem:[#allocation2 + $0x48] sm:$0xff]  ;;  %v3021_v8 = vadd.f32 %v2979_v50, %v1051_v4  ;;  %v3033_v14 = vadd.f32 %v2979_v50, %v1053_v10  ;;  %v1056_v17 = vld [vmem:[#allocation2 + $0xb8] sm:$0xff]  ;;  %v1057_v22 = vld [vmem:[#allocation2 + $0x60] sm:$0xff] }
 0x172   : > { %vm1120_vm0 = vcmp.lt.s32.totalorder %v2987_v57, 4  ;;  %v3024_v9 = vadd.f32 %v2979_v50, %v1052_v5  ;;  %v1054_v11 = vld [vmem:[#allocation2 + $0x88] sm:$0xff]  ;;  %v3048_v21 = vadd.f32 %v2979_v50, %v1056_v17  ;;  %v1058_v23 = vld [vmem:[#allocation2 + $0xf0] sm:$0xff]  ;;  %v3057_v26 = vadd.f32 %v2979_v50, %v1057_v22  ;;  %v1061_v34 = vld [vmem:[#allocation2 + $0x38] sm:$0xff] }
 0x173   : > { %v1121_v62 = vsel %vm1120_vm0, %v2982_v53, 0.0  ;;  %v1123_v63 = vsel %vm1120_vm0, %v2985_v54, 0.0  ;;  %v1122_v0 = vsel %vm1120_vm0, %v2990_v58, 0.0  ;;  %v1124_v1 = vsel %vm1120_vm0, %v2993_v59, 0.0  ;;  %v1055_v16 = vld [vmem:[#allocation2 + $0xe8] sm:$0xff]  ;;  %v1062_v35 = vld [vmem:[#allocation2 + $0x58] sm:$0xff] }
 0x174   : > { %1153 = vadd.xlane.f32.xlu0 %v1121_v62  ;;  %1157 = vadd.xlane.f32.xlu1 %v1123_v63  ;;  %v1125_v6 = vsel %vm1120_vm0, %v3009_v2, 0.0  ;;  %v1126_v7 = vsel %vm1120_vm0, %v3012_v3, 0.0  ;;  %v1127_v12 = vsel %vm1120_vm0, %v3021_v8, 0.0  ;;  %v1128_v13 = vsel %vm1120_vm0, %v3024_v9, 0.0  ;;  %v1059_v28 = vld [vmem:[#allocation2 + $0x8] sm:$0xff]  ;;  %v1060_v29 = vld [vmem:[#allocation2 + $0x78] sm:$0xff] }
 0x175   : > { %v3036_v15 = vadd.f32 %v2979_v50, %v1054_v11  ;;  %v1129_v18 = vsel %vm1120_vm0, %v3033_v14, 0.0  ;;  %v3045_v20 = vadd.f32 %v2979_v50, %v1055_v16  ;;  %v1132_v25 = vsel %vm1120_vm0, %v3048_v21, 0.0  ;;  %v1063_v40 = vld [vmem:[#allocation2 + $0x40] sm:$0xff]  ;;  %v1064_v41 = vld [vmem:[#allocation2 + $0xc8] sm:$0xff]  ;;  %v1066_v47 = vld [vmem:[#allocation2 + $0x90] sm:$0xff] }
 0x176   : > { %v3060_v27 = vadd.f32 %v2979_v50, %v1058_v23  ;;  %v1133_v30 = vsel %vm1120_vm0, %v3057_v26, 0.0  ;;  %v3069_v32 = vadd.f32 %v2979_v50, %v1059_v28  ;;  %v3072_v33 = vadd.f32 %v2979_v50, %v1060_v29  ;;  %v1065_v46 = vld [vmem:[#allocation2 + $0xe0] sm:$0xff]  ;;  %v1067_v55 = vld [vmem:[#allocation2 + $0x70] sm:$0xff]  ;;  %v1072_v11 = vld [vmem:[#allocation2 + $0x28] sm:$0xff] }
 0x177   : > { %v1130_v19 = vsel %vm1120_vm0, %v3036_v15, 0.0  ;;  %v1131_v24 = vsel %vm1120_vm0, %v3045_v20, 0.0  ;;  %v3081_v38 = vadd.f32 %v2979_v50, %v1061_v34  ;;  %v3084_v39 = vadd.f32 %v2979_v50, %v1062_v35  ;;  %v1068_v56 = vld [vmem:[#allocation2 + $0xc0] sm:$0xff]  ;;  %v1071_v10 = vld [vmem:[#allocation2 + $0x10] sm:$0xff]  ;;  %v1076_v29 = vld [vmem:[#allocation2 + $0x98] sm:$0xff] }
 0x178   : > { %1155 = vadd.xlane.f32.xlu0 %v1122_v0  ;;  %1159 = vadd.xlane.f32.xlu1 %v1124_v1  ;;  %v1134_v31 = vsel %vm1120_vm0, %v3060_v27, 0.0  ;;  %v1135_v36 = vsel %vm1120_vm0, %v3069_v32, 0.0  ;;  %v1136_v37 = vsel %vm1120_vm0, %v3072_v33, 0.0  ;;  %v3093_v44 = vadd.f32 %v2979_v50, %v1063_v40  ;;  %v1069_v0 = vld [vmem:[#allocation2 + $0xa8] sm:$0xff]  ;;  %v1070_v1 = vld [vmem:[#allocation2 + $0xd0] sm:$0xff]  ;;  %v1075_v28 = vld [vmem:[#allocation2 + $0x20] sm:$0xff] }
 0x179   : > { %v1137_v42 = vsel %vm1120_vm0, %v3081_v38, 0.0  ;;  %v1138_v43 = vsel %vm1120_vm0, %v3084_v39, 0.0  ;;  %v3096_v45 = vadd.f32 %v2979_v50, %v1064_v41  ;;  %v3105_v51 = vadd.f32 %v2979_v50, %v1065_v46 }
 0x17a   : > { %v1139_v48 = vsel %vm1120_vm0, %v3093_v44, 0.0  ;;  %v3108_v52 = vadd.f32 %v2979_v50, %v1066_v47  ;;  %v3117_v62 = vadd.f32 %v2979_v50, %v1067_v55  ;;  %v3120_v63 = vadd.f32 %v2979_v50, %v1068_v56 }
 0x17b   : > { %v1140_v49 = vsel %vm1120_vm0, %v3096_v45, 0.0  ;;  %v1141_v60 = vsel %vm1120_vm0, %v3105_v51, 0.0  ;;  %v3141_v16 = vadd.f32 %v2979_v50, %v1071_v10  ;;  %v3144_v17 = vadd.f32 %v2979_v50, %v1072_v11 }
 0x17c   : > { %1161 = vadd.xlane.f32.xlu0 %v1125_v6  ;;  %1163 = vadd.xlane.f32.xlu1 %v1126_v7  ;;  %v1142_v61 = vsel %vm1120_vm0, %v3108_v52, 0.0  ;;  %v1143_v4 = vsel %vm1120_vm0, %v3117_v62, 0.0  ;;  %v1144_v5 = vsel %vm1120_vm0, %v3120_v63, 0.0  ;;  %v3129_v6 = vadd.f32 %v2979_v50, %v1069_v0 }
 0x17d   : > { %v3132_v7 = vadd.f32 %v2979_v50, %v1070_v1  ;;  %v1147_v22 = vsel %vm1120_vm0, %v3141_v16, 0.0  ;;  %v1148_v23 = vsel %vm1120_vm0, %v3144_v17, 0.0  ;;  %v3165_v34 = vadd.f32 %v2979_v50, %v1075_v28 }
 0x17e   : > { %v3168_v35 = vadd.f32 %v2979_v50, %v1076_v29 }
 0x180   : > { %1165 = vadd.xlane.f32.xlu0 %v1127_v12  ;;  %1167 = vadd.xlane.f32.xlu1 %v1128_v13  ;;  %v1145_v12 = vsel %vm1120_vm0, %v3129_v6, 0.0  ;;  %v1146_v13 = vsel %vm1120_vm0, %v3132_v7, 0.0 }
 0x184   : > { %1169 = vadd.xlane.f32.xlu0 %v1129_v18  ;;  %1171 = vadd.xlane.f32.xlu1 %v1130_v19  ;;  %v1073_v18 = vld [vmem:[#allocation2 + $0xa0] sm:$0xff]  ;;  %v1074_v19 = vld [vmem:[#allocation2 + $0xf8] sm:$0xff] }
 0x188   : > { %1173 = vadd.xlane.f32.xlu0 %v1131_v24  ;;  %1175 = vadd.xlane.f32.xlu1 %v1132_v25  ;;  %v3153_v24 = vadd.f32 %v2979_v50, %v1073_v18  ;;  %v3156_v25 = vadd.f32 %v2979_v50, %v1074_v19 }
 0x18c   : > { %1177 = vadd.xlane.f32.xlu0 %v1133_v30  ;;  %1179 = vadd.xlane.f32.xlu1 %v1134_v31  ;;  %v1149_v30 = vsel %vm1120_vm0, %v3153_v24, 0.0  ;;  %v1150_v31 = vsel %vm1120_vm0, %v3156_v25, 0.0 }
 0x190   : > { %1181 = vadd.xlane.f32.xlu0 %v1135_v36  ;;  %1183 = vadd.xlane.f32.xlu1 %v1136_v37  ;;  %v1151_v36 = vsel %vm1120_vm0, %v3165_v34, 0.0  ;;  %v1152_v37 = vsel %vm1120_vm0, %v3168_v35, 0.0 }
 0x194   : > { %1185 = vadd.xlane.f32.xlu0 %v1137_v42  ;;  %1187 = vadd.xlane.f32.xlu1 %v1138_v43 }
 0x198   : > { %1189 = vadd.xlane.f32.xlu0 %v1139_v48  ;;  %1191 = vadd.xlane.f32.xlu1 %v1140_v49 }
 0x19c   : > { %1193 = vadd.xlane.f32.xlu0 %v1141_v60  ;;  %1195 = vadd.xlane.f32.xlu1 %v1142_v61 }
 0x1a0   : > { %1197 = vadd.xlane.f32.xlu0 %v1143_v4  ;;  %1199 = vadd.xlane.f32.xlu1 %v1144_v5 }
 0x1a4   : > { %1201 = vadd.xlane.f32.xlu0 %v1145_v12  ;;  %1203 = vadd.xlane.f32.xlu1 %v1146_v13 }
 0x1a8   : > { %1205 = vadd.xlane.f32.xlu0 %v1147_v22  ;;  %1207 = vadd.xlane.f32.xlu1 %v1148_v23 }
 0x1ac   : > { %1209 = vadd.xlane.f32.xlu0 %v1149_v30  ;;  %1211 = vadd.xlane.f32.xlu1 %v1150_v31 }
 0x1b0   : > { %1213 = vadd.xlane.f32.xlu0 %v1151_v36  ;;  %1215 = vadd.xlane.f32.xlu1 %v1152_v37 }
 0x1fd   : > { %v1154_v40 = vpop.xlane.xlu0 %1153  ;;  %v1158_v41 = vpop.xlane.xlu1 %1157 }
 0x1fe   : > { %v1217_v42 = vmul.f32 0.25, %v1154_v40  ;;  %v1219_v43 = vmul.f32 0.25, %v1158_v41 }
 0x200   : > { %v1249_v46 = vsub.f32 %v2982_v53, %v1217_v42  ;;  %v1251_v50 = vsub.f32 %v2985_v54, %v1219_v43 }
 0x201   : > { %v1156_v47 = vpop.xlane.xlu0 %1155  ;;  %v1160_v48 = vpop.xlane.xlu1 %1159 }
 0x202   : > { %v1218_v49 = vmul.f32 0.25, %v1156_v47  ;;  %v1220_v55 = vmul.f32 0.25, %v1160_v48  ;;  %v3180_v56 = vsel %vm1120_vm0, %v1249_v46, 0.0  ;;  %v3184_v60 = vsel %vm1120_vm0, %v1251_v50, 0.0 }
 0x203   : > { %v1313_v61 = vmul.f32 %v3180_v56, %v3180_v56  ;;  %v1315_v4 = vmul.f32 %v3184_v60, %v3184_v60 }
 0x204   : > { %v1250_v0 = vsub.f32 %v2990_v58, %v1218_v49  ;;  %v1252_v53 = vsub.f32 %v2993_v59, %v1220_v55 }
 0x205   : > { %1345 = vadd.xlane.f32.xlu0 %v1313_v61  ;;  %v1162_v54 = vpop.xlane.xlu0 %1161  ;;  %v1164_v1 = vpop.xlane.xlu1 %1163 }
 0x206   : > { %v1221_v5 = vmul.f32 0.25, %v1162_v54  ;;  %v1222_v10 = vmul.f32 0.25, %v1164_v1  ;;  %v3194_v11 = vsel %vm1120_vm0, %v1250_v0, 0.0  ;;  %v3198_v12 = vsel %vm1120_vm0, %v1252_v53, 0.0 }
 0x207   : > { %v1314_v58 = vmul.f32 %v3194_v11, %v3194_v11  ;;  %v1316_v22 = vmul.f32 %v3198_v12, %v3198_v12 }
 0x208   : > { %v1253_v59 = vsub.f32 %v3009_v2, %v1221_v5  ;;  %v1254_v13 = vsub.f32 %v3012_v3, %v1222_v10 }
 0x209   : > { %1349 = vadd.xlane.f32.xlu0 %v1315_v4  ;;  %1347 = vadd.xlane.f32.xlu1 %v1314_v58  ;;  %v1166_v18 = vpop.xlane.xlu0 %1165  ;;  %v1168_v19 = vpop.xlane.xlu1 %1167 }
 0x20a   : > { %v1223_v23 = vmul.f32 0.25, %v1166_v18  ;;  %v1224_v28 = vmul.f32 0.25, %v1168_v19  ;;  %v3208_v29 = vsel %vm1120_vm0, %v1253_v59, 0.0  ;;  %v3212_v30 = vsel %vm1120_vm0, %v1254_v13, 0.0 }
 0x20b   : > { %v1317_v2 = vmul.f32 %v3208_v29, %v3208_v29  ;;  %v1318_v40 = vmul.f32 %v3212_v30, %v3212_v30 }
 0x20c   : > { %v1255_v3 = vsub.f32 %v3021_v8, %v1223_v23  ;;  %v1256_v31 = vsub.f32 %v3024_v9, %v1224_v28 }
 0x20d   : > { %1351 = vadd.xlane.f32.xlu1 %v1316_v22  ;;  %1353 = vadd.xlane.f32.xlu0 %v1317_v2  ;;  %v1170_v36 = vpop.xlane.xlu0 %1169  ;;  %v1172_v37 = vpop.xlane.xlu1 %1171 }
 0x20e   : > { %v1225_v41 = vmul.f32 0.25, %v1170_v36  ;;  %v1226_v42 = vmul.f32 0.25, %v1172_v37  ;;  %v3222_v43 = vsel %vm1120_vm0, %v1255_v3, 0.0  ;;  %v3226_v46 = vsel %vm1120_vm0, %v1256_v31, 0.0 }
 0x20f   : > { %v1319_v8 = vmul.f32 %v3222_v43, %v3222_v43  ;;  %v1320_v49 = vmul.f32 %v3226_v46, %v3226_v46 }
 0x210   : > { %v1257_v9 = vsub.f32 %v3033_v14, %v1225_v41  ;;  %v1258_v50 = vsub.f32 %v3036_v15, %v1226_v42 }
 0x211   : > { %1355 = vadd.xlane.f32.xlu1 %v1318_v40  ;;  %1357 = vadd.xlane.f32.xlu0 %v1319_v8  ;;  %v1174_v47 = vpop.xlane.xlu0 %1173  ;;  %v1176_v48 = vpop.xlane.xlu1 %1175 }
 0x212   : > { %v1227_v55 = vmul.f32 0.25, %v1174_v47  ;;  %v1228_v61 = vmul.f32 0.25, %v1176_v48  ;;  %v3236_v0 = vsel %vm1120_vm0, %v1257_v9, 0.0  ;;  %v3240_v53 = vsel %vm1120_vm0, %v1258_v50, 0.0 }
 0x213   : > { %v1321_v14 = vmul.f32 %v3236_v0, %v3236_v0  ;;  %v1322_v5 = vmul.f32 %v3240_v53, %v3240_v53 }
 0x214   : > { %v1259_v15 = vsub.f32 %v3045_v20, %v1227_v55  ;;  %v1260_v54 = vsub.f32 %v3048_v21, %v1228_v61 }
 0x215   : > { %1359 = vadd.xlane.f32.xlu1 %v1320_v49  ;;  %1361 = vadd.xlane.f32.xlu0 %v1321_v14  ;;  %v1178_v1 = vpop.xlane.xlu0 %1177  ;;  %v1180_v4 = vpop.xlane.xlu1 %1179 }
 0x216   : > { %v1229_v10 = vmul.f32 0.25, %v1178_v1  ;;  %v1230_v58 = vmul.f32 0.25, %v1180_v4  ;;  %v3250_v59 = vsel %vm1120_vm0, %v1259_v15, 0.0  ;;  %v3254_v13 = vsel %vm1120_vm0, %v1260_v54, 0.0 }
 0x217   : > { %v1323_v20 = vmul.f32 %v3250_v59, %v3250_v59  ;;  %v1324_v23 = vmul.f32 %v3254_v13, %v3254_v13 }
 0x218   : > { %v1261_v21 = vsub.f32 %v3057_v26, %v1229_v10  ;;  %v1262_v18 = vsub.f32 %v3060_v27, %v1230_v58 }
 0x219   : > { %1363 = vadd.xlane.f32.xlu1 %v1322_v5  ;;  %1365 = vadd.xlane.f32.xlu0 %v1323_v20  ;;  %v1182_v19 = vpop.xlane.xlu0 %1181  ;;  %v1184_v22 = vpop.xlane.xlu1 %1183 }
 0x21a   : > { %v1231_v28 = vmul.f32 0.25, %v1182_v19  ;;  %v1232_v2 = vmul.f32 0.25, %v1184_v22  ;;  %v3264_v3 = vsel %vm1120_vm0, %v1261_v21, 0.0  ;;  %v3268_v31 = vsel %vm1120_vm0, %v1262_v18, 0.0 }
 0x21b   : > { %v1325_v26 = vmul.f32 %v3264_v3, %v3264_v3  ;;  %v1326_v41 = vmul.f32 %v3268_v31, %v3268_v31 }
 0x21c   : > { %v1263_v27 = vsub.f32 %v3069_v32, %v1231_v28  ;;  %v1264_v36 = vsub.f32 %v3072_v33, %v1232_v2 }
 0x21d   : > { %1367 = vadd.xlane.f32.xlu1 %v1324_v23  ;;  %1369 = vadd.xlane.f32.xlu0 %v1325_v26  ;;  %v1186_v37 = vpop.xlane.xlu0 %1185  ;;  %v1188_v40 = vpop.xlane.xlu1 %1187 }
 0x21e   : > { %v1233_v42 = vmul.f32 0.25, %v1186_v37  ;;  %v1234_v8 = vmul.f32 0.25, %v1188_v40  ;;  %v3278_v9 = vsel %vm1120_vm0, %v1263_v27, 0.0  ;;  %v3282_v50 = vsel %vm1120_vm0, %v1264_v36, 0.0 }
 0x21f   : > { %v1327_v32 = vmul.f32 %v3278_v9, %v3278_v9  ;;  %v1328_v55 = vmul.f32 %v3282_v50, %v3282_v50 }
 0x220   : > { %v1265_v33 = vsub.f32 %v3081_v38, %v1233_v42  ;;  %v1266_v47 = vsub.f32 %v3084_v39, %v1234_v8 }
 0x221   : > { %1371 = vadd.xlane.f32.xlu1 %v1326_v41  ;;  %1373 = vadd.xlane.f32.xlu0 %v1327_v32  ;;  %v1190_v48 = vpop.xlane.xlu0 %1189  ;;  %v1192_v49 = vpop.xlane.xlu1 %1191 }
 0x222   : > { %v1235_v61 = vmul.f32 0.25, %v1190_v48  ;;  %v1236_v14 = vmul.f32 0.25, %v1192_v49  ;;  %v3292_v15 = vsel %vm1120_vm0, %v1265_v33, 0.0  ;;  %v3296_v54 = vsel %vm1120_vm0, %v1266_v47, 0.0 }
 0x223   : > { %v1329_v38 = vmul.f32 %v3292_v15, %v3292_v15  ;;  %v1330_v10 = vmul.f32 %v3296_v54, %v3296_v54 }
 0x224   : > { %v1267_v39 = vsub.f32 %v3093_v44, %v1235_v61  ;;  %v1268_v1 = vsub.f32 %v3096_v45, %v1236_v14 }
 0x225   : > { %1375 = vadd.xlane.f32.xlu1 %v1328_v55  ;;  %1377 = vadd.xlane.f32.xlu0 %v1329_v38  ;;  %v1194_v4 = vpop.xlane.xlu0 %1193  ;;  %v1196_v5 = vpop.xlane.xlu1 %1195 }
 0x226   : > { %v1237_v58 = vmul.f32 0.25, %v1194_v4  ;;  %v1238_v20 = vmul.f32 0.25, %v1196_v5  ;;  %v3306_v21 = vsel %vm1120_vm0, %v1267_v39, 0.0  ;;  %v3310_v18 = vsel %vm1120_vm0, %v1268_v1, 0.0 }
 0x227   : > { %v1331_v44 = vmul.f32 %v3306_v21, %v3306_v21  ;;  %v1332_v28 = vmul.f32 %v3310_v18, %v3310_v18 }
 0x228   : > { %v1269_v45 = vsub.f32 %v3105_v51, %v1237_v58  ;;  %v1270_v19 = vsub.f32 %v3108_v52, %v1238_v20 }
 0x229   : > { %1379 = vadd.xlane.f32.xlu1 %v1330_v10  ;;  %1381 = vadd.xlane.f32.xlu0 %v1331_v44  ;;  %v1198_v22 = vpop.xlane.xlu0 %1197  ;;  %v1200_v23 = vpop.xlane.xlu1 %1199 }
 0x22a   : > { %v1239_v2 = vmul.f32 0.25, %v1198_v22  ;;  %v1240_v26 = vmul.f32 0.25, %v1200_v23  ;;  %v3320_v27 = vsel %vm1120_vm0, %v1269_v45, 0.0  ;;  %v3324_v36 = vsel %vm1120_vm0, %v1270_v19, 0.0 }
 0x22b   : > { %v1333_v51 = vmul.f32 %v3320_v27, %v3320_v27  ;;  %v1334_v42 = vmul.f32 %v3324_v36, %v3324_v36 }
 0x22c   : > { %v1271_v52 = vsub.f32 %v3117_v62, %v1239_v2  ;;  %v1272_v37 = vsub.f32 %v3120_v63, %v1240_v26 }
 0x22d   : > { %1383 = vadd.xlane.f32.xlu1 %v1332_v28  ;;  %1385 = vadd.xlane.f32.xlu0 %v1333_v51  ;;  %v1202_v40 = vpop.xlane.xlu0 %1201  ;;  %v1204_v41 = vpop.xlane.xlu1 %1203 }
 0x22e   : > { %v1241_v8 = vmul.f32 0.25, %v1202_v40  ;;  %v1242_v32 = vmul.f32 0.25, %v1204_v41  ;;  %v3334_v33 = vsel %vm1120_vm0, %v1271_v52, 0.0  ;;  %v3338_v47 = vsel %vm1120_vm0, %v1272_v37, 0.0 }
 0x22f   : > { %v1335_v62 = vmul.f32 %v3334_v33, %v3334_v33  ;;  %v1336_v61 = vmul.f32 %v3338_v47, %v3338_v47 }
 0x230   : > { %v1273_v63 = vsub.f32 %v3129_v6, %v1241_v8  ;;  %v1274_v48 = vsub.f32 %v3132_v7, %v1242_v32 }
 0x231   : > { %1387 = vadd.xlane.f32.xlu1 %v1334_v42  ;;  %1389 = vadd.xlane.f32.xlu0 %v1335_v62  ;;  %v1206_v49 = vpop.xlane.xlu0 %1205  ;;  %v1208_v55 = vpop.xlane.xlu1 %1207 }
 0x232   : > { %v1243_v14 = vmul.f32 0.25, %v1206_v49  ;;  %v1244_v38 = vmul.f32 0.25, %v1208_v55  ;;  %v3348_v39 = vsel %vm1120_vm0, %v1273_v63, 0.0  ;;  %v3352_v1 = vsel %vm1120_vm0, %v1274_v48, 0.0 }
 0x233   : > { %v1337_v6 = vmul.f32 %v3348_v39, %v3348_v39  ;;  %v1338_v58 = vmul.f32 %v3352_v1, %v3352_v1 }
 0x234   : > { %v1275_v7 = vsub.f32 %v3141_v16, %v1243_v14  ;;  %v1276_v4 = vsub.f32 %v3144_v17, %v1244_v38 }
 0x235   : > { %1391 = vadd.xlane.f32.xlu1 %v1336_v61  ;;  %1393 = vadd.xlane.f32.xlu0 %v1337_v6  ;;  %v1210_v5 = vpop.xlane.xlu0 %1209  ;;  %v1212_v10 = vpop.xlane.xlu1 %1211 }
 0x236   : > { %v1245_v20 = vmul.f32 0.25, %v1210_v5  ;;  %v1246_v44 = vmul.f32 0.25, %v1212_v10  ;;  %v3362_v45 = vsel %vm1120_vm0, %v1275_v7, 0.0  ;;  %v3366_v19 = vsel %vm1120_vm0, %v1276_v4, 0.0 }
 0x237   : > { %v1339_v16 = vmul.f32 %v3362_v45, %v3362_v45  ;;  %v1340_v2 = vmul.f32 %v3366_v19, %v3366_v19 }
 0x238   : > { %v1277_v17 = vsub.f32 %v3153_v24, %v1245_v20  ;;  %v1278_v22 = vsub.f32 %v3156_v25, %v1246_v44 }
 0x239   : > { %1395 = vadd.xlane.f32.xlu1 %v1338_v58  ;;  %1397 = vadd.xlane.f32.xlu0 %v1339_v16  ;;  %v1214_v23 = vpop.xlane.xlu0 %1213  ;;  %v1216_v28 = vpop.xlane.xlu1 %1215 }
 0x23a   : > { %v1247_v26 = vmul.f32 0.25, %v1214_v23  ;;  %v1248_v51 = vmul.f32 0.25, %v1216_v28  ;;  %v3376_v52 = vsel %vm1120_vm0, %v1277_v17, 0.0  ;;  %v3380_v37 = vsel %vm1120_vm0, %v1278_v22, 0.0 }
 0x23b   : > { %v1341_v24 = vmul.f32 %v3376_v52, %v3376_v52  ;;  %v1342_v41 = vmul.f32 %v3380_v37, %v3380_v37 }
 0x23c   : > { %v1279_v25 = vsub.f32 %v3165_v34, %v1247_v26  ;;  %v1280_v40 = vsub.f32 %v3168_v35, %v1248_v51 }
 0x23d   : > { %1399 = vadd.xlane.f32.xlu1 %v1340_v2  ;;  %1401 = vadd.xlane.f32.xlu0 %v1341_v24 }
 0x23e   : > { %v3390_v42 = vsel %vm1120_vm0, %v1279_v25, 0.0  ;;  %v3394_v8 = vsel %vm1120_vm0, %v1280_v40, 0.0  ;;  %v3403_v25 = vld [vmem:[%s4042_s3] ss:$0 sm:$0xff] }
 0x23f   : > { %v1343_v32 = vmul.f32 %v3390_v42, %v3390_v42  ;;  %v1344_v34 = vmul.f32 %v3394_v8, %v3394_v8 }
 0x241   : > { %1403 = vadd.xlane.f32.xlu1 %v1342_v41  ;;  %1405 = vadd.xlane.f32.xlu0 %v1343_v32 }
 0x245   : > { %1407 = vadd.xlane.f32.xlu1 %v1344_v34 }
 0x28e   : > { %v1346_v35 = vpop.xlane.xlu0 %1345 }
 0x28f   : > { %v1409_v62 = vmul.f32 0.25, %v1346_v35 }
 0x291   : > { %v1441_v63 = vadd.f32 1e-05, %v1409_v62  ;;  %v3409_v62 = vld [vmem:[%s4043_s4] ss:$0 sm:$0xff] }
 0x292   : > { %v1348_v48 = vpop.xlane.xlu1 %1347  ;;  %v1350_v49 = vpop.xlane.xlu0 %1349 }
 0x293   : > { %2502 = vrsqrt.f32 %v1441_v63  ;;  %v1410_v55 = vmul.f32 0.25, %v1348_v48  ;;  %v1411_v61 = vmul.f32 0.25, %v1350_v49 }
 0x295   : > { %v1442_v14 = vadd.f32 1e-05, %v1410_v55  ;;  %v1443_v38 = vadd.f32 1e-05, %v1411_v61 }
 0x296   : > { %v1352_v6 = vpop.xlane.xlu1 %1351  ;;  %v1354_v7 = vpop.xlane.xlu0 %1353 }
 0x297   : > { %2504 = vrsqrt.f32 %v1442_v14  ;;  %v1412_v4 = vmul.f32 0.25, %v1352_v6  ;;  %v1413_v5 = vmul.f32 0.25, %v1354_v7 }
 0x298   : > { %2506 = vrsqrt.f32 %v1443_v38 }
 0x299   : > { %v1444_v10 = vadd.f32 1e-05, %v1412_v4  ;;  %v1445_v58 = vadd.f32 1e-05, %v1413_v5 }
 0x29a   : > { %v1356_v20 = vpop.xlane.xlu1 %1355  ;;  %v1358_v44 = vpop.xlane.xlu0 %1357 }
 0x29b   : > { %2508 = vrsqrt.f32 %v1444_v10  ;;  %v1414_v16 = vmul.f32 0.25, %v1356_v20  ;;  %v1415_v17 = vmul.f32 0.25, %v1358_v44 }
 0x29c   : > { %2510 = vrsqrt.f32 %v1445_v58 }
 0x29d   : > { %v1446_v22 = vadd.f32 1e-05, %v1414_v16  ;;  %v1447_v23 = vadd.f32 1e-05, %v1415_v17 }
 0x29e   : > { %v1360_v28 = vpop.xlane.xlu1 %1359  ;;  %v1362_v2 = vpop.xlane.xlu0 %1361 }
 0x29f   : > { %2512 = vrsqrt.f32 %v1446_v22  ;;  %v1416_v26 = vmul.f32 0.25, %v1360_v28  ;;  %v1417_v51 = vmul.f32 0.25, %v1362_v2 }
 0x2a0   : > { %v2503_v24 = vpop.eup %2502  ;;  %2514 = vrsqrt.f32 %v1447_v23 }
 0x2a1   : > { %v1448_v40 = vadd.f32 1e-05, %v1416_v26  ;;  %v1449_v41 = vadd.f32 1e-05, %v1417_v51  ;;  %v1505_v32 = vmul.f32 %v2503_v24, %v3180_v56 }
 0x2a2   : > { %v1364_v34 = vpop.xlane.xlu1 %1363  ;;  %v1366_v35 = vpop.xlane.xlu0 %1365 }
 0x2a3   : > { %2516 = vrsqrt.f32 %v1448_v40  ;;  %v1418_v63 = vmul.f32 0.25, %v1364_v34  ;;  %v1419_v48 = vmul.f32 0.25, %v1366_v35  ;;  %v1543_v49 = vmul.f32 %v3403_v25, %v1505_v32 }
 0x2a4   : > { %v2505_v55 = vpop.eup %2504  ;;  %2518 = vrsqrt.f32 %v1449_v41 }
 0x2a5   : > { %v2507_v61 = vpop.eup %2506  ;;  %v1450_v14 = vadd.f32 1e-05, %v1418_v63  ;;  %v1451_v38 = vadd.f32 1e-05, %v1419_v48  ;;  %v3413_v6 = vadd.f32 %v3409_v62, %v1543_v49  ;;  %v1506_v56 = vmul.f32 %v2505_v55, %v3194_v11 }
 0x2a6   : > { %v1368_v7 = vpop.xlane.xlu1 %1367  ;;  %v1370_v4 = vpop.xlane.xlu0 %1369  ;;  %v1507_v5 = vmul.f32 %v2507_v61, %v3184_v60 }
 0x2a7   : > { %2520 = vrsqrt.f32 %v1450_v14  ;;  %v1420_v10 = vmul.f32 0.25, %v1368_v7  ;;  %v1421_v58 = vmul.f32 0.25, %v1370_v4  ;;  %v1613_v20 = vsel %vm1120_vm0, %v3413_v6, -1e+30 }
 0x2a8   : > { %v2509_v44 = vpop.eup %2508  ;;  %2522 = vrsqrt.f32 %v1451_v38  ;;  %1645 = vmax.xlane.f32.xlu0 %v1613_v20  ;;  %v1544_v16 = vmul.f32 %v3403_v25, %v1506_v56  ;;  %v1545_v17 = vmul.f32 %v3403_v25, %v1507_v5 }
 0x2a9   : > { %v2511_v22 = vpop.eup %2510  ;;  %v1452_v11 = vadd.f32 1e-05, %v1420_v10  ;;  %v1453_v23 = vadd.f32 1e-05, %v1421_v58  ;;  %v1508_v28 = vmul.f32 %v2509_v44, %v3198_v12 }
 0x2aa   : > { %v1372_v60 = vpop.xlane.xlu1 %1371  ;;  %v1374_v2 = vpop.xlane.xlu0 %1373  ;;  %v3424_v26 = vadd.f32 %v3409_v62, %v1544_v16  ;;  %v3427_v51 = vadd.f32 %v3409_v62, %v1545_v17  ;;  %v1509_v24 = vmul.f32 %v2511_v22, %v3208_v29 }
 0x2ab   : > { %2524 = vrsqrt.f32 %v1452_v11  ;;  %v1422_v40 = vmul.f32 0.25, %v1372_v60  ;;  %v1423_v41 = vmul.f32 0.25, %v1374_v2  ;;  %v1546_v32 = vmul.f32 %v3403_v25, %v1508_v28 }
 0x2ac   : > { %v2513_v34 = vpop.eup %2512  ;;  %2526 = vrsqrt.f32 %v1453_v23  ;;  %v1614_v12 = vsel %vm1120_vm0, %v3424_v26, -1e+30  ;;  %v1615_v35 = vsel %vm1120_vm0, %v3427_v51, -1e+30  ;;  %v1547_v63 = vmul.f32 %v3403_v25, %v1509_v24 }
 0x2ad   : > { %v2515_v48 = vpop.eup %2514  ;;  %v1454_v49 = vadd.f32 1e-05, %v1422_v40  ;;  %v1455_v29 = vadd.f32 1e-05, %v1423_v41  ;;  %1647 = vmax.xlane.f32.xlu1 %v1614_v12  ;;  %1649 = vmax.xlane.f32.xlu0 %v1615_v35  ;;  %v3439_v55 = vadd.f32 %v3409_v62, %v1546_v32  ;;  %v1510_v61 = vmul.f32 %v2513_v34, %v3212_v30 }
 0x2ae   : > { %v1376_v14 = vpop.xlane.xlu1 %1375  ;;  %v1378_v38 = vpop.xlane.xlu0 %1377  ;;  %v3443_v56 = vadd.f32 %v3409_v62, %v1547_v63  ;;  %v1511_v7 = vmul.f32 %v2515_v48, %v3222_v43 }
 0x2af   : > { %2528 = vrsqrt.f32 %v1454_v49  ;;  %v1424_v4 = vmul.f32 0.25, %v1376_v14  ;;  %v1425_v5 = vmul.f32 0.25, %v1378_v38  ;;  %v1616_v10 = vsel %vm1120_vm0, %v3439_v55, -1e+30 }
 0x2b0   : > { %v2517_v58 = vpop.eup %2516  ;;  %2530 = vrsqrt.f32 %v1455_v29  ;;  %v1617_v30 = vsel %vm1120_vm0, %v3443_v56, -1e+30  ;;  %v1548_v20 = vmul.f32 %v3403_v25, %v1510_v61  ;;  %v1549_v44 = vmul.f32 %v3403_v25, %v1511_v7 }
 0x2b1   : > { %v2519_v16 = vpop.eup %2518  ;;  %v1456_v17 = vadd.f32 1e-05, %v1424_v4  ;;  %v1457_v43 = vadd.f32 1e-05, %v1425_v5  ;;  %1651 = vmax.xlane.f32.xlu1 %v1616_v10  ;;  %1653 = vmax.xlane.f32.xlu0 %v1617_v30  ;;  %v1512_v22 = vmul.f32 %v2517_v58, %v3226_v46 }
 0x2b2   : > { %v1380_v11 = vpop.xlane.xlu1 %1379  ;;  %v1382_v23 = vpop.xlane.xlu0 %1381  ;;  %v3456_v28 = vadd.f32 %v3409_v62, %v1548_v20  ;;  %v3459_v60 = vadd.f32 %v3409_v62, %v1549_v44  ;;  %v1513_v2 = vmul.f32 %v2519_v16, %v3236_v0 }
 0x2b3   : > { %2532 = vrsqrt.f32 %v1456_v17  ;;  %v1426_v24 = vmul.f32 0.25, %v1380_v11  ;;  %v1427_v40 = vmul.f32 0.25, %v1382_v23  ;;  %v1550_v41 = vmul.f32 %v3403_v25, %v1512_v22 }
 0x2b4   : > { %v2521_v32 = vpop.eup %2520  ;;  %2534 = vrsqrt.f32 %v1457_v43  ;;  %v1618_v46 = vsel %vm1120_vm0, %v3456_v28, -1e+30  ;;  %v1619_v34 = vsel %vm1120_vm0, %v3459_v60, -1e+30  ;;  %v1551_v12 = vmul.f32 %v3403_v25, %v1513_v2 }
 0x2b5   : > { %v2523_v35 = vpop.eup %2522  ;;  %v1458_v63 = vadd.f32 1e-05, %v1426_v24  ;;  %v1459_v0 = vadd.f32 1e-05, %v1427_v40  ;;  %1655 = vmax.xlane.f32.xlu1 %v1618_v46  ;;  %1657 = vmax.xlane.f32.xlu0 %v1619_v34  ;;  %v3471_v48 = vadd.f32 %v3409_v62, %v1550_v41  ;;  %v1514_v49 = vmul.f32 %v2521_v32, %v3240_v53 }
 0x2b6   : > { %v1384_v29 = vpop.xlane.xlu1 %1383  ;;  %v1386_v61 = vpop.xlane.xlu0 %1385  ;;  %v3475_v14 = vadd.f32 %v3409_v62, %v1551_v12  ;;  %v1515_v38 = vmul.f32 %v2523_v35, %v3250_v59 }
 0x2b7   : > { %2536 = vrsqrt.f32 %v1458_v63  ;;  %v1428_v7 = vmul.f32 0.25, %v1384_v29  ;;  %v1429_v4 = vmul.f32 0.25, %v1386_v61  ;;  %v1620_v5 = vsel %vm1120_vm0, %v3471_v48, -1e+30 }
 0x2b8   : > { %v2525_v10 = vpop.eup %2524  ;;  %2538 = vrsqrt.f32 %v1459_v0  ;;  %v1621_v53 = vsel %vm1120_vm0, %v3475_v14, -1e+30  ;;  %v1552_v58 = vmul.f32 %v3403_v25, %v1514_v49  ;;  %v1553_v30 = vmul.f32 %v3403_v25, %v1515_v38 }
 0x2b9   : > { %v2527_v20 = vpop.eup %2526  ;;  %v1460_v44 = vadd.f32 1e-05, %v1428_v7  ;;  %v1461_v59 = vadd.f32 1e-05, %v1429_v4  ;;  %1659 = vmax.xlane.f32.xlu1 %v1620_v5  ;;  %1661 = vmax.xlane.f32.xlu0 %v1621_v53  ;;  %v1516_v16 = vmul.f32 %v2525_v10, %v3254_v13 }
 0x2ba   : > { %v1388_v17 = vpop.xlane.xlu1 %1387  ;;  %v1390_v43 = vpop.xlane.xlu0 %1389  ;;  %v3488_v22 = vadd.f32 %v3409_v62, %v1552_v58  ;;  %v3491_v11 = vadd.f32 %v3409_v62, %v1553_v30  ;;  %v1517_v23 = vmul.f32 %v2527_v20, %v3264_v3 }
 0x2bb   : > { %2540 = vrsqrt.f32 %v1460_v44  ;;  %v1430_v2 = vmul.f32 0.25, %v1388_v17  ;;  %v1431_v24 = vmul.f32 0.25, %v1390_v43  ;;  %v1554_v40 = vmul.f32 %v3403_v25, %v1516_v16 }
 0x2bc   : > { %v2529_v41 = vpop.eup %2528  ;;  %2542 = vrsqrt.f32 %v1461_v59  ;;  %v1622_v13 = vsel %vm1120_vm0, %v3488_v22, -1e+30  ;;  %v1623_v32 = vsel %vm1120_vm0, %v3491_v11, -1e+30  ;;  %v1555_v46 = vmul.f32 %v3403_v25, %v1517_v23 }
 0x2bd   : > { %v2531_v34 = vpop.eup %2530  ;;  %v1462_v12 = vadd.f32 1e-05, %v1430_v2  ;;  %v1463_v3 = vadd.f32 1e-05, %v1431_v24  ;;  %1663 = vmax.xlane.f32.xlu1 %v1622_v13  ;;  %1665 = vmax.xlane.f32.xlu0 %v1623_v32  ;;  %v3503_v35 = vadd.f32 %v3409_v62, %v1554_v40  ;;  %v1518_v63 = vmul.f32 %v2529_v41, %v3268_v31 }
 0x2be   : > { %v1392_v0 = vpop.xlane.xlu1 %1391  ;;  %v1394_v49 = vpop.xlane.xlu0 %1393  ;;  %v3507_v29 = vadd.f32 %v3409_v62, %v1555_v46  ;;  %v1519_v61 = vmul.f32 %v2531_v34, %v3278_v9 }
 0x2bf   : > { %2544 = vrsqrt.f32 %v1462_v12  ;;  %v1432_v38 = vmul.f32 0.25, %v1392_v0  ;;  %v1433_v7 = vmul.f32 0.25, %v1394_v49  ;;  %v1624_v4 = vsel %vm1120_vm0, %v3503_v35, -1e+30 }
 0x2c0   : > { %v2533_v5 = vpop.eup %2532  ;;  %2546 = vrsqrt.f32 %v1463_v3  ;;  %v1625_v31 = vsel %vm1120_vm0, %v3507_v29, -1e+30  ;;  %v1556_v10 = vmul.f32 %v3403_v25, %v1518_v63  ;;  %v1557_v53 = vmul.f32 %v3403_v25, %v1519_v61 }
 0x2c1   : > { %v2535_v58 = vpop.eup %2534  ;;  %v1464_v30 = vadd.f32 1e-05, %v1432_v38  ;;  %v1465_v9 = vadd.f32 1e-05, %v1433_v7  ;;  %1667 = vmax.xlane.f32.xlu1 %v1624_v4  ;;  %1669 = vmax.xlane.f32.xlu0 %v1625_v31  ;;  %v1520_v20 = vmul.f32 %v2533_v5, %v3282_v50 }
 0x2c2   : > { %v1396_v44 = vpop.xlane.xlu1 %1395  ;;  %v1398_v59 = vpop.xlane.xlu0 %1397  ;;  %v3520_v16 = vadd.f32 %v3409_v62, %v1556_v10  ;;  %v3523_v17 = vadd.f32 %v3409_v62, %v1557_v53  ;;  %v1521_v43 = vmul.f32 %v2535_v58, %v3292_v15 }
 0x2c3   : > { %2548 = vrsqrt.f32 %v1464_v30  ;;  %v1434_v23 = vmul.f32 0.25, %v1396_v44  ;;  %v1435_v2 = vmul.f32 0.25, %v1398_v59  ;;  %v1558_v24 = vmul.f32 %v3403_v25, %v1520_v20 }
 0x2c4   : > { %v2537_v40 = vpop.eup %2536  ;;  %2550 = vrsqrt.f32 %v1465_v9  ;;  %v1626_v50 = vsel %vm1120_vm0, %v3520_v16, -1e+30  ;;  %v1627_v41 = vsel %vm1120_vm0, %v3523_v17, -1e+30  ;;  %v1559_v13 = vmul.f32 %v3403_v25, %v1521_v43 }
 0x2c5   : > { %v2539_v32 = vpop.eup %2538  ;;  %v1466_v46 = vadd.f32 1e-05, %v1434_v23  ;;  %v1467_v15 = vadd.f32 1e-05, %v1435_v2  ;;  %1671 = vmax.xlane.f32.xlu1 %v1626_v50  ;;  %1673 = vmax.xlane.f32.xlu0 %v1627_v41  ;;  %v3535_v34 = vadd.f32 %v3409_v62, %v1558_v24  ;;  %v1522_v12 = vmul.f32 %v2537_v40, %v3296_v54 }
 0x2c6   : > { %v1400_v3 = vpop.xlane.xlu1 %1399  ;;  %v1402_v63 = vpop.xlane.xlu0 %1401  ;;  %v3539_v0 = vadd.f32 %v3409_v62, %v1559_v13  ;;  %v1523_v49 = vmul.f32 %v2539_v32, %v3306_v21 }
 0x2c7   : > { %2552 = vrsqrt.f32 %v1466_v46  ;;  %v1436_v61 = vmul.f32 0.25, %v1400_v3  ;;  %v1437_v38 = vmul.f32 0.25, %v1402_v63  ;;  %v1628_v7 = vsel %vm1120_vm0, %v3535_v34, -1e+30 }
 0x2c8   : > { %v2541_v4 = vpop.eup %2540  ;;  %2554 = vrsqrt.f32 %v1467_v15  ;;  %v1629_v54 = vsel %vm1120_vm0, %v3539_v0, -1e+30  ;;  %v1560_v5 = vmul.f32 %v3403_v25, %v1522_v12  ;;  %v1561_v31 = vmul.f32 %v3403_v25, %v1523_v49 }
 0x2c9   : > { %v2543_v10 = vpop.eup %2542  ;;  %v1468_v53 = vadd.f32 1e-05, %v1436_v61  ;;  %v1469_v21 = vadd.f32 1e-05, %v1437_v38  ;;  %1675 = vmax.xlane.f32.xlu1 %v1628_v7  ;;  %1677 = vmax.xlane.f32.xlu0 %v1629_v54  ;;  %v1524_v58 = vmul.f32 %v2541_v4, %v3310_v18 }
 0x2ca   : > { %v1404_v30 = vpop.xlane.xlu1 %1403  ;;  %v1406_v9 = vpop.xlane.xlu0 %1405  ;;  %v3552_v20 = vadd.f32 %v3409_v62, %v1560_v5  ;;  %v3555_v44 = vadd.f32 %v3409_v62, %v1561_v31  ;;  %v1525_v59 = vmul.f32 %v2543_v10, %v3320_v27 }
 0x2cb   : > { %2556 = vrsqrt.f32 %v1468_v53  ;;  %v1438_v43 = vmul.f32 0.25, %v1404_v30  ;;  %v1439_v23 = vmul.f32 0.25, %v1406_v9  ;;  %v1562_v2 = vmul.f32 %v3403_v25, %v1524_v58 }
 0x2cc   : > { %4059 = vst [vmem:[#allocation4_spill] sm:$0xff] %v3552_v20  ;;  %4060 = vst [vmem:[#allocation5_spill] sm:$0xff] %v3555_v44  ;;  %v2545_v24 = vpop.eup %2544  ;;  %2558 = vrsqrt.f32 %v1469_v21  ;;  %v1630_v18 = vsel %vm1120_vm0, %v3552_v20, -1e+30  ;;  %v1631_v40 = vsel %vm1120_vm0, %v3555_v44, -1e+30  ;;  %v1563_v50 = vmul.f32 %v3403_v25, %v1525_v59 }
 0x2cd   : > { %v2547_v41 = vpop.eup %2546  ;;  %v1470_v13 = vadd.f32 1e-05, %v1438_v43  ;;  %v1471_v27 = vadd.f32 1e-05, %v1439_v23  ;;  %1679 = vmax.xlane.f32.xlu1 %v1630_v18  ;;  %1681 = vmax.xlane.f32.xlu0 %v1631_v40  ;;  %v3567_v32 = vadd.f32 %v3409_v62, %v1562_v2  ;;  %v1526_v46 = vmul.f32 %v2545_v24, %v3324_v36 }
 0x2ce   : > { %v1408_v15 = vpop.xlane.xlu1 %1407  ;;  %v3571_v12 = vadd.f32 %v3409_v62, %v1563_v50  ;;  %v1527_v3 = vmul.f32 %v2547_v41, %v3334_v33 }
 0x2cf   : > { %4061 = vst [vmem:[#allocation6_spill] sm:$0xff] %v3567_v32  ;;  %2560 = vrsqrt.f32 %v1470_v13  ;;  %v1440_v63 = vmul.f32 0.25, %v1408_v15  ;;  %v1632_v49 = vsel %vm1120_vm0, %v3567_v32, -1e+30  ;;  %v1564_v61 = vmul.f32 %v3403_v25, %v1526_v46 }
 0x2d0   : > { %4062 = vst [vmem:[#allocation7_spill] sm:$0xff] %v3571_v12  ;;  %v2549_v38 = vpop.eup %2548  ;;  %2562 = vrsqrt.f32 %v1471_v27  ;;  %v1633_v36 = vsel %vm1120_vm0, %v3571_v12, -1e+30  ;;  %v1565_v7 = vmul.f32 %v3403_v25, %v1527_v3 }
 0x2d1   : > { %v2551_v4 = vpop.eup %2550  ;;  %v1472_v54 = vadd.f32 1e-05, %v1440_v63  ;;  %1683 = vmax.xlane.f32.xlu1 %v1632_v49  ;;  %1685 = vmax.xlane.f32.xlu0 %v1633_v36  ;;  %v3583_v33 = vadd.f32 %v3409_v62, %v1564_v61  ;;  %v1528_v5 = vmul.f32 %v2549_v38, %v3338_v47 }
 0x2d2   : > { %v3587_v31 = vadd.f32 %v3409_v62, %v1565_v7  ;;  %v1529_v10 = vmul.f32 %v2551_v4, %v3348_v39 }
 0x2d3   : > { %4063 = vst [vmem:[#allocation8_spill] sm:$0xff] %v3583_v33  ;;  %2564 = vrsqrt.f32 %v1472_v54  ;;  %v1634_v53 = vsel %vm1120_vm0, %v3583_v33, -1e+30  ;;  %v1566_v21 = vmul.f32 %v3403_v25, %v1528_v5 }
 0x2d4   : > { %4064 = vst [vmem:[#allocation9_spill] sm:$0xff] %v3587_v31  ;;  %v2553_v58 = vpop.eup %2552  ;;  %v1635_v30 = vsel %vm1120_vm0, %v3587_v31, -1e+30  ;;  %v1567_v9 = vmul.f32 %v3403_v25, %v1529_v10 }
 0x2d5   : > { %v2555_v47 = vpop.eup %2554  ;;  %1687 = vmax.xlane.f32.xlu1 %v1634_v53  ;;  %1689 = vmax.xlane.f32.xlu0 %v1635_v30  ;;  %v3599_v59 = vadd.f32 %v3409_v62, %v1566_v21  ;;  %v1530_v39 = vmul.f32 %v2553_v58, %v3352_v1 }
 0x2d6   : > { %v3603_v43 = vadd.f32 %v3409_v62, %v1567_v9  ;;  %v1531_v23 = vmul.f32 %v2555_v47, %v3362_v45 }
 0x2d7   : > { %4065 = vst [vmem:[#allocation10_spill] sm:$0xff] %v3599_v59  ;;  %v1636_v2 = vsel %vm1120_vm0, %v3599_v59, -1e+30  ;;  %v1568_v24 = vmul.f32 %v3403_v25, %v1530_v39 }
 0x2d8   : > { %4066 = vst [vmem:[#allocation11_spill] sm:$0xff] %v3603_v43  ;;  %v2557_v18 = vpop.eup %2556  ;;  %v1637_v40 = vsel %vm1120_vm0, %v3603_v43, -1e+30  ;;  %v1569_v50 = vmul.f32 %v3403_v25, %v1531_v23 }
 0x2d9   : > { %v2559_v41 = vpop.eup %2558  ;;  %1691 = vmax.xlane.f32.xlu1 %v1636_v2  ;;  %1693 = vmax.xlane.f32.xlu0 %v1637_v40  ;;  %v3615_v1 = vadd.f32 %v3409_v62, %v1568_v24  ;;  %v1532_v45 = vmul.f32 %v2557_v18, %v3366_v19 }
 0x2da   : > { %v3619_v13 = vadd.f32 %v3409_v62, %v1569_v50  ;;  %v1533_v27 = vmul.f32 %v2559_v41, %v3376_v52 }
 0x2db   : > { %4067 = vst [vmem:[#allocation12_spill] sm:$0xff] %v3615_v1  ;;  %v1638_v46 = vsel %vm1120_vm0, %v3615_v1, -1e+30  ;;  %v1570_v15 = vmul.f32 %v3403_v25, %v1532_v45 }
 0x2dc   : > { %4068 = vst [vmem:[#allocation13_spill] sm:$0xff] %v3619_v13  ;;  %v2561_v3 = vpop.eup %2560  ;;  %v1639_v63 = vsel %vm1120_vm0, %v3619_v13, -1e+30  ;;  %v1571_v49 = vmul.f32 %v3403_v25, %v1533_v27 }
 0x2dd   : > { %v2563_v61 = vpop.eup %2562  ;;  %1695 = vmax.xlane.f32.xlu1 %v1638_v46  ;;  %1697 = vmax.xlane.f32.xlu0 %v1639_v63  ;;  %v3631_v19 = vadd.f32 %v3409_v62, %v1570_v15  ;;  %v1534_v52 = vmul.f32 %v2561_v3, %v3380_v37 }
 0x2de   : > { %v3635_v38 = vadd.f32 %v3409_v62, %v1571_v49  ;;  %v1535_v36 = vmul.f32 %v2563_v61, %v3390_v42 }
 0x2df   : > { %v1640_v7 = vsel %vm1120_vm0, %v3631_v19, -1e+30  ;;  %v1572_v4 = vmul.f32 %v3403_v25, %v1534_v52 }
 0x2e0   : > { %4069 = vst [vmem:[#allocation14_spill] sm:$0xff] %v3635_v38  ;;  %v2565_v54 = vpop.eup %2564  ;;  %v1641_v5 = vsel %vm1120_vm0, %v3635_v38, -1e+30  ;;  %v1573_v10 = vmul.f32 %v3403_v25, %v1535_v36 }
 0x2e1   : > { %1699 = vmax.xlane.f32.xlu1 %v1640_v7  ;;  %1701 = vmax.xlane.f32.xlu0 %v1641_v5  ;;  %v3647_v37 = vadd.f32 %v3409_v62, %v1572_v4  ;;  %v1536_v42 = vmul.f32 %v2565_v54, %v3394_v8 }
 0x2e2   : > { %v3651_v53 = vadd.f32 %v3409_v62, %v1573_v10 }
 0x2e3   : > { %4070 = vst [vmem:[#allocation15_spill] sm:$0xff] %v3647_v37  ;;  %v1642_v21 = vsel %vm1120_vm0, %v3647_v37, -1e+30  ;;  %v1574_v58 = vmul.f32 %v3403_v25, %v1536_v42 }
 0x2e4   : > { %4071 = vst [vmem:[#allocation16_spill] sm:$0xff] %v3651_v53  ;;  %v1643_v30 = vsel %vm1120_vm0, %v3651_v53, -1e+30 }
 0x2e5   : > { %1703 = vmax.xlane.f32.xlu1 %v1642_v21  ;;  %1705 = vmax.xlane.f32.xlu0 %v1643_v30  ;;  %v3661_v9 = vadd.f32 %v3409_v62, %v1574_v58 }
 0x2e7   : > { %4072 = vst [vmem:[#allocation17_spill] sm:$0xff] %v3661_v9  ;;  %v1644_v8 = vsel %vm1120_vm0, %v3661_v9, -1e+30 }
 0x2e9   : > { %1707 = vmax.xlane.f32.xlu1 %v1644_v8 }
 0x331   : > { %v3666_v47 = vpop.xlane.xlu0 %1645 }
 0x332   : > { %v1709_v39 = vsub.f32 %v3413_v6, %v3666_v47 }
 0x334   : > { %v1741_v25 = vmul.f32 1.442695, %v1709_v39 }
 0x336   : > { %2566 = vpow2.f32 %v1741_v25  ;;  %v3670_v23 = vpop.xlane.xlu1 %1647  ;;  %v3672_v2 = vpop.xlane.xlu0 %1649 }
 0x337   : > { %v1710_v62 = vsub.f32 %v3424_v26, %v3670_v23  ;;  %v1711_v24 = vsub.f32 %v3427_v51, %v3672_v2 }
 0x339   : > { %v1743_v18 = vmul.f32 1.442695, %v1710_v62  ;;  %v1745_v40 = vmul.f32 1.442695, %v1711_v24 }
 0x33a   : > { %v3678_v50 = vpop.xlane.xlu1 %1651  ;;  %v3680_v41 = vpop.xlane.xlu0 %1653 }
 0x33b   : > { %2568 = vpow2.f32 %v1743_v18  ;;  %v1712_v45 = vsub.f32 %v3439_v55, %v3678_v50  ;;  %v1713_v27 = vsub.f32 %v3443_v56, %v3680_v41 }
 0x33c   : > { %2570 = vpow2.f32 %v1745_v40 }
 0x33d   : > { %v1747_v46 = vmul.f32 1.442695, %v1712_v45  ;;  %v1749_v15 = vmul.f32 1.442695, %v1713_v27 }
 0x33e   : > { %v3686_v3 = vpop.xlane.xlu1 %1655  ;;  %v3688_v63 = vpop.xlane.xlu0 %1657 }
 0x33f   : > { %2572 = vpow2.f32 %v1747_v46  ;;  %v1714_v49 = vsub.f32 %v3456_v28, %v3686_v3  ;;  %v1715_v61 = vsub.f32 %v3459_v60, %v3688_v63 }
 0x340   : > { %2574 = vpow2.f32 %v1749_v15 }
 0x341   : > { %v1751_v52 = vmul.f32 1.442695, %v1714_v49  ;;  %v1753_v36 = vmul.f32 1.442695, %v1715_v61 }
 0x342   : > { %v3694_v7 = vpop.xlane.xlu1 %1659  ;;  %v3696_v4 = vpop.xlane.xlu0 %1661 }
 0x343   : > { %v2567_v54 = vpop.eup %2566  ;;  %2576 = vpow2.f32 %v1751_v52  ;;  %v1716_v5 = vsub.f32 %v3471_v48, %v3694_v7  ;;  %v1717_v10 = vsub.f32 %v3475_v14, %v3696_v4 }
 0x344   : > { %2578 = vpow2.f32 %v1753_v36  ;;  %v1805_v42 = vsel %vm1120_vm0, %v2567_v54, 0.0 }
 0x345   : > { %v1755_v21 = vmul.f32 1.442695, %v1716_v5  ;;  %v1757_v58 = vmul.f32 1.442695, %v1717_v10  ;;  %1837 = vadd.xlane.f32.xlu0 %v1805_v42 }
 0x346   : > { %v3704_v30 = vpop.xlane.xlu1 %1663  ;;  %v3706_v8 = vpop.xlane.xlu0 %1665 }
 0x347   : > { %2580 = vpow2.f32 %v1755_v21  ;;  %v1718_v39 = vsub.f32 %v3488_v22, %v3704_v30  ;;  %v1719_v25 = vsub.f32 %v3491_v11, %v3706_v8 }
 0x348   : > { %v2569_v62 = vpop.eup %2568  ;;  %2582 = vpow2.f32 %v1757_v58 }
 0x349   : > { %v2571_v24 = vpop.eup %2570  ;;  %v1759_v18 = vmul.f32 1.442695, %v1718_v39  ;;  %v1761_v40 = vmul.f32 1.442695, %v1719_v25  ;;  %v1806_v45 = vsel %vm1120_vm0, %v2569_v62, 0.0 }
 0x34a   : > { %1839 = vadd.xlane.f32.xlu1 %v1806_v45  ;;  %v3714_v27 = vpop.xlane.xlu1 %1667  ;;  %v1807_v46 = vsel %vm1120_vm0, %v2571_v24, 0.0  ;;  %v3718_v15 = vpop.xlane.xlu0 %1669 }
 0x34b   : > { %2584 = vpow2.f32 %v1759_v18  ;;  %v1720_v49 = vsub.f32 %v3503_v35, %v3714_v27  ;;  %1841 = vadd.xlane.f32.xlu0 %v1807_v46  ;;  %v1721_v61 = vsub.f32 %v3507_v29, %v3718_v15 }
 0x34c   : > { %v2573_v52 = vpop.eup %2572  ;;  %2586 = vpow2.f32 %v1761_v40 }
 0x34d   : > { %v2575_v36 = vpop.eup %2574  ;;  %v1763_v54 = vmul.f32 1.442695, %v1720_v49  ;;  %v1765_v5 = vmul.f32 1.442695, %v1721_v61  ;;  %v1808_v10 = vsel %vm1120_vm0, %v2573_v52, 0.0 }
 0x34e   : > { %1843 = vadd.xlane.f32.xlu1 %v1808_v10  ;;  %v3726_v42 = vpop.xlane.xlu1 %1671  ;;  %v1809_v21 = vsel %vm1120_vm0, %v2575_v36, 0.0  ;;  %v3730_v58 = vpop.xlane.xlu0 %1673 }
 0x34f   : > { %2588 = vpow2.f32 %v1763_v54  ;;  %v1722_v39 = vsub.f32 %v3520_v16, %v3726_v42  ;;  %1845 = vadd.xlane.f32.xlu0 %v1809_v21  ;;  %v1723_v25 = vsub.f32 %v3523_v17, %v3730_v58 }
 0x350   : > { %v2577_v62 = vpop.eup %2576  ;;  %2590 = vpow2.f32 %v1765_v5 }
 0x351   : > { %v2579_v24 = vpop.eup %2578  ;;  %v1767_v18 = vmul.f32 1.442695, %v1722_v39  ;;  %v1769_v40 = vmul.f32 1.442695, %v1723_v25  ;;  %v1810_v45 = vsel %vm1120_vm0, %v2577_v62, 0.0 }
 0x352   : > { %1847 = vadd.xlane.f32.xlu1 %v1810_v45  ;;  %v3738_v46 = vpop.xlane.xlu1 %1675  ;;  %v1811_v49 = vsel %vm1120_vm0, %v2579_v24, 0.0  ;;  %v3742_v61 = vpop.xlane.xlu0 %1677 }
 0x353   : > { %2592 = vpow2.f32 %v1767_v18  ;;  %v1724_v52 = vsub.f32 %v3535_v34, %v3738_v46  ;;  %1849 = vadd.xlane.f32.xlu0 %v1811_v49  ;;  %v1725_v36 = vsub.f32 %v3539_v0, %v3742_v61 }
 0x354   : > { %v2581_v54 = vpop.eup %2580  ;;  %2594 = vpow2.f32 %v1769_v40 }
 0x355   : > { %v2583_v5 = vpop.eup %2582  ;;  %v1771_v10 = vmul.f32 1.442695, %v1724_v52  ;;  %v1773_v21 = vmul.f32 1.442695, %v1725_v36  ;;  %v1812_v39 = vsel %vm1120_vm0, %v2581_v54, 0.0 }
 0x356   : > { %1851 = vadd.xlane.f32.xlu1 %v1812_v39  ;;  %v3750_v25 = vpop.xlane.xlu1 %1679  ;;  %v1813_v62 = vsel %vm1120_vm0, %v2583_v5, 0.0  ;;  %v3754_v24 = vpop.xlane.xlu0 %1681 }
 0x357   : > { %2596 = vpow2.f32 %v1771_v10  ;;  %v1726_v18 = vsub.f32 %v3552_v20, %v3750_v25  ;;  %1853 = vadd.xlane.f32.xlu0 %v1813_v62  ;;  %v1727_v40 = vsub.f32 %v3555_v44, %v3754_v24 }
 0x358   : > { %v2585_v45 = vpop.eup %2584  ;;  %2598 = vpow2.f32 %v1773_v21 }
 0x359   : > { %v2587_v49 = vpop.eup %2586  ;;  %v1775_v52 = vmul.f32 1.442695, %v1726_v18  ;;  %v1777_v36 = vmul.f32 1.442695, %v1727_v40  ;;  %v1814_v54 = vsel %vm1120_vm0, %v2585_v45, 0.0 }
 0x35a   : > { %1855 = vadd.xlane.f32.xlu1 %v1814_v54  ;;  %v3762_v5 = vpop.xlane.xlu1 %1683  ;;  %v1815_v10 = vsel %vm1120_vm0, %v2587_v49, 0.0  ;;  %v3766_v39 = vpop.xlane.xlu0 %1685 }
 0x35b   : > { %2600 = vpow2.f32 %v1775_v52  ;;  %v1728_v62 = vsub.f32 %v3567_v32, %v3762_v5  ;;  %1857 = vadd.xlane.f32.xlu0 %v1815_v10  ;;  %v1729_v21 = vsub.f32 %v3571_v12, %v3766_v39 }
 0x35c   : > { %v2589_v18 = vpop.eup %2588  ;;  %2602 = vpow2.f32 %v1777_v36 }
 0x35d   : > { %v2591_v40 = vpop.eup %2590  ;;  %v1779_v45 = vmul.f32 1.442695, %v1728_v62  ;;  %v1781_v54 = vmul.f32 1.442695, %v1729_v21  ;;  %v1816_v44 = vsel %vm1120_vm0, %v2589_v18, 0.0 }
 0x35e   : > { %1859 = vadd.xlane.f32.xlu1 %v1816_v44  ;;  %v3774_v49 = vpop.xlane.xlu1 %1687  ;;  %v1817_v52 = vsel %vm1120_vm0, %v2591_v40, 0.0  ;;  %v3778_v20 = vpop.xlane.xlu0 %1689 }
 0x35f   : > { %2604 = vpow2.f32 %v1779_v45  ;;  %v1730_v10 = vsub.f32 %v3583_v33, %v3774_v49  ;;  %1861 = vadd.xlane.f32.xlu0 %v1817_v52  ;;  %v1731_v36 = vsub.f32 %v3587_v31, %v3778_v20 }
 0x360   : > { %v2593_v62 = vpop.eup %2592  ;;  %2606 = vpow2.f32 %v1781_v54 }
 0x361   : > { %v2595_v21 = vpop.eup %2594  ;;  %v1783_v18 = vmul.f32 1.442695, %v1730_v10  ;;  %v1785_v44 = vmul.f32 1.442695, %v1731_v36  ;;  %v1818_v12 = vsel %vm1120_vm0, %v2593_v62, 0.0 }
 0x362   : > { %1863 = vadd.xlane.f32.xlu1 %v1818_v12  ;;  %v3786_v40 = vpop.xlane.xlu1 %1691  ;;  %v1819_v45 = vsel %vm1120_vm0, %v2595_v21, 0.0  ;;  %v3790_v32 = vpop.xlane.xlu0 %1693 }
 0x363   : > { %2608 = vpow2.f32 %v1783_v18  ;;  %v1732_v52 = vsub.f32 %v3599_v59, %v3786_v40  ;;  %1865 = vadd.xlane.f32.xlu0 %v1819_v45  ;;  %v1733_v54 = vsub.f32 %v3603_v43, %v3790_v32 }
 0x364   : > { %v2597_v10 = vpop.eup %2596  ;;  %2610 = vpow2.f32 %v1785_v44 }
 0x365   : > { %v2599_v36 = vpop.eup %2598  ;;  %v1787_v62 = vmul.f32 1.442695, %v1732_v52  ;;  %v1789_v12 = vmul.f32 1.442695, %v1733_v54  ;;  %v1820_v31 = vsel %vm1120_vm0, %v2597_v10, 0.0 }
 0x366   : > { %1867 = vadd.xlane.f32.xlu1 %v1820_v31  ;;  %v3798_v21 = vpop.xlane.xlu1 %1695  ;;  %v1821_v18 = vsel %vm1120_vm0, %v2599_v36, 0.0  ;;  %v3802_v33 = vpop.xlane.xlu0 %1697 }
 0x367   : > { %2612 = vpow2.f32 %v1787_v62  ;;  %v1734_v45 = vsub.f32 %v3615_v1, %v3798_v21  ;;  %1869 = vadd.xlane.f32.xlu0 %v1821_v18  ;;  %v1735_v44 = vsub.f32 %v3619_v13, %v3802_v33 }
 0x368   : > { %v2601_v52 = vpop.eup %2600  ;;  %2614 = vpow2.f32 %v1789_v12 }
 0x369   : > { %v2603_v54 = vpop.eup %2602  ;;  %v1791_v10 = vmul.f32 1.442695, %v1734_v45  ;;  %v1793_v31 = vmul.f32 1.442695, %v1735_v44  ;;  %v1822_v43 = vsel %vm1120_vm0, %v2601_v52, 0.0 }
 0x36a   : > { %1871 = vadd.xlane.f32.xlu1 %v1822_v43  ;;  %v3810_v36 = vpop.xlane.xlu1 %1699  ;;  %v1823_v62 = vsel %vm1120_vm0, %v2603_v54, 0.0  ;;  %v3814_v59 = vpop.xlane.xlu0 %1701 }
 0x36b   : > { %2616 = vpow2.f32 %v1791_v10  ;;  %v1736_v18 = vsub.f32 %v3631_v19, %v3810_v36  ;;  %1873 = vadd.xlane.f32.xlu0 %v1823_v62  ;;  %v1737_v12 = vsub.f32 %v3635_v38, %v3814_v59 }
 0x36c   : > { %v2605_v45 = vpop.eup %2604  ;;  %2618 = vpow2.f32 %v1793_v31 }
 0x36d   : > { %v2607_v44 = vpop.eup %2606  ;;  %v1795_v52 = vmul.f32 1.442695, %v1736_v18  ;;  %v1797_v43 = vmul.f32 1.442695, %v1737_v12  ;;  %v1824_v13 = vsel %vm1120_vm0, %v2605_v45, 0.0 }
 0x36e   : > { %1875 = vadd.xlane.f32.xlu1 %v1824_v13  ;;  %v3822_v54 = vpop.xlane.xlu1 %1703  ;;  %v1825_v10 = vsel %vm1120_vm0, %v2607_v44, 0.0  ;;  %v3826_v1 = vpop.xlane.xlu0 %1705 }
 0x36f   : > { %2620 = vpow2.f32 %v1795_v52  ;;  %v1738_v62 = vsub.f32 %v3647_v37, %v3822_v54  ;;  %1877 = vadd.xlane.f32.xlu0 %v1825_v10  ;;  %v1739_v31 = vsub.f32 %v3651_v53, %v3826_v1 }
 0x370   : > { %v2609_v18 = vpop.eup %2608  ;;  %2622 = vpow2.f32 %v1797_v43 }
 0x371   : > { %v2611_v12 = vpop.eup %2610  ;;  %v1799_v45 = vmul.f32 1.442695, %v1738_v62  ;;  %v1801_v13 = vmul.f32 1.442695, %v1739_v31  ;;  %v1826_v38 = vsel %vm1120_vm0, %v2609_v18, 0.0 }
 0x372   : > { %1879 = vadd.xlane.f32.xlu1 %v1826_v38  ;;  %v3834_v44 = vpop.xlane.xlu1 %1707  ;;  %v1827_v52 = vsel %vm1120_vm0, %v2611_v12, 0.0 }
 0x373   : > { %2624 = vpow2.f32 %v1799_v45  ;;  %v1740_v10 = vsub.f32 %v3661_v9, %v3834_v44  ;;  %1881 = vadd.xlane.f32.xlu0 %v1827_v52 }
 0x374   : > { %v2613_v53 = vpop.eup %2612  ;;  %2626 = vpow2.f32 %v1801_v13 }
 0x375   : > { %v2615_v43 = vpop.eup %2614  ;;  %v1803_v37 = vmul.f32 1.442695, %v1740_v10  ;;  %v1828_v62 = vsel %vm1120_vm0, %v2613_v53, 0.0 }
 0x376   : > { %1883 = vadd.xlane.f32.xlu1 %v1828_v62  ;;  %v1829_v38 = vsel %vm1120_vm0, %v2615_v43, 0.0 }
 0x377   : > { %2628 = vpow2.f32 %v1803_v37  ;;  %1885 = vadd.xlane.f32.xlu0 %v1829_v38 }
 0x378   : > { %v2617_v31 = vpop.eup %2616 }
 0x379   : > { %v2619_v18 = vpop.eup %2618  ;;  %v1830_v12 = vsel %vm1120_vm0, %v2617_v31, 0.0 }
 0x37a   : > { %1887 = vadd.xlane.f32.xlu1 %v1830_v12  ;;  %v1831_v45 = vsel %vm1120_vm0, %v2619_v18, 0.0 }
 0x37b   : > { %1889 = vadd.xlane.f32.xlu0 %v1831_v45 }
 0x37c   : > { %v2621_v13 = vpop.eup %2620 }
 0x37d   : > { %v2623_v52 = vpop.eup %2622  ;;  %v1832_v53 = vsel %vm1120_vm0, %v2621_v13, 0.0 }
 0x37e   : > { %1891 = vadd.xlane.f32.xlu1 %v1832_v53  ;;  %v1833_v37 = vsel %vm1120_vm0, %v2623_v52, 0.0 }
 0x37f   : > { %1893 = vadd.xlane.f32.xlu0 %v1833_v37 }
 0x380   : > { %v2625_v10 = vpop.eup %2624 }
 0x381   : > { %v2627_v43 = vpop.eup %2626  ;;  %v1834_v62 = vsel %vm1120_vm0, %v2625_v10, 0.0 }
 0x382   : > { %1895 = vadd.xlane.f32.xlu1 %v1834_v62  ;;  %v1835_v38 = vsel %vm1120_vm0, %v2627_v43, 0.0 }
 0x383   : > { %1897 = vadd.xlane.f32.xlu0 %v1835_v38 }
 0x384   : > { %v2629_v31 = vpop.eup %2628 }
 0x385   : > { %v1836_v18 = vsel %vm1120_vm0, %v2629_v31, 0.0 }
 0x386   : > { %1899 = vadd.xlane.f32.xlu1 %v1836_v18 }
 0x3ce   : > { %v1838_v12 = vpop.xlane.xlu0 %1837 }
 0x3cf   : > { %2630 = vlog2.f32 %v1838_v12 }
 0x3d3   : > { %v1840_v45 = vpop.xlane.xlu1 %1839 }
 0x3d4   : > { %2632 = vlog2.f32 %v1840_v45  ;;  %v1842_v13 = vpop.xlane.xlu0 %1841 }
 0x3d5   : > { %2634 = vlog2.f32 %v1842_v13 }
 0x3d7   : > { %v1844_v52 = vpop.xlane.xlu1 %1843 }
 0x3d8   : > { %2636 = vlog2.f32 %v1844_v52  ;;  %v1846_v53 = vpop.xlane.xlu0 %1845 }
 0x3d9   : > { %2638 = vlog2.f32 %v1846_v53 }
 0x3db   : > { %v1848_v37 = vpop.xlane.xlu1 %1847 }
 0x3dc   : > { %v2631_v10 = vpop.eup %2630  ;;  %2640 = vlog2.f32 %v1848_v37  ;;  %v1850_v43 = vpop.xlane.xlu0 %1849 }
 0x3dd   : > { %v1902_v62 = vmul.f32 0.6931472, %v2631_v10  ;;  %2642 = vlog2.f32 %v1850_v43 }
 0x3df   : > { %v1965_v38 = vadd.f32 %v1902_v62, %v3666_v47  ;;  %v1852_v31 = vpop.xlane.xlu1 %1851 }
 0x3e0   : > { %2644 = vlog2.f32 %v1852_v31  ;;  %v1854_v18 = vpop.xlane.xlu0 %1853 }
 0x3e1   : > { %v2633_v12 = vpop.eup %2632  ;;  %v1997_v45 = vsub.f32 %v3413_v6, %v1965_v38  ;;  %2646 = vlog2.f32 %v1854_v18 }
 0x3e2   : > { %v2635_v13 = vpop.eup %2634  ;;  %v1904_v52 = vmul.f32 0.6931472, %v2633_v12 }
 0x3e3   : > { %v2029_v53 = vsel %vm1120_vm0, %v1997_v45, 0.0  ;;  %v1906_v9 = vmul.f32 0.6931472, %v2635_v13  ;;  %v1856_v37 = vpop.xlane.xlu1 %1855 }
 0x3e4   : > { %2061 = vst [vmem:[%s2922_s13] sm:$0xff] %v2029_v53  ;;  %v1966_v10 = vadd.f32 %v1904_v52, %v3670_v23  ;;  %2648 = vlog2.f32 %v1856_v37  ;;  %v1858_v47 = vpop.xlane.xlu0 %1857 }
 0x3e5   : > { %v2637_v43 = vpop.eup %2636  ;;  %v1967_v62 = vadd.f32 %v1906_v9, %v3672_v2  ;;  %2650 = vlog2.f32 %v1858_v47 }
 0x3e6   : > { %v2639_v31 = vpop.eup %2638  ;;  %v1998_v6 = vsub.f32 %v3424_v26, %v1966_v10  ;;  %v1908_v38 = vmul.f32 0.6931472, %v2637_v43 }
 0x3e7   : > { %v1999_v18 = vsub.f32 %v3427_v51, %v1967_v62  ;;  %v1910_v12 = vmul.f32 0.6931472, %v2639_v31  ;;  %v1860_v45 = vpop.xlane.xlu1 %1859 }
 0x3e8   : > { %v2030_v13 = vsel %vm1120_vm0, %v1998_v6, 0.0  ;;  %v1968_v23 = vadd.f32 %v1908_v38, %v3678_v50  ;;  %2652 = vlog2.f32 %v1860_v45  ;;  %v1862_v52 = vpop.xlane.xlu0 %1861 }
 0x3e9   : > { %v2641_v53 = vpop.eup %2640  ;;  %2062 = vst [vmem:[%s2922_s13 + $0x8] sm:$0xff] %v2030_v13  ;;  %v2031_v9 = vsel %vm1120_vm0, %v1999_v18, 0.0  ;;  %v1969_v26 = vadd.f32 %v1910_v12, %v3680_v41  ;;  %2654 = vlog2.f32 %v1862_v52 }
 0x3ea   : > { %v2643_v2 = vpop.eup %2642  ;;  %2063 = vst [vmem:[%s2922_s13 + $0x10] sm:$0xff] %v2031_v9  ;;  %v2000_v51 = vsub.f32 %v3439_v55, %v1968_v23  ;;  %v1912_v37 = vmul.f32 0.6931472, %v2641_v53 }
 0x3eb   : > { %v2001_v10 = vsub.f32 %v3443_v56, %v1969_v26  ;;  %v1914_v50 = vmul.f32 0.6931472, %v2643_v2  ;;  %v1864_v47 = vpop.xlane.xlu1 %1863 }
 0x3ec   : > { %v2032_v43 = vsel %vm1120_vm0, %v2000_v51, 0.0  ;;  %v1970_v62 = vadd.f32 %v1912_v37, %v3686_v3  ;;  %2656 = vlog2.f32 %v1864_v47  ;;  %v1866_v31 = vpop.xlane.xlu0 %1865 }
 0x3ed   : > { %v2645_v6 = vpop.eup %2644  ;;  %2064 = vst [vmem:[%s2922_s13 + $0x18] sm:$0xff] %v2032_v43  ;;  %v2033_v41 = vsel %vm1120_vm0, %v2001_v10, 0.0  ;;  %v1971_v55 = vadd.f32 %v1914_v50, %v3688_v63  ;;  %2658 = vlog2.f32 %v1866_v31 }
 0x3ee   : > { %v2647_v38 = vpop.eup %2646  ;;  %2065 = vst [vmem:[%s2922_s13 + $0x20] sm:$0xff] %v2033_v41  ;;  %v2002_v56 = vsub.f32 %v3456_v28, %v1970_v62  ;;  %v1916_v18 = vmul.f32 0.6931472, %v2645_v6 }
 0x3ef   : > { %v2003_v12 = vsub.f32 %v3459_v60, %v1971_v55  ;;  %v1918_v3 = vmul.f32 0.6931472, %v2647_v38  ;;  %v1868_v45 = vpop.xlane.xlu1 %1867 }
 0x3f0   : > { %v2034_v13 = vsel %vm1120_vm0, %v2002_v56, 0.0  ;;  %v1972_v23 = vadd.f32 %v1916_v18, %v3694_v7  ;;  %2660 = vlog2.f32 %v1868_v45  ;;  %v1870_v52 = vpop.xlane.xlu0 %1869 }
 0x3f1   : > { %v2649_v53 = vpop.eup %2648  ;;  %2066 = vst [vmem:[%s2922_s13 + $0x28] sm:$0xff] %v2034_v13  ;;  %v2035_v63 = vsel %vm1120_vm0, %v2003_v12, 0.0  ;;  %v1973_v28 = vadd.f32 %v1918_v3, %v3696_v4  ;;  %2662 = vlog2.f32 %v1870_v52 }
 0x3f2   : > { %v2651_v9 = vpop.eup %2650  ;;  %2067 = vst [vmem:[%s2922_s13 + $0x30] sm:$0xff] %v2035_v63  ;;  %v2004_v60 = vsub.f32 %v3471_v48, %v1972_v23  ;;  %v1920_v26 = vmul.f32 0.6931472, %v2649_v53 }
 0x3f3   : > { %v2005_v2 = vsub.f32 %v3475_v14, %v1973_v28  ;;  %v1922_v7 = vmul.f32 0.6931472, %v2651_v9  ;;  %v1872_v51 = vpop.xlane.xlu1 %1871 }
 0x3f4   : > { %v2036_v37 = vsel %vm1120_vm0, %v2004_v60, 0.0  ;;  %v1974_v10 = vadd.f32 %v1920_v26, %v3704_v30  ;;  %2664 = vlog2.f32 %v1872_v51  ;;  %v1874_v50 = vpop.xlane.xlu0 %1873 }
 0x3f5   : > { %v2653_v47 = vpop.eup %2652  ;;  %2068 = vst [vmem:[%s2922_s13 + $0x38] sm:$0xff] %v2036_v37  ;;  %v2037_v4 = vsel %vm1120_vm0, %v2005_v2, 0.0  ;;  %v1975_v48 = vadd.f32 %v1922_v7, %v3706_v8  ;;  %2666 = vlog2.f32 %v1874_v50 }
 0x3f6   : > { %v2655_v43 = vpop.eup %2654  ;;  %2069 = vst [vmem:[%s2922_s13 + $0x40] sm:$0xff] %v2037_v4  ;;  %v2006_v14 = vsub.f32 %v3488_v22, %v1974_v10  ;;  %v1924_v62 = vmul.f32 0.6931472, %v2653_v47 }
 0x3f7   : > { %v2007_v31 = vsub.f32 %v3491_v11, %v1975_v48  ;;  %v1926_v30 = vmul.f32 0.6931472, %v2655_v43  ;;  %v1876_v6 = vpop.xlane.xlu1 %1875 }
 0x3f8   : > { %v2038_v41 = vsel %vm1120_vm0, %v2006_v14, 0.0  ;;  %v1976_v55 = vadd.f32 %v1924_v62, %v3714_v27  ;;  %2668 = vlog2.f32 %v1876_v6  ;;  %v1878_v38 = vpop.xlane.xlu0 %1877  ;;  %v4074_v6 = vld [vmem:[#allocation5_spill] sm:$0xff] }
 0x3f9   : > { %v2657_v56 = vpop.eup %2656  ;;  %2070 = vst [vmem:[%s2922_s13 + $0x48] sm:$0xff] %v2038_v41  ;;  %v2039_v8 = vsel %vm1120_vm0, %v2007_v31, 0.0  ;;  %v1977_v22 = vadd.f32 %v1926_v30, %v3718_v15  ;;  %2670 = vlog2.f32 %v1878_v38 }
 0x3fa   : > { %v2659_v18 = vpop.eup %2658  ;;  %2071 = vst [vmem:[%s2922_s13 + $0x50] sm:$0xff] %v2039_v8  ;;  %v2008_v11 = vsub.f32 %v3503_v35, %v1976_v55  ;;  %v1928_v12 = vmul.f32 0.6931472, %v2657_v56 }
 0x3fb   : > { %v2009_v3 = vsub.f32 %v3507_v29, %v1977_v22  ;;  %v1930_v27 = vmul.f32 0.6931472, %v2659_v18  ;;  %v1880_v45 = vpop.xlane.xlu1 %1879 }
 0x3fc   : > { %v2040_v13 = vsel %vm1120_vm0, %v2008_v11, 0.0  ;;  %v1978_v23 = vadd.f32 %v1928_v12, %v3726_v42  ;;  %2672 = vlog2.f32 %v1880_v45  ;;  %v1882_v52 = vpop.xlane.xlu0 %1881  ;;  %v4075_v12 = vld [vmem:[#allocation6_spill] sm:$0xff]  ;;  %v4076_v45 = vld [vmem:[#allocation7_spill] sm:$0xff] }
 0x3fd   : > { %v2661_v53 = vpop.eup %2660  ;;  %2072 = vst [vmem:[%s2922_s13 + $0x58] sm:$0xff] %v2040_v13  ;;  %v2041_v15 = vsel %vm1120_vm0, %v2009_v3, 0.0  ;;  %v1979_v35 = vadd.f32 %v1930_v27, %v3730_v58  ;;  %2674 = vlog2.f32 %v1882_v52 }
 0x3fe   : > { %v2663_v63 = vpop.eup %2662  ;;  %2073 = vst [vmem:[%s2922_s13 + $0x60] sm:$0xff] %v2041_v15  ;;  %v2010_v29 = vsub.f32 %v3520_v16, %v1978_v23  ;;  %v1932_v28 = vmul.f32 0.6931472, %v2661_v53 }
 0x3ff   : > { %v2011_v9 = vsub.f32 %v3523_v17, %v1979_v35  ;;  %v1934_v42 = vmul.f32 0.6931472, %v2663_v63  ;;  %v1884_v60 = vpop.xlane.xlu1 %1883 }
 0x400   : > { %v2042_v26 = vsel %vm1120_vm0, %v2010_v29, 0.0  ;;  %v1980_v2 = vadd.f32 %v1932_v28, %v3738_v46  ;;  %2676 = vlog2.f32 %v1884_v60  ;;  %v1886_v7 = vpop.xlane.xlu0 %1885  ;;  %v4077_v28 = vld [vmem:[#allocation8_spill] sm:$0xff]  ;;  %v4078_v60 = vld [vmem:[#allocation9_spill] sm:$0xff] }
 0x401   : > { %v2665_v51 = vpop.eup %2664  ;;  %2074 = vst [vmem:[%s2922_s13 + $0x68] sm:$0xff] %v2042_v26  ;;  %v2043_v58 = vsel %vm1120_vm0, %v2011_v9, 0.0  ;;  %v1981_v16 = vadd.f32 %v1934_v42, %v3742_v61  ;;  %2678 = vlog2.f32 %v1886_v7 }
 0x402   : > { %v2667_v37 = vpop.eup %2666  ;;  %2075 = vst [vmem:[%s2922_s13 + $0x70] sm:$0xff] %v2043_v58  ;;  %v2012_v17 = vsub.f32 %v3535_v34, %v1980_v2  ;;  %v1936_v10 = vmul.f32 0.6931472, %v2665_v51 }
 0x403   : > { %v2013_v50 = vsub.f32 %v3539_v0, %v1981_v16  ;;  %v1938_v46 = vmul.f32 0.6931472, %v2667_v37  ;;  %v1888_v47 = vpop.xlane.xlu1 %1887  ;;  %v4073_v0 = vld [vmem:[#allocation4_spill] sm:$0xff] }
 0x404   : > { %v2044_v4 = vsel %vm1120_vm0, %v2012_v17, 0.0  ;;  %v1982_v48 = vadd.f32 %v1936_v10, %v3750_v25  ;;  %2680 = vlog2.f32 %v1888_v47  ;;  %v1890_v43 = vpop.xlane.xlu0 %1889  ;;  %v4079_v17 = vld [vmem:[#allocation10_spill] sm:$0xff] }
 0x405   : > { %v2669_v14 = vpop.eup %2668  ;;  %2076 = vst [vmem:[%s2922_s13 + $0x78] sm:$0xff] %v2044_v4  ;;  %v2045_v61 = vsel %vm1120_vm0, %v2013_v50, 0.0  ;;  %v1983_v34 = vadd.f32 %v1938_v46, %v3754_v24  ;;  %2682 = vlog2.f32 %v1890_v43  ;;  %v4080_v46 = vld [vmem:[#allocation11_spill] sm:$0xff] }
 0x406   : > { %v2671_v62 = vpop.eup %2670  ;;  %2077 = vst [vmem:[%s2922_s13 + $0x80] sm:$0xff] %v2045_v61  ;;  %v2014_v31 = vsub.f32 %v4073_v0, %v1982_v48  ;;  %v1940_v30 = vmul.f32 0.6931472, %v2669_v14 }
 0x407   : > { %v2015_v41 = vsub.f32 %v4074_v6, %v1983_v34  ;;  %v1942_v25 = vmul.f32 0.6931472, %v2671_v62  ;;  %v1892_v55 = vpop.xlane.xlu1 %1891  ;;  %v4081_v34 = vld [vmem:[#allocation12_spill] sm:$0xff] }
 0x408   : > { %v2046_v38 = vsel %vm1120_vm0, %v2014_v31, 0.0  ;;  %v1984_v56 = vadd.f32 %v1940_v30, %v3762_v5  ;;  %2684 = vlog2.f32 %v1892_v55  ;;  %v1894_v8 = vpop.xlane.xlu0 %1893  ;;  %v4082_v31 = vld [vmem:[#allocation13_spill] sm:$0xff] }
 0x409   : > { %v2673_v22 = vpop.eup %2672  ;;  %2078 = vst [vmem:[%s2922_s13 + $0x88] sm:$0xff] %v2046_v38  ;;  %v2047_v24 = vsel %vm1120_vm0, %v2015_v41, 0.0  ;;  %v1985_v18 = vadd.f32 %v1942_v25, %v3766_v39  ;;  %2686 = vlog2.f32 %v1894_v8 }
 0x40a   : > { %v2675_v11 = vpop.eup %2674  ;;  %2079 = vst [vmem:[%s2922_s13 + $0x90] sm:$0xff] %v2047_v24  ;;  %v2016_v3 = vsub.f32 %v4075_v12, %v1984_v56  ;;  %v1944_v27 = vmul.f32 0.6931472, %v2673_v22  ;;  %v4083_v22 = vld [vmem:[#allocation14_spill] sm:$0xff] }
 0x40b   : > { %v2017_v13 = vsub.f32 %v4076_v45, %v1985_v18  ;;  %v1946_v5 = vmul.f32 0.6931472, %v2675_v11  ;;  %v1896_v23 = vpop.xlane.xlu1 %1895 }
 0x40c   : > { %v2048_v52 = vsel %vm1120_vm0, %v2016_v3, 0.0  ;;  %v1986_v53 = vadd.f32 %v1944_v27, %v3774_v49  ;;  %2688 = vlog2.f32 %v1896_v23  ;;  %v1898_v15 = vpop.xlane.xlu0 %1897 }
 0x40d   : > { %v2677_v35 = vpop.eup %2676  ;;  %2080 = vst [vmem:[%s2922_s13 + $0x98] sm:$0xff] %v2048_v52  ;;  %v2049_v39 = vsel %vm1120_vm0, %v2017_v13, 0.0  ;;  %v1987_v63 = vadd.f32 %v1946_v5, %v3778_v20  ;;  %2690 = vlog2.f32 %v1898_v15  ;;  %v4085_v13 = vld [vmem:[#allocation16_spill] sm:$0xff] }
 0x40e   : > { %v2679_v29 = vpop.eup %2678  ;;  %2081 = vst [vmem:[%s2922_s13 + $0xa0] sm:$0xff] %v2049_v39  ;;  %v2018_v9 = vsub.f32 %v4077_v28, %v1986_v53  ;;  %v1948_v42 = vmul.f32 0.6931472, %v2677_v35  ;;  %v4086_v53 = vld [vmem:[#allocation17_spill] sm:$0xff] }
 0x40f   : > { %v2019_v26 = vsub.f32 %v4078_v60, %v1987_v63  ;;  %v1950_v49 = vmul.f32 0.6931472, %v2679_v29  ;;  %v1900_v2 = vpop.xlane.xlu1 %1899 }
 0x410   : > { %v2050_v7 = vsel %vm1120_vm0, %v2018_v9, 0.0  ;;  %v1988_v51 = vadd.f32 %v1948_v42, %v3786_v40  ;;  %2692 = vlog2.f32 %v1900_v2 }
 0x411   : > { %v2681_v58 = vpop.eup %2680  ;;  %2082 = vst [vmem:[%s2922_s13 + $0xa8] sm:$0xff] %v2050_v7  ;;  %v2051_v20 = vsel %vm1120_vm0, %v2019_v26, 0.0  ;;  %v1989_v16 = vadd.f32 %v1950_v49, %v3790_v32 }
 0x412   : > { %v2683_v37 = vpop.eup %2682  ;;  %2083 = vst [vmem:[%s2922_s13 + $0xb0] sm:$0xff] %v2051_v20  ;;  %v2020_v10 = vsub.f32 %v4079_v17, %v1988_v51  ;;  %v1952_v50 = vmul.f32 0.6931472, %v2681_v58 }
 0x413   : > { %v2021_v47 = vsub.f32 %v4080_v46, %v1989_v16  ;;  %v1954_v4 = vmul.f32 0.6931472, %v2683_v37 }
 0x414   : > { %v2052_v40 = vsel %vm1120_vm0, %v2020_v10, 0.0  ;;  %v1990_v48 = vadd.f32 %v1952_v50, %v3798_v21 }
 0x415   : > { %v2685_v43 = vpop.eup %2684  ;;  %2084 = vst [vmem:[%s2922_s13 + $0xb8] sm:$0xff] %v2052_v40  ;;  %v2053_v32 = vsel %vm1120_vm0, %v2021_v47, 0.0  ;;  %v1991_v14 = vadd.f32 %v1954_v4, %v3802_v33 }
 0x416   : > { %v2687_v61 = vpop.eup %2686  ;;  %2085 = vst [vmem:[%s2922_s13 + $0xc0] sm:$0xff] %v2053_v32  ;;  %v2022_v62 = vsub.f32 %v4081_v34, %v1990_v48  ;;  %v1956_v0 = vmul.f32 0.6931472, %v2685_v43 }
 0x417   : > { %v2023_v30 = vsub.f32 %v4082_v31, %v1991_v14  ;;  %v1958_v6 = vmul.f32 0.6931472, %v2687_v61 }
 0x418   : > { %v2054_v21 = vsel %vm1120_vm0, %v2022_v62, 0.0  ;;  %v1992_v41 = vadd.f32 %v1956_v0, %v3810_v36 }
 0x419   : > { %v2689_v25 = vpop.eup %2688  ;;  %2086 = vst [vmem:[%s2922_s13 + $0xc8] sm:$0xff] %v2054_v21  ;;  %v2055_v33 = vsel %vm1120_vm0, %v2023_v30, 0.0  ;;  %v1993_v55 = vadd.f32 %v1958_v6, %v3814_v59 }
 0x41a   : > { %v2691_v38 = vpop.eup %2690  ;;  %2087 = vst [vmem:[%s2922_s13 + $0xd0] sm:$0xff] %v2055_v33  ;;  %v2024_v56 = vsub.f32 %v3631_v19, %v1992_v41  ;;  %v1960_v8 = vmul.f32 0.6931472, %v2689_v25  ;;  %v4084_v19 = vld [vmem:[#allocation15_spill] sm:$0xff] }
 0x41b   : > { %v2025_v24 = vsub.f32 %v4083_v22, %v1993_v55  ;;  %v1962_v18 = vmul.f32 0.6931472, %v2691_v38 }
 0x41c   : > { %v2056_v36 = vsel %vm1120_vm0, %v2024_v56, 0.0  ;;  %v1994_v11 = vadd.f32 %v1960_v8, %v3822_v54 }
 0x41d   : > { %v2693_v12 = vpop.eup %2692  ;;  %2088 = vst [vmem:[%s2922_s13 + $0xd8] sm:$0xff] %v2056_v36  ;;  %v2057_v59 = vsel %vm1120_vm0, %v2025_v24, 0.0  ;;  %v1995_v3 = vadd.f32 %v1962_v18, %v3826_v1 }
 0x41e   : > { %2089 = vst [vmem:[%s2922_s13 + $0xe0] sm:$0xff] %v2057_v59  ;;  %v2026_v27 = vsub.f32 %v4084_v19, %v1994_v11  ;;  %v1964_v45 = vmul.f32 0.6931472, %v2693_v12 }
 0x41f   : > { %v2027_v5 = vsub.f32 %v4085_v13, %v1995_v3 }
 0x420   : > { %v2058_v23 = vsel %vm1120_vm0, %v2026_v27, 0.0  ;;  %v1996_v52 = vadd.f32 %v1964_v45, %v3834_v44 }
 0x421   : > { %2090 = vst [vmem:[%s2922_s13 + $0xe8] sm:$0xff] %v2058_v23  ;;  %v2059_v54 = vsel %vm1120_vm0, %v2027_v5, 0.0 }
 0x422   : > { %2091 = vst [vmem:[%s2922_s13 + $0xf0] sm:$0xff] %v2059_v54  ;;  %v2028_v15 = vsub.f32 %v4086_v53, %v1996_v52 }
 0x424   : > { %v2060_v1 = vsel %vm1120_vm0, %v2028_v15, 0.0 }
 0x425   : > { %2092 = vst [vmem:[%s2922_s13 + $0xf8] sm:$0xff] %v2060_v1 }
 0x426 PF: > { %s15_s24 = sadd.s32 1, %s2748_s24   ;;  %s4087_s18 = smov %s2728_s19 }
 0x427   : > { %p12_p0 = scmp.ge.s32.totalorder %s15_s24, 6   ;;  %s4088_s19 = smov %s2832_s6 }
 0x428   : > { %s4089_s20 = smov %s2740_s22  ;;  %s4090_s21 = smov %s2744_s23 }
 0x429   : > { %s4091_s22 = smov %s4094_s25  ;;  %s4092_s23 = smov %s4098_s26 }
 0x42a   :  { %14 = sbr.rel (!%p12_p0) target bundleno = 4 (0x4), region = 124 }

</bundles_post_ra>
